<compile_context>
chip_gen: v7x
topology: tpu7x:2x2x1
jax: 0.10.0
libtpu: 0.0.40
codegen_flags: <defaults>
</compile_context>

<pallas_src>
import functools

import jax
import jax.numpy as jnp
from jax.experimental import pallas as pl
from jax.experimental.pallas import tpu as pltpu


def _round_up(x, m):
    return (x + m - 1) // m * m


# ----------------------------- encoder kernel ------------------------------ #
def encoder_kernel(x_ref, wcat_ref, b_ref, h_out_ref, c_out_ref, xh_sc):
    """x_ref: [S, Bp, Ep] bf16; wcat: [Ep+Hp, 4Hp] bf16; b: [1, 4Hp] f32.
    Fused-matmul LSTM recurrence over time, fully inside one kernel."""
    S, Bp, Ep = x_ref.shape
    Hp = h_out_ref.shape[-1]

    xh_sc[:, Ep:] = jnp.zeros((Bp, Hp), jnp.float32)  # h0 = 0

    def step(t, c):
        xh_sc[:, :Ep] = x_ref[t].astype(jnp.float32)
        gates = (jnp.dot(xh_sc[...].astype(jnp.bfloat16), wcat_ref[...],
                         preferred_element_type=jnp.float32) + b_ref[...])
        i = jax.nn.sigmoid(gates[:, 0 * Hp:1 * Hp])
        f = jax.nn.sigmoid(gates[:, 1 * Hp:2 * Hp])
        g = jnp.tanh(gates[:, 2 * Hp:3 * Hp])
        o = jax.nn.sigmoid(gates[:, 3 * Hp:4 * Hp])
        c_new = f * c + i * g
        h_new = o * jnp.tanh(c_new)
        xh_sc[:, Ep:] = h_new
        return c_new

    c_fin = jax.lax.fori_loop(0, S, step, jnp.zeros((Bp, Hp), jnp.float32),
                              unroll=True)
    h_out_ref[...] = xh_sc[:, Ep:]
    c_out_ref[...] = c_fin


def run_encoder(x_emb_t, w_cat, b):
    S, Bp, Ep = x_emb_t.shape
    Hp = b.shape[-1] // 4
    return pl.pallas_call(
        encoder_kernel,
        out_shape=(jax.ShapeDtypeStruct((Bp, Hp), jnp.float32),
                   jax.ShapeDtypeStruct((Bp, Hp), jnp.float32)),
        scratch_shapes=[pltpu.VMEM((Bp, Ep + Hp), jnp.float32)],
    )(x_emb_t, w_cat, b)


# --------------------------- fused decoder kernel --------------------------- #
def decoder_kernel(tf_ref, tfemb_ref, h0_ref, c0_ref, wcat_ref, b_ref,
                   emb_ref, wout_ref, bout_ref, out_ref, xh_sc, c_sc):
    """Grid step s == decode time t = s+1.  xh_sc carries [x | h]; c_sc carries c."""
    s = pl.program_id(0)
    Hp = h0_ref.shape[-1]
    Ep = xh_sc.shape[1] - Hp
    Vp = wout_ref.shape[-1]

    @pl.when(s == 0)
    def _():
        xh_sc[:, Ep:] = h0_ref[...]
        c_sc[...] = c0_ref[...]

    # Input: ground-truth embedding emb(trg[:, s]) if teacher-forced (always at s == 0, where it
    # is emb(trg[:, 0])); otherwise the previous step's greedy prediction already in xh_sc[:, :Ep].
    use_tf = jnp.logical_or(s == 0, tf_ref[s] != 0)

    @pl.when(use_tf)
    def _():
        xh_sc[:, :Ep] = tfemb_ref[0].astype(jnp.float32)

    gates = (jnp.dot(xh_sc[...].astype(jnp.bfloat16), wcat_ref[...],
                     preferred_element_type=jnp.float32) + b_ref[...])
    i = jax.nn.sigmoid(gates[:, 0 * Hp:1 * Hp])
    f = jax.nn.sigmoid(gates[:, 1 * Hp:2 * Hp])
    g = jnp.tanh(gates[:, 2 * Hp:3 * Hp])
    o = jax.nn.sigmoid(gates[:, 3 * Hp:4 * Hp])
    c_new = f * c_sc[...] + i * g
    h_new = o * jnp.tanh(c_new)
    c_sc[...] = c_new
    xh_sc[:, Ep:] = h_new

    logits = (jnp.dot(h_new.astype(jnp.bfloat16), wout_ref[...],
                      preferred_element_type=jnp.float32) + bout_ref[...])
    out_ref[0] = logits

    # Greedy top1 (first occurrence of the max) -> one-hot -> next-step predicted embedding.
    idx = jax.lax.broadcasted_iota(jnp.int32, logits.shape, 1).astype(jnp.float32)
    maxv = jnp.max(logits, axis=1, keepdims=True)
    first = jnp.min(jnp.where(logits == maxv, idx, float(Vp)), axis=1, keepdims=True)
    onehot = jnp.where(idx == first, 1.0, 0.0).astype(jnp.bfloat16)
    xh_sc[:, :Ep] = jnp.dot(onehot, emb_ref[...], preferred_element_type=jnp.float32)


def run_decoder(tf_flags, tf_emb, h0, c0, w_cat, b, emb, w_out, b_out):
    T, Bp, Ep = tf_emb.shape
    Hp = h0.shape[-1]
    Vp = w_out.shape[-1]
    n_steps = T - 1

    grid_spec = pltpu.PrefetchScalarGridSpec(
        num_scalar_prefetch=1,
        grid=(n_steps,),
        in_specs=[
            pl.BlockSpec((1, Bp, Ep), lambda s, tf: (s, 0, 0)),       # emb(trg[:, s])
            pl.BlockSpec((Bp, Hp), lambda s, tf: (0, 0)),             # h0 (resident)
            pl.BlockSpec((Bp, Hp), lambda s, tf: (0, 0)),             # c0 (resident)
            pl.BlockSpec((Ep + Hp, 4 * Hp), lambda s, tf: (0, 0)),    # stacked LSTM weights
            pl.BlockSpec((1, 4 * Hp), lambda s, tf: (0, 0)),          # LSTM bias
            pl.BlockSpec((Vp, Ep), lambda s, tf: (0, 0)),             # decoder embedding table
            pl.BlockSpec((Hp, Vp), lambda s, tf: (0, 0)),             # fc_out weight
            pl.BlockSpec((1, Vp), lambda s, tf: (0, 0)),              # fc_out bias
        ],
        out_specs=pl.BlockSpec((1, Bp, Vp), lambda s, tf: (s, 0, 0)),
        scratch_shapes=[pltpu.VMEM((Bp, Ep + Hp), jnp.float32),
                        pltpu.VMEM((Bp, Hp), jnp.float32)],
    )
    return pl.pallas_call(
        decoder_kernel,
        out_shape=jax.ShapeDtypeStruct((n_steps, Bp, Vp), jnp.float32),
        grid_spec=grid_spec,
        compiler_params=pltpu.CompilerParams(dimension_semantics=("arbitrary",)),
    )(tf_flags, tf_emb, h0, c0, w_cat, b, emb, w_out, b_out)


# ------------------------------ Seq2Seq forward ----------------------------- #
def _pad_rows(x, n_rows):
    return jnp.pad(x, ((0, n_rows - x.shape[0]), (0, 0)))


@functools.partial(jax.jit, static_argnames=("trg_vocab",))
def seq2seq_forward(packed, src, trg, tf_key, trg_vocab, teacher_forcing_ratio=0.5):
    """Mirrors Seq2Seq.forward: outputs[:, 0] stays zero; steps 1..T-1 are decoded."""
    B, trg_len = trg.shape
    Bp = _round_up(B, 8)

    src_p = _pad_rows(src, Bp)
    trg_p = _pad_rows(trg, Bp)

    # Encoder: embedding gather is one vectorized XLA take; recurrence runs in the kernel.
    x_t = jnp.transpose(jnp.take(packed["enc_emb"], src_p, axis=0), (1, 0, 2))
    h0, c0 = run_encoder(x_t, packed["enc_w"], packed["enc_b"])

    # Teacher-forced candidate embeddings for every step + per-step coin flips.
    # TODO(synk): torch.rand(1) consumes the torch global RNG; here flips come from a JAX key.
    tf_emb = jnp.transpose(jnp.take(packed["dec_emb"], trg_p, axis=0), (1, 0, 2))
    tf_flags = (jax.random.uniform(tf_key, (trg_len,)) < teacher_forcing_ratio).astype(jnp.int32)

    steps = run_decoder(tf_flags, tf_emb, h0, c0,
                        packed["dec_w"], packed["dec_b"], packed["dec_emb"],
                        packed["dec_w_out"], packed["dec_b_out"])      # [T-1, Bp, Vp]

    out = jnp.transpose(steps, (1, 0, 2))[:B, :, :trg_vocab]
    return jnp.concatenate([jnp.zeros((B, 1, trg_vocab), jnp.float32), out], axis=1)


# --------------------------------- params ----------------------------------- #
def init_params(key, src_vocab, trg_vocab, emb_dim, hidden_dim):
    keys = jax.random.split(key, 10)
    s = 0.1
    return {
        "enc_emb":   s * jax.random.normal(keys[0], (src_vocab, emb_dim), jnp.float32),
        "enc_w_ih":  s * jax.random.normal(keys[1], (emb_dim, 4 * hidden_dim), jnp.float32),
        "enc_w_hh":  s * jax.random.normal(keys[2], (hidden_dim, 4 * hidden_dim), jnp.float32),
        "enc_b":     s * jax.random.normal(keys[3], (1, 4 * hidden_dim), jnp.float32),
        "dec_emb":   s * jax.random.normal(keys[4], (trg_vocab, emb_dim), jnp.float32),
        "dec_w_ih":  s * jax.random.normal(keys[5], (emb_dim, 4 * hidden_dim), jnp.float32),
        "dec_w_hh":  s * jax.random.normal(keys[6], (hidden_dim, 4 * hidden_dim), jnp.float32),
        "dec_b":     s * jax.random.normal(keys[7], (1, 4 * hidden_dim), jnp.float32),
        "dec_w_out": s * jax.random.normal(keys[8], (hidden_dim, trg_vocab), jnp.float32),
        "dec_b_out": s * jax.random.normal(keys[9], (1, trg_vocab), jnp.float32),
    }


def pack_params(p):
    """Pad to (8,128)-friendly dims, stack [W_ih; W_hh], cast matmul operands to bf16."""
    E = p["enc_emb"].shape[1]
    H = p["enc_w_hh"].shape[0]
    V = p["dec_w_out"].shape[1]
    Vt = p["dec_emb"].shape[0]
    Ep, Hp, Vp = _round_up(E, 128), _round_up(H, 128), _round_up(V, 128)

    def pack_lstm(w_ih, w_hh, b):
        def pad_gate_cols(w, rows_to):
            r = w.shape[0]
            w = w.reshape(r, 4, H)                       # gate order (i, f, g, o)
            w = jnp.pad(w, ((0, rows_to - r), (0, 0), (0, Hp - H)))
            return w.reshape(rows_to, 4 * Hp)
        w_cat = jnp.concatenate(
            [pad_gate_cols(w_ih, Ep), pad_gate_cols(w_hh, Hp)], axis=0
        ).astype(jnp.bfloat16)                                            # [Ep+Hp, 4Hp]
        b_p = jnp.pad(b.reshape(1, 4, H), ((0, 0), (0, 0), (0, Hp - H))).reshape(1, 4 * Hp)
        return w_cat, b_p.astype(jnp.float32)

    enc_w, enc_b = pack_lstm(p["enc_w_ih"], p["enc_w_hh"], p["enc_b"])
    dec_w, dec_b = pack_lstm(p["dec_w_ih"], p["dec_w_hh"], p["dec_b"])

    return {
        "enc_emb": jnp.pad(p["enc_emb"], ((0, 0), (0, Ep - E))).astype(jnp.bfloat16),
        "enc_w": enc_w, "enc_b": enc_b,
        "dec_emb": jnp.pad(p["dec_emb"], ((0, Vp - Vt), (0, Ep - E))).astype(jnp.bfloat16),
        "dec_w": dec_w, "dec_b": dec_b,
        "dec_w_out": jnp.pad(p["dec_w_out"], ((0, Hp - H), (0, Vp - V))).astype(jnp.bfloat16),
        # Padded vocab columns get a huge negative bias so in-kernel argmax never picks them.
        "dec_b_out": jnp.pad(p["dec_b_out"], ((0, 0), (0, Vp - V)),
                             constant_values=-1e30).astype(jnp.float32),
    }


if __name__ == "__main__":
    B, src_len, trg_len = 2, 8, 8
    emb_dim, hidden_dim = 32, 32
    src_vocab, trg_vocab = 96, 128

    key = jax.random.PRNGKey(0)
    k_params, k_src, k_trg, k_tf = jax.random.split(key, 4)

    params = init_params(k_params, src_vocab, trg_vocab, emb_dim, hidden_dim)
    packed = pack_params(params)

    src = jax.random.randint(k_src, (B, src_len), 0, src_vocab, dtype=jnp.int32)
    trg = jax.random.randint(k_trg, (B, trg_len), 0, trg_vocab, dtype=jnp.int32)

    outputs = seq2seq_forward(packed, src, trg, k_tf, trg_vocab=trg_vocab,
                              teacher_forcing_ratio=0.5)
    outputs = jax.block_until_ready(outputs)

    assert outputs.shape == (B, trg_len, trg_vocab)
    assert bool(jnp.all(outputs[:, 0] == 0.0))  # step 0 is never written, as in PyTorch
    print("KERNEL_OK")
</pallas_src>

<mosaic_0001>
module attributes {stable_mosaic.version = 11 : i64} {
  func.func @decoder_kernel(%arg0: i32, %arg1: memref<8xi32, #tpu.memory_space<smem>>, %arg2: memref<1x8x128xbf16, #tpu.memory_space<vmem>>, %arg3: memref<8x128xf32, #tpu.memory_space<vmem>>, %arg4: memref<8x128xf32, #tpu.memory_space<vmem>>, %arg5: memref<256x512xbf16, #tpu.memory_space<vmem>>, %arg6: memref<1x512xf32, #tpu.memory_space<vmem>>, %arg7: memref<128x128xbf16, #tpu.memory_space<vmem>>, %arg8: memref<128x128xbf16, #tpu.memory_space<vmem>>, %arg9: memref<1x128xf32, #tpu.memory_space<vmem>>, %arg10: memref<1x8x128xf32, #tpu.memory_space<vmem>>, %arg11: memref<8x256xf32, #tpu.memory_space<vmem>>, %arg12: memref<8x128xf32, #tpu.memory_space<vmem>>) attributes {dimension_semantics = [#tpu.dimension_semantics<arbitrary>], iteration_bounds = array<i64: 7>, scalar_prefetch = 1 : i64, scratch_operands = 2 : i64, tpu.core_type = #tpu.core_type<tc>, window_params = [{transform_indices = @transform_0, window_bounds = array<i64: 1, 8, 128>}, {pipeline_mode = #tpu.pipeline_mode<synchronous>, transform_indices = @transform_1, window_bounds = array<i64: 8, 128>}, {pipeline_mode = #tpu.pipeline_mode<synchronous>, transform_indices = @transform_2, window_bounds = array<i64: 8, 128>}, {pipeline_mode = #tpu.pipeline_mode<synchronous>, transform_indices = @transform_3, window_bounds = array<i64: 256, 512>}, {pipeline_mode = #tpu.pipeline_mode<synchronous>, transform_indices = @transform_4, window_bounds = array<i64: 1, 512>}, {pipeline_mode = #tpu.pipeline_mode<synchronous>, transform_indices = @transform_5, window_bounds = array<i64: 128, 128>}, {pipeline_mode = #tpu.pipeline_mode<synchronous>, transform_indices = @transform_6, window_bounds = array<i64: 128, 128>}, {pipeline_mode = #tpu.pipeline_mode<synchronous>, transform_indices = @transform_7, window_bounds = array<i64: 1, 128>}, {transform_indices = @transform_8, window_bounds = array<i64: 1, 8, 128>}]} {
    %c0_i32 = arith.constant 0 : i32
    %0 = arith.cmpi eq, %arg0, %c0_i32 : i32
    %1 = arith.extui %0 : i1 to i32
    %c0_i32_0 = arith.constant 0 : i32
    %2 = arith.cmpi ne, %1, %c0_i32_0 : i32
    scf.if %2 {
      %c0_35 = arith.constant 0 : index
      %c0_36 = arith.constant 0 : index
      %73 = vector.load %arg3[%c0_35, %c0_36] : memref<8x128xf32, #tpu.memory_space<vmem>>, vector<8x128xf32>
      %c0_37 = arith.constant 0 : index
      %c128_38 = arith.constant 128 : index
      %74 = vector.load %arg11[%c0_37, %c128_38] : memref<8x256xf32, #tpu.memory_space<vmem>>, vector<8x128xf32>
      tpu.vector_store %arg11[%c0_37, %c128_38], %73 {strides = array<i32>} : memref<8x256xf32, #tpu.memory_space<vmem>>, vector<8x128xf32>,
      %c0_39 = arith.constant 0 : index
      %c0_40 = arith.constant 0 : index
      %75 = vector.load %arg4[%c0_39, %c0_40] : memref<8x128xf32, #tpu.memory_space<vmem>>, vector<8x128xf32>
      %c0_41 = arith.constant 0 : index
      %c0_42 = arith.constant 0 : index
      %76 = vector.load %arg12[%c0_41, %c0_42] : memref<8x128xf32, #tpu.memory_space<vmem>>, vector<8x128xf32>
      tpu.vector_store %arg12[%c0_41, %c0_42], %75 {strides = array<i32>} : memref<8x128xf32, #tpu.memory_space<vmem>>, vector<8x128xf32>,
    } else {
    }
    %c0_i32_1 = arith.constant 0 : i32
    %3 = arith.cmpi eq, %arg0, %c0_i32_1 : i32
    %4 = arith.index_cast %arg0 : i32 to index
    %5 = memref.load %arg1[%4] : memref<8xi32, #tpu.memory_space<smem>>
    %c0_i32_2 = arith.constant 0 : i32
    %6 = arith.cmpi ne, %5, %c0_i32_2 : i32
    %7 = arith.ori %3, %6 : i1
    %8 = arith.extui %7 : i1 to i32
    %c0_i32_3 = arith.constant 0 : i32
    %9 = arith.cmpi ne, %8, %c0_i32_3 : i32
    scf.if %9 {
      %c0_35 = arith.constant 0 : index
      %c0_36 = arith.constant 0 : index
      %c0_37 = arith.constant 0 : index
      %73 = vector.load %arg2[%c0_35, %c0_36, %c0_37] : memref<1x8x128xbf16, #tpu.memory_space<vmem>>, vector<1x8x128xbf16>
      %74 = vector.shape_cast %73 : vector<1x8x128xbf16> to vector<8x128xbf16>
      %75 = arith.extf %74 : vector<8x128xbf16> to vector<8x128xf32>
      %c0_38 = arith.constant 0 : index
      %c0_39 = arith.constant 0 : index
      %76 = vector.load %arg11[%c0_38, %c0_39] : memref<8x256xf32, #tpu.memory_space<vmem>>, vector<8x128xf32>
      tpu.vector_store %arg11[%c0_38, %c0_39], %75 {strides = array<i32>} : memref<8x256xf32, #tpu.memory_space<vmem>>, vector<8x128xf32>,
    } else {
    }
    %c0 = arith.constant 0 : index
    %c0_4 = arith.constant 0 : index
    %10 = vector.load %arg11[%c0, %c0_4] : memref<8x256xf32, #tpu.memory_space<vmem>>, vector<8x256xf32>
    %11 = arith.truncf %10 : vector<8x256xf32> to vector<8x256xbf16>
    %c0_5 = arith.constant 0 : index
    %c0_6 = arith.constant 0 : index
    %12 = vector.load %arg5[%c0_5, %c0_6] : memref<256x512xbf16, #tpu.memory_space<vmem>>, vector<256x512xbf16>
    %cst = arith.constant dense<0.000000e+00> : vector<8x512xf32>
    %13 = tpu.matmul %11, %12, %cst {dimension_numbers = #tpu.dot_dimension_numbers<[1], [0], [0], [1], [0, 0, 1, 1], [], []>} : vector<8x256xbf16>, vector<256x512xbf16>, vector<8x512xf32> -> vector<8x512xf32>
    %c0_7 = arith.constant 0 : index
    %c0_8 = arith.constant 0 : index
    %14 = vector.load %arg6[%c0_7, %c0_8] : memref<1x512xf32, #tpu.memory_space<vmem>>, vector<1x512xf32>
    %15 = vector.broadcast %14 : vector<1x512xf32> to vector<8x512xf32>
    %16 = arith.addf %13, %15 : vector<8x512xf32>
    %17 = vector.extract_strided_slice %16 {offsets = [0, 0], sizes = [8, 128], strides = [1, 1]} : vector<8x512xf32> to vector<8x128xf32>
    %18 = arith.negf %17 : vector<8x128xf32>
    %19 = math.exp %18 : vector<8x128xf32>
    %cst_9 = arith.constant 1.000000e+00 : f32
    %20 = vector.broadcast %cst_9 : f32 to vector<8x128xf32>
    %21 = arith.addf %20, %19 : vector<8x128xf32>
    %22 = arith.divf %20, %21 : vector<8x128xf32>
    %23 = vector.extract_strided_slice %16 {offsets = [0, 128], sizes = [8, 128], strides = [1, 1]} : vector<8x512xf32> to vector<8x128xf32>
    %24 = arith.negf %23 : vector<8x128xf32>
    %25 = math.exp %24 : vector<8x128xf32>
    %cst_10 = arith.constant 1.000000e+00 : f32
    %26 = vector.broadcast %cst_10 : f32 to vector<8x128xf32>
    %27 = arith.addf %26, %25 : vector<8x128xf32>
    %28 = arith.divf %26, %27 : vector<8x128xf32>
    %29 = vector.extract_strided_slice %16 {offsets = [0, 256], sizes = [8, 128], strides = [1, 1]} : vector<8x512xf32> to vector<8x128xf32>
    %30 = math.tanh %29 : vector<8x128xf32>
    %31 = vector.extract_strided_slice %16 {offsets = [0, 384], sizes = [8, 128], strides = [1, 1]} : vector<8x512xf32> to vector<8x128xf32>
    %32 = arith.negf %31 : vector<8x128xf32>
    %33 = math.exp %32 : vector<8x128xf32>
    %cst_11 = arith.constant 1.000000e+00 : f32
    %34 = vector.broadcast %cst_11 : f32 to vector<8x128xf32>
    %35 = arith.addf %34, %33 : vector<8x128xf32>
    %36 = arith.divf %34, %35 : vector<8x128xf32>
    %c0_12 = arith.constant 0 : index
    %c0_13 = arith.constant 0 : index
    %37 = vector.load %arg12[%c0_12, %c0_13] : memref<8x128xf32, #tpu.memory_space<vmem>>, vector<8x128xf32>
    %38 = arith.mulf %28, %37 : vector<8x128xf32>
    %39 = arith.mulf %22, %30 : vector<8x128xf32>
    %40 = arith.addf %38, %39 : vector<8x128xf32>
    %41 = math.tanh %40 : vector<8x128xf32>
    %42 = arith.mulf %36, %41 : vector<8x128xf32>
    %c0_14 = arith.constant 0 : index
    %c0_15 = arith.constant 0 : index
    %43 = vector.load %arg12[%c0_14, %c0_15] : memref<8x128xf32, #tpu.memory_space<vmem>>, vector<8x128xf32>
    tpu.vector_store %arg12[%c0_14, %c0_15], %40 {strides = array<i32>} : memref<8x128xf32, #tpu.memory_space<vmem>>, vector<8x128xf32>,
    %c0_16 = arith.constant 0 : index
    %c128 = arith.constant 128 : index
    %44 = vector.load %arg11[%c0_16, %c128] : memref<8x256xf32, #tpu.memory_space<vmem>>, vector<8x128xf32>
    tpu.vector_store %arg11[%c0_16, %c128], %42 {strides = array<i32>} : memref<8x256xf32, #tpu.memory_space<vmem>>, vector<8x128xf32>,
    %45 = arith.truncf %42 : vector<8x128xf32> to vector<8x128xbf16>
    %c0_17 = arith.constant 0 : index
    %c0_18 = arith.constant 0 : index
    %46 = vector.load %arg8[%c0_17, %c0_18] : memref<128x128xbf16, #tpu.memory_space<vmem>>, vector<128x128xbf16>
    %cst_19 = arith.constant dense<0.000000e+00> : vector<8x128xf32>
    %47 = tpu.matmul %45, %46, %cst_19 {dimension_numbers = #tpu.dot_dimension_numbers<[1], [0], [0], [1], [0, 0, 1, 1], [], []>} : vector<8x128xbf16>, vector<128x128xbf16>, vector<8x128xf32> -> vector<8x128xf32>
    %c0_20 = arith.constant 0 : index
    %c0_21 = arith.constant 0 : index
    %48 = vector.load %arg9[%c0_20, %c0_21] : memref<1x128xf32, #tpu.memory_space<vmem>>, vector<1x128xf32>
    %49 = vector.broadcast %48 : vector<1x128xf32> to vector<8x128xf32>
    %50 = arith.addf %47, %49 : vector<8x128xf32>
    %c0_22 = arith.constant 0 : index
    %c0_23 = arith.constant 0 : index
    %c0_24 = arith.constant 0 : index
    %51 = vector.load %arg10[%c0_22, %c0_23, %c0_24] : memref<1x8x128xf32, #tpu.memory_space<vmem>>, vector<1x8x128xf32>
    %52 = vector.shape_cast %51 : vector<1x8x128xf32> to vector<8x128xf32>
    %53 = vector.shape_cast %50 : vector<8x128xf32> to vector<1x8x128xf32>
    tpu.vector_store %arg10[%c0_22, %c0_23, %c0_24], %53 {strides = array<i32>} : memref<1x8x128xf32, #tpu.memory_space<vmem>>, vector<1x8x128xf32>,
    %54 = tpu.iota {dimensions = array<i32: 1>} : vector<8x128xi32>
    %55 = arith.sitofp %54 : vector<8x128xi32> to vector<8x128xf32>
    %cst_25 = arith.constant dense<0xFF800000> : vector<8xf32>
    %56 = vector.multi_reduction <maximumf>, %50, %cst_25 [1] : vector<8x128xf32> to vector<8xf32>
    %57 = vector.shape_cast %56 : vector<8xf32> to vector<8x1xf32>
    %58 = vector.broadcast %57 : vector<8x1xf32> to vector<8x128xf32>
    %59 = arith.cmpf oeq, %50, %58 : vector<8x128xf32>
    %cst_26 = arith.constant 1.280000e+02 : f32
    %60 = vector.broadcast %cst_26 : f32 to vector<8x128xf32>
    %61 = arith.select %59, %55, %60 : vector<8x128xi1>, vector<8x128xf32>
    %cst_27 = arith.constant dense<0x7F800000> : vector<8xf32>
    %62 = vector.multi_reduction <minimumf>, %61, %cst_27 [1] : vector<8x128xf32> to vector<8xf32>
    %63 = vector.shape_cast %62 : vector<8xf32> to vector<8x1xf32>
    %64 = vector.broadcast %63 : vector<8x1xf32> to vector<8x128xf32>
    %65 = arith.cmpf oeq, %55, %64 : vector<8x128xf32>
    %cst_28 = arith.constant 1.000000e+00 : f32
    %cst_29 = arith.constant 0.000000e+00 : f32
    %66 = vector.broadcast %cst_28 : f32 to vector<8x128xf32>
    %67 = vector.broadcast %cst_29 : f32 to vector<8x128xf32>
    %68 = arith.select %65, %66, %67 : vector<8x128xi1>, vector<8x128xf32>
    %69 = arith.truncf %68 : vector<8x128xf32> to vector<8x128xbf16>
    %c0_30 = arith.constant 0 : index
    %c0_31 = arith.constant 0 : index
    %70 = vector.load %arg7[%c0_30, %c0_31] : memref<128x128xbf16, #tpu.memory_space<vmem>>, vector<128x128xbf16>
    %cst_32 = arith.constant dense<0.000000e+00> : vector<8x128xf32>
    %71 = tpu.matmul %69, %70, %cst_32 {dimension_numbers = #tpu.dot_dimension_numbers<[1], [0], [0], [1], [0, 0, 1, 1], [], []>} : vector<8x128xbf16>, vector<128x128xbf16>, vector<8x128xf32> -> vector<8x128xf32>
    %c0_33 = arith.constant 0 : index
    %c0_34 = arith.constant 0 : index
    %72 = vector.load %arg11[%c0_33, %c0_34] : memref<8x256xf32, #tpu.memory_space<vmem>>, vector<8x128xf32>
    tpu.vector_store %arg11[%c0_33, %c0_34], %71 {strides = array<i32>} : memref<8x256xf32, #tpu.memory_space<vmem>>, vector<8x128xf32>,
    return
  }
  func.func @transform_0(%arg0: i32, %arg1: memref<8xi32, #tpu.memory_space<smem>>) -> (i32, i32, i32) {
    %c0_i32 = arith.constant 0 : i32
    %c0_i32_0 = arith.constant 0 : i32
    %c0_i32_1 = arith.constant 0 : i32
    return %arg0, %c0_i32, %c0_i32_0 : i32, i32, i32
  }
  func.func @transform_1(%arg0: i32, %arg1: memref<8xi32, #tpu.memory_space<smem>>) -> (i32, i32) {
    %c0_i32 = arith.constant 0 : i32
    %c0_i32_0 = arith.constant 0 : i32
    %c0_i32_1 = arith.constant 0 : i32
    return %c0_i32, %c0_i32_0 : i32, i32
  }
  func.func @transform_2(%arg0: i32, %arg1: memref<8xi32, #tpu.memory_space<smem>>) -> (i32, i32) {
    %c0_i32 = arith.constant 0 : i32
    %c0_i32_0 = arith.constant 0 : i32
    %c0_i32_1 = arith.constant 0 : i32
    return %c0_i32, %c0_i32_0 : i32, i32
  }
  func.func @transform_3(%arg0: i32, %arg1: memref<8xi32, #tpu.memory_space<smem>>) -> (i32, i32) {
    %c0_i32 = arith.constant 0 : i32
    %c0_i32_0 = arith.constant 0 : i32
    %c0_i32_1 = arith.constant 0 : i32
    return %c0_i32, %c0_i32_0 : i32, i32
  }
  func.func @transform_4(%arg0: i32, %arg1: memref<8xi32, #tpu.memory_space<smem>>) -> (i32, i32) {
    %c0_i32 = arith.constant 0 : i32
    %c0_i32_0 = arith.constant 0 : i32
    %c0_i32_1 = arith.constant 0 : i32
    return %c0_i32, %c0_i32_0 : i32, i32
  }
  func.func @transform_5(%arg0: i32, %arg1: memref<8xi32, #tpu.memory_space<smem>>) -> (i32, i32) {
    %c0_i32 = arith.constant 0 : i32
    %c0_i32_0 = arith.constant 0 : i32
    %c0_i32_1 = arith.constant 0 : i32
    return %c0_i32, %c0_i32_0 : i32, i32
  }
  func.func @transform_6(%arg0: i32, %arg1: memref<8xi32, #tpu.memory_space<smem>>) -> (i32, i32) {
    %c0_i32 = arith.constant 0 : i32
    %c0_i32_0 = arith.constant 0 : i32
    %c0_i32_1 = arith.constant 0 : i32
    return %c0_i32, %c0_i32_0 : i32, i32
  }
  func.func @transform_7(%arg0: i32, %arg1: memref<8xi32, #tpu.memory_space<smem>>) -> (i32, i32) {
    %c0_i32 = arith.constant 0 : i32
    %c0_i32_0 = arith.constant 0 : i32
    %c0_i32_1 = arith.constant 0 : i32
    return %c0_i32, %c0_i32_0 : i32, i32
  }
  func.func @transform_8(%arg0: i32, %arg1: memref<8xi32, #tpu.memory_space<smem>>) -> (i32, i32, i32) {
    %c0_i32 = arith.constant 0 : i32
    %c0_i32_0 = arith.constant 0 : i32
    %c0_i32_1 = arith.constant 0 : i32
    return %arg0, %c0_i32, %c0_i32_0 : i32, i32, i32
  }
}

module attributes {stable_mosaic.version = 11 : i64} {
  func.func @encoder_kernel(%arg0: memref<8x8x128xbf16, #tpu.memory_space<vmem>>, %arg1: memref<256x512xbf16, #tpu.memory_space<vmem>>, %arg2: memref<1x512xf32, #tpu.memory_space<vmem>>, %arg3: memref<8x128xf32, #tpu.memory_space<vmem>>, %arg4: memref<8x128xf32, #tpu.memory_space<vmem>>, %arg5: memref<8x256xf32, #tpu.memory_space<vmem>>) attributes {dimension_semantics = [], scalar_prefetch = 0 : i64, scratch_operands = 1 : i64, tpu.core_type = #tpu.core_type<tc>} {
    %cst = arith.constant 0.000000e+00 : f32
    %0 = vector.broadcast %cst : f32 to vector<8x128xf32>
    %c0 = arith.constant 0 : index
    %c128 = arith.constant 128 : index
    %1 = vector.load %arg5[%c0, %c128] : memref<8x256xf32, #tpu.memory_space<vmem>>, vector<8x128xf32>
    tpu.vector_store %arg5[%c0, %c128], %0 {strides = array<i32>} : memref<8x256xf32, #tpu.memory_space<vmem>>, vector<8x128xf32>,
    %cst_0 = arith.constant 0.000000e+00 : f32
    %2 = vector.broadcast %cst_0 : f32 to vector<8x128xf32>
    %c0_i32 = arith.constant 0 : i32
    %3 = arith.index_cast %c0_i32 : i32 to index
    %c0_1 = arith.constant 0 : index
    %c0_2 = arith.constant 0 : index
    %4 = vector.load %arg0[%3, %c0_1, %c0_2] : memref<8x8x128xbf16, #tpu.memory_space<vmem>>, vector<1x8x128xbf16>
    %5 = vector.shape_cast %4 : vector<1x8x128xbf16> to vector<8x128xbf16>
    %6 = arith.extf %5 : vector<8x128xbf16> to vector<8x128xf32>
    %c0_3 = arith.constant 0 : index
    %c0_4 = arith.constant 0 : index
    %7 = vector.load %arg5[%c0_3, %c0_4] : memref<8x256xf32, #tpu.memory_space<vmem>>, vector<8x128xf32>
    tpu.vector_store %arg5[%c0_3, %c0_4], %6 {strides = array<i32>} : memref<8x256xf32, #tpu.memory_space<vmem>>, vector<8x128xf32>,
    %c0_5 = arith.constant 0 : index
    %c0_6 = arith.constant 0 : index
    %8 = vector.load %arg5[%c0_5, %c0_6] : memref<8x256xf32, #tpu.memory_space<vmem>>, vector<8x256xf32>
    %9 = arith.truncf %8 : vector<8x256xf32> to vector<8x256xbf16>
    %c0_7 = arith.constant 0 : index
    %c0_8 = arith.constant 0 : index
    %10 = vector.load %arg1[%c0_7, %c0_8] : memref<256x512xbf16, #tpu.memory_space<vmem>>, vector<256x512xbf16>
    %cst_9 = arith.constant dense<0.000000e+00> : vector<8x512xf32>
    %11 = tpu.matmul %9, %10, %cst_9 {dimension_numbers = #tpu.dot_dimension_numbers<[1], [0], [0], [1], [0, 0, 1, 1], [], []>} : vector<8x256xbf16>, vector<256x512xbf16>, vector<8x512xf32> -> vector<8x512xf32>
    %c0_10 = arith.constant 0 : index
    %c0_11 = arith.constant 0 : index
    %12 = vector.load %arg2[%c0_10, %c0_11] : memref<1x512xf32, #tpu.memory_space<vmem>>, vector<1x512xf32>
    %13 = vector.broadcast %12 : vector<1x512xf32> to vector<8x512xf32>
    %14 = arith.addf %11, %13 : vector<8x512xf32>
    %15 = vector.extract_strided_slice %14 {offsets = [0, 0], sizes = [8, 128], strides = [1, 1]} : vector<8x512xf32> to vector<8x128xf32>
    %16 = arith.negf %15 : vector<8x128xf32>
    %17 = math.exp %16 : vector<8x128xf32>
    %cst_12 = arith.constant 1.000000e+00 : f32
    %18 = vector.broadcast %cst_12 : f32 to vector<8x128xf32>
    %19 = arith.addf %18, %17 : vector<8x128xf32>
    %20 = arith.divf %18, %19 : vector<8x128xf32>
    %21 = vector.extract_strided_slice %14 {offsets = [0, 128], sizes = [8, 128], strides = [1, 1]} : vector<8x512xf32> to vector<8x128xf32>
    %22 = arith.negf %21 : vector<8x128xf32>
    %23 = math.exp %22 : vector<8x128xf32>
    %cst_13 = arith.constant 1.000000e+00 : f32
    %24 = vector.broadcast %cst_13 : f32 to vector<8x128xf32>
    %25 = arith.addf %24, %23 : vector<8x128xf32>
    %26 = arith.divf %24, %25 : vector<8x128xf32>
    %27 = vector.extract_strided_slice %14 {offsets = [0, 256], sizes = [8, 128], strides = [1, 1]} : vector<8x512xf32> to vector<8x128xf32>
    %28 = math.tanh %27 : vector<8x128xf32>
    %29 = vector.extract_strided_slice %14 {offsets = [0, 384], sizes = [8, 128], strides = [1, 1]} : vector<8x512xf32> to vector<8x128xf32>
    %30 = arith.negf %29 : vector<8x128xf32>
    %31 = math.exp %30 : vector<8x128xf32>
    %cst_14 = arith.constant 1.000000e+00 : f32
    %32 = vector.broadcast %cst_14 : f32 to vector<8x128xf32>
    %33 = arith.addf %32, %31 : vector<8x128xf32>
    %34 = arith.divf %32, %33 : vector<8x128xf32>
    %35 = arith.mulf %26, %2 : vector<8x128xf32>
    %36 = arith.mulf %20, %28 : vector<8x128xf32>
    %37 = arith.addf %35, %36 : vector<8x128xf32>
    %38 = math.tanh %37 : vector<8x128xf32>
    %39 = arith.mulf %34, %38 : vector<8x128xf32>
    %c0_15 = arith.constant 0 : index
    %c128_16 = arith.constant 128 : index
    %40 = vector.load %arg5[%c0_15, %c128_16] : memref<8x256xf32, #tpu.memory_space<vmem>>, vector<8x128xf32>
    tpu.vector_store %arg5[%c0_15, %c128_16], %39 {strides = array<i32>} : memref<8x256xf32, #tpu.memory_space<vmem>>, vector<8x128xf32>,
    %c1_i32 = arith.constant 1 : i32
    %41 = arith.index_cast %c1_i32 : i32 to index
    %c0_17 = arith.constant 0 : index
    %c0_18 = arith.constant 0 : index
    %42 = vector.load %arg0[%41, %c0_17, %c0_18] : memref<8x8x128xbf16, #tpu.memory_space<vmem>>, vector<1x8x128xbf16>
    %43 = vector.shape_cast %42 : vector<1x8x128xbf16> to vector<8x128xbf16>
    %44 = arith.extf %43 : vector<8x128xbf16> to vector<8x128xf32>
    %c0_19 = arith.constant 0 : index
    %c0_20 = arith.constant 0 : index
    %45 = vector.load %arg5[%c0_19, %c0_20] : memref<8x256xf32, #tpu.memory_space<vmem>>, vector<8x128xf32>
    tpu.vector_store %arg5[%c0_19, %c0_20], %44 {strides = array<i32>} : memref<8x256xf32, #tpu.memory_space<vmem>>, vector<8x128xf32>,
    %c0_21 = arith.constant 0 : index
    %c0_22 = arith.constant 0 : index
    %46 = vector.load %arg5[%c0_21, %c0_22] : memref<8x256xf32, #tpu.memory_space<vmem>>, vector<8x256xf32>
    %47 = arith.truncf %46 : vector<8x256xf32> to vector<8x256xbf16>
    %c0_23 = arith.constant 0 : index
    %c0_24 = arith.constant 0 : index
    %48 = vector.load %arg1[%c0_23, %c0_24] : memref<256x512xbf16, #tpu.memory_space<vmem>>, vector<256x512xbf16>
    %cst_25 = arith.constant dense<0.000000e+00> : vector<8x512xf32>
    %49 = tpu.matmul %47, %48, %cst_25 {dimension_numbers = #tpu.dot_dimension_numbers<[1], [0], [0], [1], [0, 0, 1, 1], [], []>} : vector<8x256xbf16>, vector<256x512xbf16>, vector<8x512xf32> -> vector<8x512xf32>
    %c0_26 = arith.constant 0 : index
    %c0_27 = arith.constant 0 : index
    %50 = vector.load %arg2[%c0_26, %c0_27] : memref<1x512xf32, #tpu.memory_space<vmem>>, vector<1x512xf32>
    %51 = vector.broadcast %50 : vector<1x512xf32> to vector<8x512xf32>
    %52 = arith.addf %49, %51 : vector<8x512xf32>
    %53 = vector.extract_strided_slice %52 {offsets = [0, 0], sizes = [8, 128], strides = [1, 1]} : vector<8x512xf32> to vector<8x128xf32>
    %54 = arith.negf %53 : vector<8x128xf32>
    %55 = math.exp %54 : vector<8x128xf32>
    %cst_28 = arith.constant 1.000000e+00 : f32
    %56 = vector.broadcast %cst_28 : f32 to vector<8x128xf32>
    %57 = arith.addf %56, %55 : vector<8x128xf32>
    %58 = arith.divf %56, %57 : vector<8x128xf32>
    %59 = vector.extract_strided_slice %52 {offsets = [0, 128], sizes = [8, 128], strides = [1, 1]} : vector<8x512xf32> to vector<8x128xf32>
    %60 = arith.negf %59 : vector<8x128xf32>
    %61 = math.exp %60 : vector<8x128xf32>
    %cst_29 = arith.constant 1.000000e+00 : f32
    %62 = vector.broadcast %cst_29 : f32 to vector<8x128xf32>
    %63 = arith.addf %62, %61 : vector<8x128xf32>
    %64 = arith.divf %62, %63 : vector<8x128xf32>
    %65 = vector.extract_strided_slice %52 {offsets = [0, 256], sizes = [8, 128], strides = [1, 1]} : vector<8x512xf32> to vector<8x128xf32>
    %66 = math.tanh %65 : vector<8x128xf32>
    %67 = vector.extract_strided_slice %52 {offsets = [0, 384], sizes = [8, 128], strides = [1, 1]} : vector<8x512xf32> to vector<8x128xf32>
    %68 = arith.negf %67 : vector<8x128xf32>
    %69 = math.exp %68 : vector<8x128xf32>
    %cst_30 = arith.constant 1.000000e+00 : f32
    %70 = vector.broadcast %cst_30 : f32 to vector<8x128xf32>
    %71 = arith.addf %70, %69 : vector<8x128xf32>
    %72 = arith.divf %70, %71 : vector<8x128xf32>
    %73 = arith.mulf %64, %37 : vector<8x128xf32>
    %74 = arith.mulf %58, %66 : vector<8x128xf32>
    %75 = arith.addf %73, %74 : vector<8x128xf32>
    %76 = math.tanh %75 : vector<8x128xf32>
    %77 = arith.mulf %72, %76 : vector<8x128xf32>
    %c0_31 = arith.constant 0 : index
    %c128_32 = arith.constant 128 : index
    %78 = vector.load %arg5[%c0_31, %c128_32] : memref<8x256xf32, #tpu.memory_space<vmem>>, vector<8x128xf32>
    tpu.vector_store %arg5[%c0_31, %c128_32], %77 {strides = array<i32>} : memref<8x256xf32, #tpu.memory_space<vmem>>, vector<8x128xf32>,
    %c2_i32 = arith.constant 2 : i32
    %79 = arith.index_cast %c2_i32 : i32 to index
    %c0_33 = arith.constant 0 : index
    %c0_34 = arith.constant 0 : index
    %80 = vector.load %arg0[%79, %c0_33, %c0_34] : memref<8x8x128xbf16, #tpu.memory_space<vmem>>, vector<1x8x128xbf16>
    %81 = vector.shape_cast %80 : vector<1x8x128xbf16> to vector<8x128xbf16>
    %82 = arith.extf %81 : vector<8x128xbf16> to vector<8x128xf32>
    %c0_35 = arith.constant 0 : index
    %c0_36 = arith.constant 0 : index
    %83 = vector.load %arg5[%c0_35, %c0_36] : memref<8x256xf32, #tpu.memory_space<vmem>>, vector<8x128xf32>
    tpu.vector_store %arg5[%c0_35, %c0_36], %82 {strides = array<i32>} : memref<8x256xf32, #tpu.memory_space<vmem>>, vector<8x128xf32>,
    %c0_37 = arith.constant 0 : index
    %c0_38 = arith.constant 0 : index
    %84 = vector.load %arg5[%c0_37, %c0_38] : memref<8x256xf32, #tpu.memory_space<vmem>>, vector<8x256xf32>
    %85 = arith.truncf %84 : vector<8x256xf32> to vector<8x256xbf16>
    %c0_39 = arith.constant 0 : index
    %c0_40 = arith.constant 0 : index
    %86 = vector.load %arg1[%c0_39, %c0_40] : memref<256x512xbf16, #tpu.memory_space<vmem>>, vector<256x512xbf16>
    %cst_41 = arith.constant dense<0.000000e+00> : vector<8x512xf32>
    %87 = tpu.matmul %85, %86, %cst_41 {dimension_numbers = #tpu.dot_dimension_numbers<[1], [0], [0], [1], [0, 0, 1, 1], [], []>} : vector<8x256xbf16>, vector<256x512xbf16>, vector<8x512xf32> -> vector<8x512xf32>
    %c0_42 = arith.constant 0 : index
    %c0_43 = arith.constant 0 : index
    %88 = vector.load %arg2[%c0_42, %c0_43] : memref<1x512xf32, #tpu.memory_space<vmem>>, vector<1x512xf32>
    %89 = vector.broadcast %88 : vector<1x512xf32> to vector<8x512xf32>
    %90 = arith.addf %87, %89 : vector<8x512xf32>
    %91 = vector.extract_strided_slice %90 {offsets = [0, 0], sizes = [8, 128], strides = [1, 1]} : vector<8x512xf32> to vector<8x128xf32>
    %92 = arith.negf %91 : vector<8x128xf32>
    %93 = math.exp %92 : vector<8x128xf32>
    %cst_44 = arith.constant 1.000000e+00 : f32
    %94 = vector.broadcast %cst_44 : f32 to vector<8x128xf32>
    %95 = arith.addf %94, %93 : vector<8x128xf32>
    %96 = arith.divf %94, %95 : vector<8x128xf32>
    %97 = vector.extract_strided_slice %90 {offsets = [0, 128], sizes = [8, 128], strides = [1, 1]} : vector<8x512xf32> to vector<8x128xf32>
    %98 = arith.negf %97 : vector<8x128xf32>
    %99 = math.exp %98 : vector<8x128xf32>
    %cst_45 = arith.constant 1.000000e+00 : f32
    %100 = vector.broadcast %cst_45 : f32 to vector<8x128xf32>
    %101 = arith.addf %100, %99 : vector<8x128xf32>
    %102 = arith.divf %100, %101 : vector<8x128xf32>
    %103 = vector.extract_strided_slice %90 {offsets = [0, 256], sizes = [8, 128], strides = [1, 1]} : vector<8x512xf32> to vector<8x128xf32>
    %104 = math.tanh %103 : vector<8x128xf32>
    %105 = vector.extract_strided_slice %90 {offsets = [0, 384], sizes = [8, 128], strides = [1, 1]} : vector<8x512xf32> to vector<8x128xf32>
    %106 = arith.negf %105 : vector<8x128xf32>
    %107 = math.exp %106 : vector<8x128xf32>
    %cst_46 = arith.constant 1.000000e+00 : f32
    %108 = vector.broadcast %cst_46 : f32 to vector<8x128xf32>
    %109 = arith.addf %108, %107 : vector<8x128xf32>
    %110 = arith.divf %108, %109 : vector<8x128xf32>
    %111 = arith.mulf %102, %75 : vector<8x128xf32>
    %112 = arith.mulf %96, %104 : vector<8x128xf32>
    %113 = arith.addf %111, %112 : vector<8x128xf32>
    %114 = math.tanh %113 : vector<8x128xf32>
    %115 = arith.mulf %110, %114 : vector<8x128xf32>
    %c0_47 = arith.constant 0 : index
    %c128_48 = arith.constant 128 : index
    %116 = vector.load %arg5[%c0_47, %c128_48] : memref<8x256xf32, #tpu.memory_space<vmem>>, vector<8x128xf32>
    tpu.vector_store %arg5[%c0_47, %c128_48], %115 {strides = array<i32>} : memref<8x256xf32, #tpu.memory_space<vmem>>, vector<8x128xf32>,
    %c3_i32 = arith.constant 3 : i32
    %117 = arith.index_cast %c3_i32 : i32 to index
    %c0_49 = arith.constant 0 : index
    %c0_50 = arith.constant 0 : index
    %118 = vector.load %arg0[%117, %c0_49, %c0_50] : memref<8x8x128xbf16, #tpu.memory_space<vmem>>, vector<1x8x128xbf16>
    %119 = vector.shape_cast %118 : vector<1x8x128xbf16> to vector<8x128xbf16>
    %120 = arith.extf %119 : vector<8x128xbf16> to vector<8x128xf32>
    %c0_51 = arith.constant 0 : index
    %c0_52 = arith.constant 0 : index
    %121 = vector.load %arg5[%c0_51, %c0_52] : memref<8x256xf32, #tpu.memory_space<vmem>>, vector<8x128xf32>
    tpu.vector_store %arg5[%c0_51, %c0_52], %120 {strides = array<i32>} : memref<8x256xf32, #tpu.memory_space<vmem>>, vector<8x128xf32>,
    %c0_53 = arith.constant 0 : index
    %c0_54 = arith.constant 0 : index
    %122 = vector.load %arg5[%c0_53, %c0_54] : memref<8x256xf32, #tpu.memory_space<vmem>>, vector<8x256xf32>
    %123 = arith.truncf %122 : vector<8x256xf32> to vector<8x256xbf16>
    %c0_55 = arith.constant 0 : index
    %c0_56 = arith.constant 0 : index
    %124 = vector.load %arg1[%c0_55, %c0_56] : memref<256x512xbf16, #tpu.memory_space<vmem>>, vector<256x512xbf16>
    %cst_57 = arith.constant dense<0.000000e+00> : vector<8x512xf32>
    %125 = tpu.matmul %123, %124, %cst_57 {dimension_numbers = #tpu.dot_dimension_numbers<[1], [0], [0], [1], [0, 0, 1, 1], [], []>} : vector<8x256xbf16>, vector<256x512xbf16>, vector<8x512xf32> -> vector<8x512xf32>
    %c0_58 = arith.constant 0 : index
    %c0_59 = arith.constant 0 : index
    %126 = vector.load %arg2[%c0_58, %c0_59] : memref<1x512xf32, #tpu.memory_space<vmem>>, vector<1x512xf32>
    %127 = vector.broadcast %126 : vector<1x512xf32> to vector<8x512xf32>
    %128 = arith.addf %125, %127 : vector<8x512xf32>
    %129 = vector.extract_strided_slice %128 {offsets = [0, 0], sizes = [8, 128], strides = [1, 1]} : vector<8x512xf32> to vector<8x128xf32>
    %130 = arith.negf %129 : vector<8x128xf32>
    %131 = math.exp %130 : vector<8x128xf32>
    %cst_60 = arith.constant 1.000000e+00 : f32
    %132 = vector.broadcast %cst_60 : f32 to vector<8x128xf32>
    %133 = arith.addf %132, %131 : vector<8x128xf32>
    %134 = arith.divf %132, %133 : vector<8x128xf32>
    %135 = vector.extract_strided_slice %128 {offsets = [0, 128], sizes = [8, 128], strides = [1, 1]} : vector<8x512xf32> to vector<8x128xf32>
    %136 = arith.negf %135 : vector<8x128xf32>
    %137 = math.exp %136 : vector<8x128xf32>
    %cst_61 = arith.constant 1.000000e+00 : f32
    %138 = vector.broadcast %cst_61 : f32 to vector<8x128xf32>
    %139 = arith.addf %138, %137 : vector<8x128xf32>
    %140 = arith.divf %138, %139 : vector<8x128xf32>
    %141 = vector.extract_strided_slice %128 {offsets = [0, 256], sizes = [8, 128], strides = [1, 1]} : vector<8x512xf32> to vector<8x128xf32>
    %142 = math.tanh %141 : vector<8x128xf32>
    %143 = vector.extract_strided_slice %128 {offsets = [0, 384], sizes = [8, 128], strides = [1, 1]} : vector<8x512xf32> to vector<8x128xf32>
    %144 = arith.negf %143 : vector<8x128xf32>
    %145 = math.exp %144 : vector<8x128xf32>
    %cst_62 = arith.constant 1.000000e+00 : f32
    %146 = vector.broadcast %cst_62 : f32 to vector<8x128xf32>
    %147 = arith.addf %146, %145 : vector<8x128xf32>
    %148 = arith.divf %146, %147 : vector<8x128xf32>
    %149 = arith.mulf %140, %113 : vector<8x128xf32>
    %150 = arith.mulf %134, %142 : vector<8x128xf32>
    %151 = arith.addf %149, %150 : vector<8x128xf32>
    %152 = math.tanh %151 : vector<8x128xf32>
    %153 = arith.mulf %148, %152 : vector<8x128xf32>
    %c0_63 = arith.constant 0 : index
    %c128_64 = arith.constant 128 : index
    %154 = vector.load %arg5[%c0_63, %c128_64] : memref<8x256xf32, #tpu.memory_space<vmem>>, vector<8x128xf32>
    tpu.vector_store %arg5[%c0_63, %c128_64], %153 {strides = array<i32>} : memref<8x256xf32, #tpu.memory_space<vmem>>, vector<8x128xf32>,
    %c4_i32 = arith.constant 4 : i32
    %155 = arith.index_cast %c4_i32 : i32 to index
    %c0_65 = arith.constant 0 : index
    %c0_66 = arith.constant 0 : index
    %156 = vector.load %arg0[%155, %c0_65, %c0_66] : memref<8x8x128xbf16, #tpu.memory_space<vmem>>, vector<1x8x128xbf16>
    %157 = vector.shape_cast %156 : vector<1x8x128xbf16> to vector<8x128xbf16>
    %158 = arith.extf %157 : vector<8x128xbf16> to vector<8x128xf32>
    %c0_67 = arith.constant 0 : index
    %c0_68 = arith.constant 0 : index
    %159 = vector.load %arg5[%c0_67, %c0_68] : memref<8x256xf32, #tpu.memory_space<vmem>>, vector<8x128xf32>
    tpu.vector_store %arg5[%c0_67, %c0_68], %158 {strides = array<i32>} : memref<8x256xf32, #tpu.memory_space<vmem>>, vector<8x128xf32>,
    %c0_69 = arith.constant 0 : index
    %c0_70 = arith.constant 0 : index
    %160 = vector.load %arg5[%c0_69, %c0_70] : memref<8x256xf32, #tpu.memory_space<vmem>>, vector<8x256xf32>
    %161 = arith.truncf %160 : vector<8x256xf32> to vector<8x256xbf16>
    %c0_71 = arith.constant 0 : index
    %c0_72 = arith.constant 0 : index
    %162 = vector.load %arg1[%c0_71, %c0_72] : memref<256x512xbf16, #tpu.memory_space<vmem>>, vector<256x512xbf16>
    %cst_73 = arith.constant dense<0.000000e+00> : vector<8x512xf32>
    %163 = tpu.matmul %161, %162, %cst_73 {dimension_numbers = #tpu.dot_dimension_numbers<[1], [0], [0], [1], [0, 0, 1, 1], [], []>} : vector<8x256xbf16>, vector<256x512xbf16>, vector<8x512xf32> -> vector<8x512xf32>
    %c0_74 = arith.constant 0 : index
    %c0_75 = arith.constant 0 : index
    %164 = vector.load %arg2[%c0_74, %c0_75] : memref<1x512xf32, #tpu.memory_space<vmem>>, vector<1x512xf32>
    %165 = vector.broadcast %164 : vector<1x512xf32> to vector<8x512xf32>
    %166 = arith.addf %163, %165 : vector<8x512xf32>
    %167 = vector.extract_strided_slice %166 {offsets = [0, 0], sizes = [8, 128], strides = [1, 1]} : vector<8x512xf32> to vector<8x128xf32>
    %168 = arith.negf %167 : vector<8x128xf32>
    %169 = math.exp %168 : vector<8x128xf32>
    %cst_76 = arith.constant 1.000000e+00 : f32
    %170 = vector.broadcast %cst_76 : f32 to vector<8x128xf32>
    %171 = arith.addf %170, %169 : vector<8x128xf32>
    %172 = arith.divf %170, %171 : vector<8x128xf32>
    %173 = vector.extract_strided_slice %166 {offsets = [0, 128], sizes = [8, 128], strides = [1, 1]} : vector<8x512xf32> to vector<8x128xf32>
    %174 = arith.negf %173 : vector<8x128xf32>
    %175 = math.exp %174 : vector<8x128xf32>
    %cst_77 = arith.constant 1.000000e+00 : f32
    %176 = vector.broadcast %cst_77 : f32 to vector<8x128xf32>
    %177 = arith.addf %176, %175 : vector<8x128xf32>
    %178 = arith.divf %176, %177 : vector<8x128xf32>
    %179 = vector.extract_strided_slice %166 {offsets = [0, 256], sizes = [8, 128], strides = [1, 1]} : vector<8x512xf32> to vector<8x128xf32>
    %180 = math.tanh %179 : vector<8x128xf32>
    %181 = vector.extract_strided_slice %166 {offsets = [0, 384], sizes = [8, 128], strides = [1, 1]} : vector<8x512xf32> to vector<8x128xf32>
    %182 = arith.negf %181 : vector<8x128xf32>
    %183 = math.exp %182 : vector<8x128xf32>
    %cst_78 = arith.constant 1.000000e+00 : f32
    %184 = vector.broadcast %cst_78 : f32 to vector<8x128xf32>
    %185 = arith.addf %184, %183 : vector<8x128xf32>
    %186 = arith.divf %184, %185 : vector<8x128xf32>
    %187 = arith.mulf %178, %151 : vector<8x128xf32>
    %188 = arith.mulf %172, %180 : vector<8x128xf32>
    %189 = arith.addf %187, %188 : vector<8x128xf32>
    %190 = math.tanh %189 : vector<8x128xf32>
    %191 = arith.mulf %186, %190 : vector<8x128xf32>
    %c0_79 = arith.constant 0 : index
    %c128_80 = arith.constant 128 : index
    %192 = vector.load %arg5[%c0_79, %c128_80] : memref<8x256xf32, #tpu.memory_space<vmem>>, vector<8x128xf32>
    tpu.vector_store %arg5[%c0_79, %c128_80], %191 {strides = array<i32>} : memref<8x256xf32, #tpu.memory_space<vmem>>, vector<8x128xf32>,
    %c5_i32 = arith.constant 5 : i32
    %193 = arith.index_cast %c5_i32 : i32 to index
    %c0_81 = arith.constant 0 : index
    %c0_82 = arith.constant 0 : index
    %194 = vector.load %arg0[%193, %c0_81, %c0_82] : memref<8x8x128xbf16, #tpu.memory_space<vmem>>, vector<1x8x128xbf16>
    %195 = vector.shape_cast %194 : vector<1x8x128xbf16> to vector<8x128xbf16>
    %196 = arith.extf %195 : vector<8x128xbf16> to vector<8x128xf32>
    %c0_83 = arith.constant 0 : index
    %c0_84 = arith.constant 0 : index
    %197 = vector.load %arg5[%c0_83, %c0_84] : memref<8x256xf32, #tpu.memory_space<vmem>>, vector<8x128xf32>
    tpu.vector_store %arg5[%c0_83, %c0_84], %196 {strides = array<i32>} : memref<8x256xf32, #tpu.memory_space<vmem>>, vector<8x128xf32>,
    %c0_85 = arith.constant 0 : index
    %c0_86 = arith.constant 0 : index
    %198 = vector.load %arg5[%c0_85, %c0_86] : memref<8x256xf32, #tpu.memory_space<vmem>>, vector<8x256xf32>
    %199 = arith.truncf %198 : vector<8x256xf32> to vector<8x256xbf16>
    %c0_87 = arith.constant 0 : index
    %c0_88 = arith.constant 0 : index
    %200 = vector.load %arg1[%c0_87, %c0_88] : memref<256x512xbf16, #tpu.memory_space<vmem>>, vector<256x512xbf16>
    %cst_89 = arith.constant dense<0.000000e+00> : vector<8x512xf32>
    %201 = tpu.matmul %199, %200, %cst_89 {dimension_numbers = #tpu.dot_dimension_numbers<[1], [0], [0], [1], [0, 0, 1, 1], [], []>} : vector<8x256xbf16>, vector<256x512xbf16>, vector<8x512xf32> -> vector<8x512xf32>
    %c0_90 = arith.constant 0 : index
    %c0_91 = arith.constant 0 : index
    %202 = vector.load %arg2[%c0_90, %c0_91] : memref<1x512xf32, #tpu.memory_space<vmem>>, vector<1x512xf32>
    %203 = vector.broadcast %202 : vector<1x512xf32> to vector<8x512xf32>
    %204 = arith.addf %201, %203 : vector<8x512xf32>
    %205 = vector.extract_strided_slice %204 {offsets = [0, 0], sizes = [8, 128], strides = [1, 1]} : vector<8x512xf32> to vector<8x128xf32>
    %206 = arith.negf %205 : vector<8x128xf32>
    %207 = math.exp %206 : vector<8x128xf32>
    %cst_92 = arith.constant 1.000000e+00 : f32
    %208 = vector.broadcast %cst_92 : f32 to vector<8x128xf32>
    %209 = arith.addf %208, %207 : vector<8x128xf32>
    %210 = arith.divf %208, %209 : vector<8x128xf32>
    %211 = vector.extract_strided_slice %204 {offsets = [0, 128], sizes = [8, 128], strides = [1, 1]} : vector<8x512xf32> to vector<8x128xf32>
    %212 = arith.negf %211 : vector<8x128xf32>
    %213 = math.exp %212 : vector<8x128xf32>
    %cst_93 = arith.constant 1.000000e+00 : f32
    %214 = vector.broadcast %cst_93 : f32 to vector<8x128xf32>
    %215 = arith.addf %214, %213 : vector<8x128xf32>
    %216 = arith.divf %214, %215 : vector<8x128xf32>
    %217 = vector.extract_strided_slice %204 {offsets = [0, 256], sizes = [8, 128], strides = [1, 1]} : vector<8x512xf32> to vector<8x128xf32>
    %218 = math.tanh %217 : vector<8x128xf32>
    %219 = vector.extract_strided_slice %204 {offsets = [0, 384], sizes = [8, 128], strides = [1, 1]} : vector<8x512xf32> to vector<8x128xf32>
    %220 = arith.negf %219 : vector<8x128xf32>
    %221 = math.exp %220 : vector<8x128xf32>
    %cst_94 = arith.constant 1.000000e+00 : f32
    %222 = vector.broadcast %cst_94 : f32 to vector<8x128xf32>
    %223 = arith.addf %222, %221 : vector<8x128xf32>
    %224 = arith.divf %222, %223 : vector<8x128xf32>
    %225 = arith.mulf %216, %189 : vector<8x128xf32>
    %226 = arith.mulf %210, %218 : vector<8x128xf32>
    %227 = arith.addf %225, %226 : vector<8x128xf32>
    %228 = math.tanh %227 : vector<8x128xf32>
    %229 = arith.mulf %224, %228 : vector<8x128xf32>
    %c0_95 = arith.constant 0 : index
    %c128_96 = arith.constant 128 : index
    %230 = vector.load %arg5[%c0_95, %c128_96] : memref<8x256xf32, #tpu.memory_space<vmem>>, vector<8x128xf32>
    tpu.vector_store %arg5[%c0_95, %c128_96], %229 {strides = array<i32>} : memref<8x256xf32, #tpu.memory_space<vmem>>, vector<8x128xf32>,
    %c6_i32 = arith.constant 6 : i32
    %231 = arith.index_cast %c6_i32 : i32 to index
    %c0_97 = arith.constant 0 : index
    %c0_98 = arith.constant 0 : index
    %232 = vector.load %arg0[%231, %c0_97, %c0_98] : memref<8x8x128xbf16, #tpu.memory_space<vmem>>, vector<1x8x128xbf16>
    %233 = vector.shape_cast %232 : vector<1x8x128xbf16> to vector<8x128xbf16>
    %234 = arith.extf %233 : vector<8x128xbf16> to vector<8x128xf32>
    %c0_99 = arith.constant 0 : index
    %c0_100 = arith.constant 0 : index
    %235 = vector.load %arg5[%c0_99, %c0_100] : memref<8x256xf32, #tpu.memory_space<vmem>>, vector<8x128xf32>
    tpu.vector_store %arg5[%c0_99, %c0_100], %234 {strides = array<i32>} : memref<8x256xf32, #tpu.memory_space<vmem>>, vector<8x128xf32>,
    %c0_101 = arith.constant 0 : index
    %c0_102 = arith.constant 0 : index
    %236 = vector.load %arg5[%c0_101, %c0_102] : memref<8x256xf32, #tpu.memory_space<vmem>>, vector<8x256xf32>
    %237 = arith.truncf %236 : vector<8x256xf32> to vector<8x256xbf16>
    %c0_103 = arith.constant 0 : index
    %c0_104 = arith.constant 0 : index
    %238 = vector.load %arg1[%c0_103, %c0_104] : memref<256x512xbf16, #tpu.memory_space<vmem>>, vector<256x512xbf16>
    %cst_105 = arith.constant dense<0.000000e+00> : vector<8x512xf32>
    %239 = tpu.matmul %237, %238, %cst_105 {dimension_numbers = #tpu.dot_dimension_numbers<[1], [0], [0], [1], [0, 0, 1, 1], [], []>} : vector<8x256xbf16>, vector<256x512xbf16>, vector<8x512xf32> -> vector<8x512xf32>
    %c0_106 = arith.constant 0 : index
    %c0_107 = arith.constant 0 : index
    %240 = vector.load %arg2[%c0_106, %c0_107] : memref<1x512xf32, #tpu.memory_space<vmem>>, vector<1x512xf32>
    %241 = vector.broadcast %240 : vector<1x512xf32> to vector<8x512xf32>
    %242 = arith.addf %239, %241 : vector<8x512xf32>
    %243 = vector.extract_strided_slice %242 {offsets = [0, 0], sizes = [8, 128], strides = [1, 1]} : vector<8x512xf32> to vector<8x128xf32>
    %244 = arith.negf %243 : vector<8x128xf32>
    %245 = math.exp %244 : vector<8x128xf32>
    %cst_108 = arith.constant 1.000000e+00 : f32
    %246 = vector.broadcast %cst_108 : f32 to vector<8x128xf32>
    %247 = arith.addf %246, %245 : vector<8x128xf32>
    %248 = arith.divf %246, %247 : vector<8x128xf32>
    %249 = vector.extract_strided_slice %242 {offsets = [0, 128], sizes = [8, 128], strides = [1, 1]} : vector<8x512xf32> to vector<8x128xf32>
    %250 = arith.negf %249 : vector<8x128xf32>
    %251 = math.exp %250 : vector<8x128xf32>
    %cst_109 = arith.constant 1.000000e+00 : f32
    %252 = vector.broadcast %cst_109 : f32 to vector<8x128xf32>
    %253 = arith.addf %252, %251 : vector<8x128xf32>
    %254 = arith.divf %252, %253 : vector<8x128xf32>
    %255 = vector.extract_strided_slice %242 {offsets = [0, 256], sizes = [8, 128], strides = [1, 1]} : vector<8x512xf32> to vector<8x128xf32>
    %256 = math.tanh %255 : vector<8x128xf32>
    %257 = vector.extract_strided_slice %242 {offsets = [0, 384], sizes = [8, 128], strides = [1, 1]} : vector<8x512xf32> to vector<8x128xf32>
    %258 = arith.negf %257 : vector<8x128xf32>
    %259 = math.exp %258 : vector<8x128xf32>
    %cst_110 = arith.constant 1.000000e+00 : f32
    %260 = vector.broadcast %cst_110 : f32 to vector<8x128xf32>
    %261 = arith.addf %260, %259 : vector<8x128xf32>
    %262 = arith.divf %260, %261 : vector<8x128xf32>
    %263 = arith.mulf %254, %227 : vector<8x128xf32>
    %264 = arith.mulf %248, %256 : vector<8x128xf32>
    %265 = arith.addf %263, %264 : vector<8x128xf32>
    %266 = math.tanh %265 : vector<8x128xf32>
    %267 = arith.mulf %262, %266 : vector<8x128xf32>
    %c0_111 = arith.constant 0 : index
    %c128_112 = arith.constant 128 : index
    %268 = vector.load %arg5[%c0_111, %c128_112] : memref<8x256xf32, #tpu.memory_space<vmem>>, vector<8x128xf32>
    tpu.vector_store %arg5[%c0_111, %c128_112], %267 {strides = array<i32>} : memref<8x256xf32, #tpu.memory_space<vmem>>, vector<8x128xf32>,
    %c7_i32 = arith.constant 7 : i32
    %269 = arith.index_cast %c7_i32 : i32 to index
    %c0_113 = arith.constant 0 : index
    %c0_114 = arith.constant 0 : index
    %270 = vector.load %arg0[%269, %c0_113, %c0_114] : memref<8x8x128xbf16, #tpu.memory_space<vmem>>, vector<1x8x128xbf16>
    %271 = vector.shape_cast %270 : vector<1x8x128xbf16> to vector<8x128xbf16>
    %272 = arith.extf %271 : vector<8x128xbf16> to vector<8x128xf32>
    %c0_115 = arith.constant 0 : index
    %c0_116 = arith.constant 0 : index
    %273 = vector.load %arg5[%c0_115, %c0_116] : memref<8x256xf32, #tpu.memory_space<vmem>>, vector<8x128xf32>
    tpu.vector_store %arg5[%c0_115, %c0_116], %272 {strides = array<i32>} : memref<8x256xf32, #tpu.memory_space<vmem>>, vector<8x128xf32>,
    %c0_117 = arith.constant 0 : index
    %c0_118 = arith.constant 0 : index
    %274 = vector.load %arg5[%c0_117, %c0_118] : memref<8x256xf32, #tpu.memory_space<vmem>>, vector<8x256xf32>
    %275 = arith.truncf %274 : vector<8x256xf32> to vector<8x256xbf16>
    %c0_119 = arith.constant 0 : index
    %c0_120 = arith.constant 0 : index
    %276 = vector.load %arg1[%c0_119, %c0_120] : memref<256x512xbf16, #tpu.memory_space<vmem>>, vector<256x512xbf16>
    %cst_121 = arith.constant dense<0.000000e+00> : vector<8x512xf32>
    %277 = tpu.matmul %275, %276, %cst_121 {dimension_numbers = #tpu.dot_dimension_numbers<[1], [0], [0], [1], [0, 0, 1, 1], [], []>} : vector<8x256xbf16>, vector<256x512xbf16>, vector<8x512xf32> -> vector<8x512xf32>
    %c0_122 = arith.constant 0 : index
    %c0_123 = arith.constant 0 : index
    %278 = vector.load %arg2[%c0_122, %c0_123] : memref<1x512xf32, #tpu.memory_space<vmem>>, vector<1x512xf32>
    %279 = vector.broadcast %278 : vector<1x512xf32> to vector<8x512xf32>
    %280 = arith.addf %277, %279 : vector<8x512xf32>
    %281 = vector.extract_strided_slice %280 {offsets = [0, 0], sizes = [8, 128], strides = [1, 1]} : vector<8x512xf32> to vector<8x128xf32>
    %282 = arith.negf %281 : vector<8x128xf32>
    %283 = math.exp %282 : vector<8x128xf32>
    %cst_124 = arith.constant 1.000000e+00 : f32
    %284 = vector.broadcast %cst_124 : f32 to vector<8x128xf32>
    %285 = arith.addf %284, %283 : vector<8x128xf32>
    %286 = arith.divf %284, %285 : vector<8x128xf32>
    %287 = vector.extract_strided_slice %280 {offsets = [0, 128], sizes = [8, 128], strides = [1, 1]} : vector<8x512xf32> to vector<8x128xf32>
    %288 = arith.negf %287 : vector<8x128xf32>
    %289 = math.exp %288 : vector<8x128xf32>
    %cst_125 = arith.constant 1.000000e+00 : f32
    %290 = vector.broadcast %cst_125 : f32 to vector<8x128xf32>
    %291 = arith.addf %290, %289 : vector<8x128xf32>
    %292 = arith.divf %290, %291 : vector<8x128xf32>
    %293 = vector.extract_strided_slice %280 {offsets = [0, 256], sizes = [8, 128], strides = [1, 1]} : vector<8x512xf32> to vector<8x128xf32>
    %294 = math.tanh %293 : vector<8x128xf32>
    %295 = vector.extract_strided_slice %280 {offsets = [0, 384], sizes = [8, 128], strides = [1, 1]} : vector<8x512xf32> to vector<8x128xf32>
    %296 = arith.negf %295 : vector<8x128xf32>
    %297 = math.exp %296 : vector<8x128xf32>
    %cst_126 = arith.constant 1.000000e+00 : f32
    %298 = vector.broadcast %cst_126 : f32 to vector<8x128xf32>
    %299 = arith.addf %298, %297 : vector<8x128xf32>
    %300 = arith.divf %298, %299 : vector<8x128xf32>
    %301 = arith.mulf %292, %265 : vector<8x128xf32>
    %302 = arith.mulf %286, %294 : vector<8x128xf32>
    %303 = arith.addf %301, %302 : vector<8x128xf32>
    %304 = math.tanh %303 : vector<8x128xf32>
    %305 = arith.mulf %300, %304 : vector<8x128xf32>
    %c0_127 = arith.constant 0 : index
    %c128_128 = arith.constant 128 : index
    %306 = vector.load %arg5[%c0_127, %c128_128] : memref<8x256xf32, #tpu.memory_space<vmem>>, vector<8x128xf32>
    tpu.vector_store %arg5[%c0_127, %c128_128], %305 {strides = array<i32>} : memref<8x256xf32, #tpu.memory_space<vmem>>, vector<8x128xf32>,
    %c8_i32 = arith.constant 8 : i32
    %c0_129 = arith.constant 0 : index
    %c128_130 = arith.constant 128 : index
    %307 = vector.load %arg5[%c0_129, %c128_130] : memref<8x256xf32, #tpu.memory_space<vmem>>, vector<8x128xf32>
    %c0_131 = arith.constant 0 : index
    %c0_132 = arith.constant 0 : index
    %308 = vector.load %arg3[%c0_131, %c0_132] : memref<8x128xf32, #tpu.memory_space<vmem>>, vector<8x128xf32>
    tpu.vector_store %arg3[%c0_131, %c0_132], %307 {strides = array<i32>} : memref<8x128xf32, #tpu.memory_space<vmem>>, vector<8x128xf32>,
    %c0_133 = arith.constant 0 : index
    %c0_134 = arith.constant 0 : index
    %309 = vector.load %arg4[%c0_133, %c0_134] : memref<8x128xf32, #tpu.memory_space<vmem>>, vector<8x128xf32>
    tpu.vector_store %arg4[%c0_133, %c0_134], %303 {strides = array<i32>} : memref<8x128xf32, #tpu.memory_space<vmem>>, vector<8x128xf32>,
    return
  }
}

</mosaic_0001>

<bundles_post_ra>
// kernel: seq2seq_forward.3
= control target key start
LH: loop header
LB: loop body
LE: loop exit
PB: predicated region body
PF: predicated region fallthrough
CT: control target
= control target key end

     0   :  { %s1794_s0 = inlined_call_operand.vmem [shape: s32[8], index: 0, kind: input, shape index: {}]   ;;  %s1795_s1 = inlined_call_operand.vmem [shape: bf16[8,8,128], index: 1, kind: input, shape index: {}]   ;;  %s1796_s2 = inlined_call_operand.vmem [shape: f32[8,128], index: 2, kind: input, shape index: {}]   ;;  %s1797_s3 = inlined_call_operand.vmem [shape: f32[8,128], index: 3, kind: input, shape index: {}]   ;;  %s1798_s4 = inlined_call_operand.vmem [shape: bf16[256,512], index: 4, kind: input, shape index: {}]   ;;  %s1799_s5 = inlined_call_operand.vmem [shape: f32[1,512], index: 5, kind: input, shape index: {}]   ;;  %s1800_s6 = inlined_call_operand.vmem [shape: bf16[128,128], index: 6, kind: input, shape index: {}]   ;;  %s1801_s7 = inlined_call_operand.vmem [shape: bf16[128,128], index: 7, kind: input, shape index: {}]   ;;  %s1802_s8 = inlined_call_operand.vmem [shape: f32[1,128], index: 8, kind: input, shape index: {}]   ;;  %s1803_s9 = inlined_call_operand.vmem [shape: f32[7,8,128], index: 9, kind: output, shape index: {}]  }
   0x1   :  { %s14_s11 = sshll.u32 %s1794_s0, 4  ;;  %s15_s11 = int_to_ptr.vmem [resolvable:$true] %s14_s11 }
   0x2   :  { %s1422_s12 = scalar_lea.vmem %s15_s11, 16  ;;  %p1427_p1 = scmp.lt.s32.totalorder %s15_s11, %s15_s11 }
   0x3   :  { %p1423_p0 = scmp.ne.s32.totalorder %s15_s11, %s1422_s12  ;;  %p1428_p2 = scmp.lt.s32.totalorder %s1422_s12, %s1422_s12 }
   0x5   :  { %p1429_p3 = por %p1428_p2, %p1427_p1 }
   0x7   :  { %p1430_p4 = pnand %p1429_p3, %p1423_p0 }
   0x9   :  { %1433 = shalt.err (!%p1430_p4)  }
   0xa   :  { %s1444_s13 = smov [#allocation5]  }
   0xb   :  { %17 = dma.vmem_to_smem %s15_s11, 16, %s1444_s13, [#allocation4] }
   0xc   :  { %1438 = dma.done.wait [#allocation4], 16 }
   0xd   :  { %1439 = vsyncadd [#allocation4], 4294967280 }
   0xe   :  { %19 = sfence }
   0xf   :  { %s1501_s14 = smov 0  }
  0x10 LB: > { %s1128_s0 = sadd.s32 4294967295, %s1442_s14   ;;  %p1132_p5 = scmp.ge.s32.totalorder %s1442_s14, 1  ;;  %s1442_s14 = sphi %s1501_s14, %s25_s14  }
  0x11   : > { %p268_p6 = scmp.lt.s32.totalorder %s1442_s14, 8 }
  0x13   : > { %p269_p7 = pnand %p1132_p5, %p268_p6 }
  0x14   : > { %p300_p8 = scmp.lt.s32.totalorder (!%p269_p7), %s1128_s0, 7  ;;  %p304_p9 = scmp.lt.s32.totalorder (!%p269_p7), %s1128_s0, 6 }
  0x15   : > { %272 = sbr.rel (%p269_p7) target bundleno = 1096 (0x448), region = 52  ;;  %p309_p10 = scmp.eq.s32.totalorder (!%p269_p7), %s1128_s0, 0 }
  0x16   : > { %p1135_p11 = scmp.ne.s32.totalorder (!%p269_p7), %s1128_s0, 0 }
  0x1c   : > { %s301_s15 = scalar_select %p300_p8, %s1128_s0, 7 }
  0x1d   : > { %s305_s16 = scalar_select %p304_p9, %s1128_s0, 6 }
  0x1e   : > { %s1133_s17 = sshll.u32 %s301_s15, 2  ;;  %312 = sbr.rel (%p1135_p11) target bundleno = 37 (0x25), region = 56  ;;  %v313_v0 = vld [vmem:[%s1796_s2] sm:$0xff] (!%p1135_p11) }
  0x1f   : > { %s303_s20 = scalar_lea.vmem %s1795_s1, %s1133_s17  ;;  %s1134_s21 = sshll.u32 %s305_s16, 3  ;;  %v315_v1 = vld [vmem:[%s1797_s3] sm:$0xff] (!%p1135_p11)  ;;  %314 = vst [vmem:[#allocation2 + $0x8] sm:$0xff] (!%p1135_p11), %v313_v0 }
  0x20   : > { %s1515_s24 = scalar_lea.vmem %s1803_s9, %s1134_s21  ;;  %316 = vst [vmem:[#allocation3] sm:$0xff] (!%p1135_p11), %v315_v1 }
  0x25 PF: > { %s317_s29 = sld [smem:[#allocation5 + %s1128_s0]] }
  0x2b   : > { %p318_p12 = scmp.ne.s32.totalorder %s317_s29, 0 }
  0x2d   : > { %p319_p13 = por %p318_p12, %p309_p10 }
  0x2e   : > { %v323_v2 = vld [vmem:[%s303_s20] sm:$0xf] (%p319_p13) }
  0x2f   : > { %322 = sbr.rel (!%p319_p13) target bundleno = 54 (0x36), region = 60  ;;  %v324_v3 = vunpack.c.l.bf16 (%p319_p13), %v323_v2 }
  0x31   : > { %325 = vst [vmem:[#allocation2] sm:$0xff] (%p319_p13), %v324_v3 }
  0x36 PF: > { %v1294_v4 = vld [vmem:[%s1798_s4 + $0x4] ss:$16 sps:$4 sm:$0xff]   ;;  %v1296_v5 = vld [vmem:[%s1798_s4] ss:$16 sps:$4 sm:$0xff]   ;;  %v1305_v9 = vld [vmem:[%s1798_s4 + $0xc] ss:$16 sps:$4 sm:$0xff]  }
  0x37   : > { %736 = vmatprep.subr.bf16.mxu0 %v1294_v4  ;;  %v1297_v6 = vld [vmem:[%s1798_s4 + $0x24] ss:$16 sps:$4 sm:$0xff]   ;;  %v1299_v7 = vld [vmem:[%s1798_s4 + $0x20] ss:$16 sps:$4 sm:$0xff]   ;;  %v1308_v10 = vld [vmem:[%s1798_s4 + $0x8] ss:$16 sps:$4 sm:$0xff]   ;;  %777 = vmatprep.subr.bf16.mxu1 %v1305_v9 }
  0x38   : > { %737 = vmatpush1.bf16.msra.mxu0 %v1296_v5  ;;  %v1300_v8 = vld [vmem:[%s1798_s4 + $0x44] ss:$16 sps:$4 sm:$0xff]   ;;  %v1302_v11 = vld [vmem:[%s1798_s4 + $0x40] ss:$16 sps:$4 sm:$0xff]   ;;  %778 = vmatpush1.bf16.msra.mxu1 %v1308_v10  ;;  %v1311_v13 = vld [vmem:[%s1798_s4 + $0x2c] ss:$16 sps:$4 sm:$0xff]  }
  0x39   : > { %738 = vmatprep.subr.bf16.mxu0 %v1297_v6  ;;  %v1303_v12 = vld [vmem:[%s1798_s4 + $0x64] ss:$16 sps:$4 sm:$0xff]   ;;  %v1314_v14 = vld [vmem:[%s1798_s4 + $0x28] ss:$16 sps:$4 sm:$0xff]   ;;  %779 = vmatprep.subr.bf16.mxu1 %v1311_v13  ;;  %v1307_v15 = vld [vmem:[%s1798_s4 + $0x60] ss:$16 sps:$4 sm:$0xff]  }
  0x3a   : > { %v1309_v16 = vld [vmem:[%s1798_s4 + $0x84] ss:$16 sps:$4 sm:$0xff]   ;;  %v1317_v17 = vld [vmem:[%s1798_s4 + $0x4c] ss:$16 sps:$4 sm:$0xff]   ;;  %v1320_v18 = vld [vmem:[%s1798_s4 + $0x48] ss:$16 sps:$4 sm:$0xff]  }
  0x3b   : > { %v1323_v19 = vld [vmem:[%s1798_s4 + $0x6c] ss:$16 sps:$4 sm:$0xff]   ;;  %v1313_v20 = vld [vmem:[%s1798_s4 + $0x80] ss:$16 sps:$4 sm:$0xff]   ;;  %v1315_v21 = vld [vmem:[%s1798_s4 + $0xa4] ss:$16 sps:$4 sm:$0xff]  }
  0x3c   : > { %739 = vmatpush1.bf16.msra.mxu0 %v1299_v7  ;;  %780 = vmatpush1.bf16.msra.mxu1 %v1314_v14  ;;  %v1326_v22 = vld [vmem:[%s1798_s4 + $0x68] ss:$16 sps:$4 sm:$0xff]   ;;  %v1329_v23 = vld [vmem:[%s1798_s4 + $0x8c] ss:$16 sps:$4 sm:$0xff]   ;;  %v1319_v24 = vld [vmem:[%s1798_s4 + $0xa0] ss:$16 sps:$4 sm:$0xff]  }
  0x3d   : > { %740 = vmatprep.subr.bf16.mxu0 %v1300_v8  ;;  %781 = vmatprep.subr.bf16.mxu1 %v1317_v17  ;;  %v1321_v25 = vld [vmem:[%s1798_s4 + $0xc4] ss:$16 sps:$4 sm:$0xff]   ;;  %v1332_v26 = vld [vmem:[%s1798_s4 + $0x88] ss:$16 sps:$4 sm:$0xff]   ;;  %v1335_v27 = vld [vmem:[%s1798_s4 + $0xac] ss:$16 sps:$4 sm:$0xff]   ;;  %v396_v17 = vlaneseq }
  0x3e   : > { %v1325_v28 = vld [vmem:[%s1798_s4 + $0xc0] ss:$16 sps:$4 sm:$0xff]   ;;  %v1327_v29 = vld [vmem:[%s1798_s4 + $0xe4] ss:$16 sps:$4 sm:$0xff]   ;;  %v1338_v30 = vld [vmem:[%s1798_s4 + $0xa8] ss:$16 sps:$4 sm:$0xff]  }
  0x3f   : > { %v1341_v31 = vld [vmem:[%s1798_s4 + $0xcc] ss:$16 sps:$4 sm:$0xff]   ;;  %v1331_v32 = vld [vmem:[%s1798_s4 + $0xe0] ss:$16 sps:$4 sm:$0xff]   ;;  %v1333_v33 = vld [vmem:[%s1798_s4 + $0x104] ss:$16 sps:$4 sm:$0xff]  }
  0x40   : > { %741 = vmatpush1.bf16.msra.mxu0 %v1302_v11  ;;  %782 = vmatpush1.bf16.msra.mxu1 %v1320_v18  ;;  %v1344_v34 = vld [vmem:[%s1798_s4 + $0xc8] ss:$16 sps:$4 sm:$0xff]   ;;  %v1347_v35 = vld [vmem:[%s1798_s4 + $0xec] ss:$16 sps:$4 sm:$0xff]   ;;  %v1337_v36 = vld [vmem:[%s1798_s4 + $0x100] ss:$16 sps:$4 sm:$0xff]  }
  0x41   : > { %742 = vmatprep.subr.bf16.mxu0 %v1303_v12  ;;  %783 = vmatprep.subr.bf16.mxu1 %v1323_v19  ;;  %v1339_v37 = vld [vmem:[%s1798_s4 + $0x124] ss:$16 sps:$4 sm:$0xff]   ;;  %v1350_v38 = vld [vmem:[%s1798_s4 + $0xe8] ss:$16 sps:$4 sm:$0xff]   ;;  %v1353_v39 = vld [vmem:[%s1798_s4 + $0x10c] ss:$16 sps:$4 sm:$0xff]  }
  0x42   : > { %v1343_v40 = vld [vmem:[%s1798_s4 + $0x120] ss:$16 sps:$4 sm:$0xff]   ;;  %v1345_v41 = vld [vmem:[%s1798_s4 + $0x144] ss:$16 sps:$4 sm:$0xff]   ;;  %v1356_v42 = vld [vmem:[%s1798_s4 + $0x108] ss:$16 sps:$4 sm:$0xff]  }
  0x43   : > { %v1359_v43 = vld [vmem:[%s1798_s4 + $0x12c] ss:$16 sps:$4 sm:$0xff]   ;;  %v1349_v45 = vld [vmem:[%s1798_s4 + $0x140] ss:$16 sps:$4 sm:$0xff]   ;;  %v1351_v47 = vld [vmem:[%s1798_s4 + $0x164] ss:$16 sps:$4 sm:$0xff]  }
  0x44   : > { %743 = vmatpush1.bf16.msra.mxu0 %v1307_v15  ;;  %784 = vmatpush1.bf16.msra.mxu1 %v1326_v22  ;;  %v327_v44 = vld [vmem:[#allocation2 + $0x8] sm:$0xff]  ;;  %v1355_v49 = vld [vmem:[%s1798_s4 + $0x160] ss:$16 sps:$4 sm:$0xff]   ;;  %v1357_v51 = vld [vmem:[%s1798_s4 + $0x184] ss:$16 sps:$4 sm:$0xff]   ;;  %v1445_v9 = vmov 0.0  }
  0x45   : > { %744 = vmatprep.subr.bf16.mxu0 %v1309_v16  ;;  %785 = vmatprep.subr.bf16.mxu1 %v1329_v23  ;;  %v329_v46 = vpack.c.bf16 %v327_v44, %v327_v44  ;;  %v1362_v48 = vld [vmem:[%s1798_s4 + $0x128] ss:$16 sps:$4 sm:$0xff]   ;;  %v1365_v50 = vld [vmem:[%s1798_s4 + $0x14c] ss:$16 sps:$4 sm:$0xff]   ;;  %v1361_v54 = vld [vmem:[%s1798_s4 + $0x180] ss:$16 sps:$4 sm:$0xff]  }
  0x46   : > { %v1368_v52 = vld [vmem:[%s1798_s4 + $0x148] ss:$16 sps:$4 sm:$0xff]   ;;  %v1371_v53 = vld [vmem:[%s1798_s4 + $0x16c] ss:$16 sps:$4 sm:$0xff]   ;;  %v1363_v55 = vld [vmem:[%s1798_s4 + $0x1a4] ss:$16 sps:$4 sm:$0xff]  }
  0x47   : > { %768 = vmatprep.mubr.bf16.mxu0 %v329_v46  ;;  %809 = vmatprep.mubr.bf16.mxu1 %v329_v46  ;;  %v1374_v56 = vld [vmem:[%s1798_s4 + $0x168] ss:$16 sps:$4 sm:$0xff]   ;;  %v1377_v57 = vld [vmem:[%s1798_s4 + $0x18c] ss:$16 sps:$4 sm:$0xff]   ;;  %v1367_v58 = vld [vmem:[%s1798_s4 + $0x1a0] ss:$16 sps:$4 sm:$0xff]  }
  0x48   : > { %745 = vmatpush1.bf16.msra.mxu0 %v1313_v20  ;;  %786 = vmatpush1.bf16.msra.mxu1 %v1332_v26  ;;  %v1369_v59 = vld [vmem:[%s1798_s4 + $0x1c4] ss:$16 sps:$4 sm:$0xff]   ;;  %v1380_v60 = vld [vmem:[%s1798_s4 + $0x188] ss:$16 sps:$4 sm:$0xff]   ;;  %v1381_v61 = vld [vmem:[%s1798_s4 + $0x1ac] ss:$16 sps:$4 sm:$0xff]  }
  0x49   : > { %746 = vmatprep.subr.bf16.mxu0 %v1315_v21  ;;  %787 = vmatprep.subr.bf16.mxu1 %v1335_v27  ;;  %v1373_v62 = vld [vmem:[%s1798_s4 + $0x1c0] ss:$16 sps:$4 sm:$0xff]   ;;  %v1375_v63 = vld [vmem:[%s1798_s4 + $0x1e4] ss:$16 sps:$4 sm:$0xff]   ;;  %v1383_v0 = vld [vmem:[%s1798_s4 + $0x1a8] ss:$16 sps:$4 sm:$0xff]  }
  0x4a   : > { %v1384_v1 = vld [vmem:[%s1798_s4 + $0x1cc] ss:$16 sps:$4 sm:$0xff]   ;;  %v1379_v2 = vld [vmem:[%s1798_s4 + $0x1e0] ss:$16 sps:$4 sm:$0xff]   ;;  %v1386_v4 = vld [vmem:[%s1798_s4 + $0x1c8] ss:$16 sps:$4 sm:$0xff]  }
  0x4b   : > { %v326_v3 = vld [vmem:[#allocation2] sm:$0xff]  ;;  %v1387_v5 = vld [vmem:[%s1798_s4 + $0x1ec] ss:$16 sps:$4 sm:$0xff]   ;;  %v1389_v7 = vld [vmem:[%s1798_s4 + $0x1e8] ss:$16 sps:$4 sm:$0xff]   ;;  %vm1446_vm0 = vmmov 0  }
  0x4c   : > { %747 = vmatpush1.bf16.msra.mxu0 %v1319_v24  ;;  %788 = vmatpush1.bf16.msra.mxu1 %v1338_v30  ;;  %v328_v6 = vpack.c.bf16 %v326_v3, %v326_v3  ;;  %v1390_v8 = vld [vmem:[%s1801_s7] sm:$0xff]   ;;  %v1391_v10 = vld [vmem:[%s1801_s7 + $0x8] sm:$0xff]   ;;  %v1392_v11 = vld [vmem:[%s1801_s7 + $0x10] sm:$0xff]   ;;  %v397_v18 = vshrl.u32 %v396_v17, 7 }
  0x4d   : > { %748 = vmatprep.subr.bf16.mxu0 %v1321_v25  ;;  %789 = vmatprep.subr.bf16.mxu1 %v1341_v31  ;;  %v1393_v12 = vld [vmem:[%s1801_s7 + $0x18] sm:$0xff]   ;;  %v1394_v13 = vld [vmem:[%s1801_s7 + $0x20] sm:$0xff]   ;;  %v1395_v14 = vld [vmem:[%s1801_s7 + $0x28] sm:$0xff]  }
  0x4e   : > { %v1396_v15 = vld [vmem:[%s1801_s7 + $0x30] sm:$0xff]   ;;  %v1397_v16 = vld [vmem:[%s1801_s7 + $0x38] sm:$0xff]   ;;  %v398_v19 = vsub.s32 0, %v397_v18  ;;  %v394_v20 = vld [vmem:[%s1799_s5] sm:$0xf]  ;;  %v402_v21 = vsub.s32 1, %v397_v18 }
  0x4f   : > { %v410_v24 = vsub.s32 3, %v397_v18  ;;  %v1399_v3 = vld [vmem:[%s1800_s6 + $0x8] sm:$0xff]  }
  0x50   : > { %749 = vmatpush1.bf16.msra.mxu0 %v1325_v28  ;;  %790 = vmatpush1.bf16.msra.mxu1 %v1344_v34  ;;  %v399_v22 = vrot.slane %v394_v20, %v398_v19  ;;  %v403_v23 = vrot.slane %v394_v20, %v402_v21  ;;  %v406_v34 = vsub.s32 2, %v397_v18 }
  0x51   : > { %750 = vmatprep.subr.bf16.mxu0 %v1327_v29  ;;  %791 = vmatprep.subr.bf16.mxu1 %v1347_v35 }
  0x54   : > { %751 = vmatpush1.bf16.msra.mxu0 %v1331_v32  ;;  %792 = vmatpush1.bf16.msra.mxu1 %v1350_v38  ;;  %v411_v32 = vrot.slane %v394_v20, %v410_v24 }
  0x55   : > { %752 = vmatprep.subr.bf16.mxu0 %v1333_v33  ;;  %793 = vmatprep.subr.bf16.mxu1 %v1353_v39  ;;  %v407_v39 = vrot.slane %v394_v20, %v406_v34 }
  0x58   : > { %753 = vmatpush1.bf16.msra.mxu0 %v1337_v36  ;;  %794 = vmatpush1.bf16.msra.mxu1 %v1356_v42 }
  0x59   : > { %754 = vmatprep.subr.bf16.mxu0 %v1339_v37  ;;  %795 = vmatprep.subr.bf16.mxu1 %v1359_v43 }
  0x5c   : > { %755 = vmatpush1.bf16.msra.mxu0 %v1343_v40  ;;  %796 = vmatpush1.bf16.msra.mxu1 %v1362_v48 }
  0x5d   : > { %756 = vmatprep.subr.bf16.mxu0 %v1345_v41  ;;  %797 = vmatprep.subr.bf16.mxu1 %v1365_v50 }
  0x60   : > { %757 = vmatpush1.bf16.msra.mxu0 %v1349_v45  ;;  %798 = vmatpush1.bf16.msra.mxu1 %v1368_v52 }
  0x61   : > { %758 = vmatprep.subr.bf16.mxu0 %v1351_v47  ;;  %799 = vmatprep.subr.bf16.mxu1 %v1371_v53 }
  0x64   : > { %759 = vmatpush1.bf16.msra.mxu0 %v1355_v49  ;;  %800 = vmatpush1.bf16.msra.mxu1 %v1374_v56  ;;  %v837_v49 = vld [vmem:[#allocation3] sm:$0xff] }
  0x65   : > { %760 = vmatprep.subr.bf16.mxu0 %v1357_v51  ;;  %801 = vmatprep.subr.bf16.mxu1 %v1377_v57 }
  0x68   : > { %761 = vmatpush1.bf16.msra.mxu0 %v1361_v54  ;;  %802 = vmatpush1.bf16.msra.mxu1 %v1380_v60  ;;  %v1203_v60 = vld [vmem:[%s1802_s8] ss:$0 sm:$0xff] }
  0x69   : > { %762 = vmatprep.subr.bf16.mxu0 %v1363_v55  ;;  %803 = vmatprep.subr.bf16.mxu1 %v1381_v61 }
  0x6c   : > { %763 = vmatpush1.bf16.msra.mxu0 %v1367_v58  ;;  %804 = vmatpush1.bf16.msra.mxu1 %v1383_v0 }
  0x6d   : > { %764 = vmatprep.subr.bf16.mxu0 %v1369_v59  ;;  %805 = vmatprep.subr.bf16.mxu1 %v1384_v1 }
  0x70   : > { %765 = vmatpush1.bf16.msra.mxu0 %v1373_v62  ;;  %806 = vmatpush1.bf16.msra.mxu1 %v1386_v4  ;;  %v1400_v4 = vld [vmem:[%s1800_s6 + $0x10] sm:$0xff]  }
  0x71   : > { %766 = vmatprep.subr.bf16.mxu0 %v1375_v63  ;;  %807 = vmatprep.subr.bf16.mxu1 %v1387_v5  ;;  %v1401_v5 = vld [vmem:[%s1800_s6 + $0x18] sm:$0xff]  }
  0x74   : > { %767 = vmatpush1.bf16.msra.mxu0 %v1379_v2  ;;  %808 = vmatpush1.bf16.msra.mxu1 %v1389_v7  ;;  %v1398_v2 = vld [vmem:[%s1800_s6] sm:$0xff]   ;;  %v1403_v7 = vld [vmem:[%s1800_s6 + $0x28] sm:$0xff]  }
  0x75   : > { %1242 = vmatprep.subr.bf16.mxu0 %v1445_v9  ;;  %1262 = vmatprep.subr.bf16.mxu1 %v1445_v9 }
  0x77   : > { %769 = vmatmul.mubr.bf16.vlgmr.msra.gmra.mrb[0].mxu0 %v328_v6  ;;  %810 = vmatmul.mubr.bf16.vlgmr.msra.gmra.mrb[0].mxu1 %v328_v6  ;;  %v1402_v6 = vld [vmem:[%s1800_s6 + $0x20] sm:$0xff]  }
  0x78   : > { %1243 = vmatpush3.bf16.msra.mxu0 %v1390_v8  ;;  %1258 = vmatprep.mubr.msk.bf16.mxu0 %vm1446_vm0, %v1445_v9  ;;  %v1404_v8 = vld [vmem:[%s1800_s6 + $0x30] sm:$0xff]  }
  0x79   : > { %1244 = vmatprep.subr.bf16.mxu0 %v1445_v9  ;;  %1278 = vmatprep.mubr.msk.bf16.mxu1 %vm1446_vm0, %v1445_v9 }
  0x7a   : > { %1263 = vmatpush3.bf16.msra.mxu1 %v1398_v2 }
  0x7b   : > { %1264 = vmatprep.subr.bf16.mxu1 %v1445_v9 }
  0x7c   : > { %1245 = vmatpush3.bf16.msra.mxu0 %v1391_v10  ;;  %v1405_v10 = vld [vmem:[%s1800_s6 + $0x38] sm:$0xff]  }
  0x7d   : > { %1246 = vmatprep.subr.bf16.mxu0 %v1445_v9 }
  0x7e   : > { %1265 = vmatpush3.bf16.msra.mxu1 %v1399_v3 }
  0x7f   : > { %1266 = vmatprep.subr.bf16.mxu1 %v1445_v9 }
  0x80   : > { %1247 = vmatpush3.bf16.msra.mxu0 %v1392_v11  ;;  %v959_v11 = vand.u32 127, %v396_v17 }
  0x81   : > { %1248 = vmatprep.subr.bf16.mxu0 %v1445_v9 }
  0x82   : > { %1267 = vmatpush3.bf16.msra.mxu1 %v1400_v4 }
  0x83   : > { %1268 = vmatprep.subr.bf16.mxu1 %v1445_v9 }
  0x84   : > { %1249 = vmatpush3.bf16.msra.mxu0 %v1393_v12  ;;  %v960_v12 = vcvt.s32.f32 %v959_v11 }
  0x85   : > { %1250 = vmatprep.subr.bf16.mxu0 %v1445_v9 }
  0x86   : > { %1269 = vmatpush3.bf16.msra.mxu1 %v1401_v5 }
  0x87   : > { %1270 = vmatprep.subr.bf16.mxu1 %v1445_v9 }
  0x88   : > { %1251 = vmatpush3.bf16.msra.mxu0 %v1394_v13 }
  0x89   : > { %1252 = vmatprep.subr.bf16.mxu0 %v1445_v9 }
  0x8a   : > { %1271 = vmatpush3.bf16.msra.mxu1 %v1402_v6 }
  0x8b   : > { %1272 = vmatprep.subr.bf16.mxu1 %v1445_v9 }
  0x8c   : > { %1253 = vmatpush3.bf16.msra.mxu0 %v1395_v14 }
  0x8d   : > { %1254 = vmatprep.subr.bf16.mxu0 %v1445_v9 }
  0x8e   : > { %1273 = vmatpush3.bf16.msra.mxu1 %v1403_v7 }
  0x8f   : > { %1274 = vmatprep.subr.bf16.mxu1 %v1445_v9 }
  0x90   : > { %1255 = vmatpush3.bf16.msra.mxu0 %v1396_v15 }
  0x91   : > { %1256 = vmatprep.subr.bf16.mxu0 %v1445_v9 }
  0x92   : > { %1275 = vmatpush3.bf16.msra.mxu1 %v1404_v8 }
  0x93   : > { %1276 = vmatprep.subr.bf16.mxu1 %v1445_v9 }
  0x94   : > { %1257 = vmatpush3.bf16.msra.mxu0 %v1397_v16  ;;  %v1447_v16 = vmov 1.0|1.0  }
  0x96   : > { %1277 = vmatpush3.bf16.msra.mxu1 %v1405_v10 }
 0x14a   : > { %v770_v25 = vpop.f32.mrb[0].mxu0  ;;  %v811_v35 = vpop.f32.mrb[0].mxu1 }
 0x14b   : > { %v771_v26 = vadd.f32 %v770_v25, %v399_v22  ;;  %v772_v27 = vpop.f32.mrb[1].mxu0  ;;  %v813_v36 = vpop.f32.mrb[1].mxu1  ;;  %v812_v42 = vadd.f32 %v811_v35, %v407_v39 }
 0x14c   : > { %v773_v28 = vadd.f32 %v772_v27, %v403_v23  ;;  %v774_v29 = vpop.f32.mrb[2].mxu0  ;;  %v814_v37 = vadd.f32 %v813_v36, %v411_v32  ;;  %v815_v38 = vpop.f32.mrb[2].mxu1 }
 0x14d   : > { %v1200_v30 = vmul.f32 -1.442695, %v771_v26  ;;  %v775_v31 = vpop.f32.mrb[3].mxu0  ;;  %v816_v40 = vpop.f32.mrb[3].mxu1 }
 0x14e   : > { %v1201_v33 = vmul.f32 -1.442695, %v773_v28  ;;  %v1202_v41 = vmul.f32 -1.442695, %v814_v37 }
 0x14f   : > { %1406 = vpow2.f32 %v1200_v30 }
 0x150   : > { %1408 = vpow2.f32 %v1201_v33 }
 0x151   : > { %1410 = vpow2.f32 %v1202_v41 }
 0x152   : > { %1412 = vtanh.f32 %v812_v42 }
 0x159   : > { %v1407_v43 = vpop.eup %1406 }
 0x15a   : > { %v1409_v44 = vpop.eup %1408  ;;  %v821_v45 = vadd.f32 1.0, %v1407_v43 }
 0x15b   : > { %v827_v46 = vadd.f32 1.0, %v1409_v44  ;;  %v1411_v47 = vpop.eup %1410 }
 0x15c   : > { %1414 = vrcp.f32 %v821_v45  ;;  %v1413_v48 = vpop.eup %1412  ;;  %v834_v51 = vadd.f32 1.0, %v1411_v47 }
 0x15d   : > { %1416 = vrcp.f32 %v827_v46 }
 0x15e   : > { %1418 = vrcp.f32 %v834_v51 }
 0x166   : > { %v1415_v50 = vpop.eup %1414 }
 0x167   : > { %v1417_v52 = vpop.eup %1416  ;;  %v839_v53 = vmul.f32 %v1415_v50, %v1413_v48 }
 0x168   : > { %v838_v54 = vmul.f32 %v1417_v52, %v837_v49  ;;  %v1419_v56 = vpop.eup %1418 }
 0x16a   : > { %v840_v55 = vadd.f32 %v839_v53, %v838_v54 }
 0x16c   : > { %1420 = vtanh.f32 %v840_v55  ;;  %843 = vst [vmem:[#allocation3] sm:$0xff] %v840_v55 }
 0x176   : > { %v1421_v57 = vpop.eup %1420 }
 0x177   : > { %v842_v58 = vmul.f32 %v1421_v57, %v1419_v56 }
 0x179   : > { %844 = vst [vmem:[#allocation2 + $0x8] sm:$0xff] %v842_v58  ;;  %v845_v59 = vpack.c.bf16 %v842_v58, %v842_v58 }
 0x17b   : > { %1259 = vmatmul.mubr.bf16.vlgmr.msra.gmra.mrb[4].mxu0 %v845_v59 }
 0x24e   : > { %v951_v61 = vpop.f32.mrb[4].mxu0 }
 0x24f   : > { %v952_v62 = vadd.f32 %v1203_v60, %v951_v61  ;;  %v1260_v63 = vpop.f32.mrb[5].mxu0 }
 0x250   : > { %v954_v0 = vpop.f32.mrb[6].mxu0 }
 0x251   : > { %957 = vst [vmem:[%s1515_s24] sm:$0xff] %v952_v62  ;;  %961 = vmax.xlane.f32.xlu0 %v952_v62  ;;  %v1261_v1 = vpop.f32.mrb[7].mxu0 }
 0x2de   : > { %v962_v13 = vpop.xlane.xlu0 %961 }
 0x2df   : > { %vm963_vm1 = vcmp.eq.f32.partialorder %v952_v62, %v962_v13 }
 0x2e0   : > { %v964_v14 = vsel %vm963_vm1, %v960_v12, 128.0 }
 0x2e1   : > { %965 = vmin.xlane.f32.xlu0 %v964_v14 }
 0x36e   : > { %v966_v15 = vpop.xlane.xlu0 %965 }
 0x36f   : > { %vm967_vm2 = vcmp.eq.f32.partialorder %v960_v12, %v966_v15 }
 0x370   : > { %vm1220_vm3 = vmpackc.low %vm967_vm2, %vm967_vm2 }
 0x371   : > { %1279 = vmatmul.mubr.msk.bf16.vlgmr.msra.gmra.mrb[4].mxu1 %vm1220_vm3, %v1447_v16 }
 0x444   : > { %v1068_v18 = vpop.f32.mrb[4].mxu1 }
 0x445   : > { %1074 = vst [vmem:[#allocation2] sm:$0xff] %v1068_v18  ;;  %v1280_v19 = vpop.f32.mrb[5].mxu1 }
 0x446   : > { %v1071_v20 = vpop.f32.mrb[6].mxu1 }
 0x447   : > { %v1281_v21 = vpop.f32.mrb[7].mxu1 }
 0x448 PF: > { %s25_s14 = sadd.s32 1, %s1442_s14  }
 0x449   : > { %p22_p0 = scmp.ge.s32.totalorder %s25_s14, 9  }
 0x44b   :  { %24 = sbr.rel (!%p22_p0) target bundleno = 16 (0x10), region = 90 }

// kernel: seq2seq_forward.2
= control target key start
LH: loop header
LB: loop body
LE: loop exit
PB: predicated region body
PF: predicated region fallthrough
CT: control target
= control target key end

     0   :  { %10 = vsyncpa [#allocation4], 0  ;;  %s5213_s15 = smov [#allocation3]   ;;  %s6268_s0 = inlined_call_operand.vmem [shape: bf16[8,8,128], index: 0, kind: input, shape index: {}]   ;;  %s6269_s1 = inlined_call_operand.hbm [shape: bf16[256,512], index: 1, kind: input, shape index: {}]   ;;  %s6270_s2 = inlined_call_operand.vmem [shape: f32[1,512], index: 2, kind: input, shape index: {}]   ;;  %s6271_s3 = inlined_call_operand.vmem [shape: f32[8,128], index: 3, kind: output, shape index: {0}]   ;;  %s6272_s4 = inlined_call_operand.vmem [shape: f32[8,128], index: 4, kind: output, shape index: {1}]  }
   0x1   :  { %s18_s16 = sshll.u32 %s5213_s15, 4  ;;  %s5189_s19 = scalar_lea.hbm %s6269_s1, 8192  ;;  %s19_s16 = int_to_ptr.vmem [resolvable:$true] %s18_s16 }
   0x2   :  { %p5190_p0 = scmp.ne.s32.totalorder %s6269_s1, %s5189_s19  ;;  %p5193_p1 = scmp.lt.u32.totalorder %s5189_s19, %s6269_s1 }
   0x4   :  { %p5195_p2 = pnand %p5193_p1, %p5190_p0 }
   0x6   :  { %5198 = shalt.err (!%p5195_p2)
}
   0x7   :  { %s5199_s24 = scalar_lea.vmem %s19_s16, 8192  ;;  %p5204_p4 = scmp.lt.s32.totalorder %s19_s16, %s19_s16 }
   0x8   :  { %p5200_p3 = scmp.ne.s32.totalorder %s19_s16, %s5199_s24  ;;  %p5205_p5 = scmp.lt.s32.totalorder %s5199_s24, %s5199_s24 }
   0xa   :  { %p5206_p6 = por %p5205_p5, %p5204_p4 }
   0xc   :  { %p5207_p7 = pnand %p5206_p6, %p5200_p3 }
   0xe   :  { %5210 = shalt.err (!%p5207_p7)
}
   0xf   :  { %s5214_s25 = smov 256   ;;  %s5215_s26 = smov 16  }
  0x10   :  { %24 = dma.hbm_to_vmem [thread:$0]  %s6269_s1, 8192, %s19_s16, [#allocation4], %s5214_s25, %s5214_s25, %s5215_s26  }
  0x11   :  { %5211 = dma.done.wait [#allocation4], 8192  }
  0x12   :  { %5212 = vsyncadd [#allocation4], 4294959104  ;;  %v5216_v0 = vmov 0.0|0.0   ;;  %v5254_v1 = vld [vmem:[#allocation3 + $0x4] ss:$16 sps:$4 sm:$0xff]  }
  0x13   :  { %476 = vmatprep.mubr.bf16.mxu0 %v5216_v0  ;;  %517 = vmatprep.mubr.bf16.mxu1 %v5216_v0  ;;  %v5256_v2 = vld [vmem:[#allocation3] ss:$16 sps:$4 sm:$0xff]   ;;  %v5259_v3 = vld [vmem:[#allocation3 + $0x24] ss:$16 sps:$4 sm:$0xff]   ;;  %v5267_v6 = vld [vmem:[#allocation3 + $0xc] ss:$16 sps:$4 sm:$0xff]  }
  0x14   :  { %444 = vmatprep.subr.bf16.mxu0 %v5254_v1  ;;  %v5262_v4 = vld [vmem:[#allocation3 + $0x20] ss:$16 sps:$4 sm:$0xff]   ;;  %v5265_v5 = vld [vmem:[#allocation3 + $0x44] ss:$16 sps:$4 sm:$0xff]   ;;  %v5269_v7 = vld [vmem:[#allocation3 + $0x8] ss:$16 sps:$4 sm:$0xff]   ;;  %485 = vmatprep.subr.bf16.mxu1 %v5267_v6 }
  0x15   :  { %445 = vmatpush1.bf16.msra.mxu0 %v5256_v2  ;;  %v5272_v8 = vld [vmem:[#allocation3 + $0x40] ss:$16 sps:$4 sm:$0xff]   ;;  %v5276_v9 = vld [vmem:[#allocation3 + $0x64] ss:$16 sps:$4 sm:$0xff]   ;;  %486 = vmatpush1.bf16.msra.mxu1 %v5269_v7  ;;  %v5279_v10 = vld [vmem:[#allocation3 + $0x2c] ss:$16 sps:$4 sm:$0xff]  }
  0x16   :  { %446 = vmatprep.subr.bf16.mxu0 %v5259_v3  ;;  %v5281_v11 = vld [vmem:[#allocation3 + $0x28] ss:$16 sps:$4 sm:$0xff]   ;;  %487 = vmatprep.subr.bf16.mxu1 %v5279_v10  ;;  %v5285_v12 = vld [vmem:[#allocation3 + $0x60] ss:$16 sps:$4 sm:$0xff]   ;;  %v5287_v13 = vld [vmem:[#allocation3 + $0x84] ss:$16 sps:$4 sm:$0xff]  }
  0x17   :  { %v5289_v14 = vld [vmem:[#allocation3 + $0x4c] ss:$16 sps:$4 sm:$0xff]   ;;  %v5293_v15 = vld [vmem:[#allocation3 + $0x48] ss:$16 sps:$4 sm:$0xff]   ;;  %v5299_v17 = vld [vmem:[#allocation3 + $0x80] ss:$16 sps:$4 sm:$0xff]  }
  0x18   :  { %v5296_v16 = vld [vmem:[#allocation3 + $0x6c] ss:$16 sps:$4 sm:$0xff]   ;;  %v5302_v18 = vld [vmem:[#allocation3 + $0xa4] ss:$16 sps:$4 sm:$0xff]   ;;  %v5305_v19 = vld [vmem:[#allocation3 + $0x68] ss:$16 sps:$4 sm:$0xff]  }
  0x19   :  { %447 = vmatpush1.bf16.msra.mxu0 %v5262_v4  ;;  %488 = vmatpush1.bf16.msra.mxu1 %v5281_v11  ;;  %v5308_v20 = vld [vmem:[#allocation3 + $0x8c] ss:$16 sps:$4 sm:$0xff]   ;;  %v5311_v21 = vld [vmem:[#allocation3 + $0xa0] ss:$16 sps:$4 sm:$0xff]   ;;  %v5313_v22 = vld [vmem:[#allocation3 + $0xc4] ss:$16 sps:$4 sm:$0xff]  }
  0x1a   :  { %448 = vmatprep.subr.bf16.mxu0 %v5265_v5  ;;  %489 = vmatprep.subr.bf16.mxu1 %v5289_v14  ;;  %v5317_v23 = vld [vmem:[#allocation3 + $0x88] ss:$16 sps:$4 sm:$0xff]   ;;  %v5320_v24 = vld [vmem:[#allocation3 + $0xac] ss:$16 sps:$4 sm:$0xff]   ;;  %v5323_v25 = vld [vmem:[#allocation3 + $0xc0] ss:$16 sps:$4 sm:$0xff]  }
  0x1b   :  { %v5326_v26 = vld [vmem:[#allocation3 + $0xe4] ss:$16 sps:$4 sm:$0xff]   ;;  %v5329_v27 = vld [vmem:[#allocation3 + $0xa8] ss:$16 sps:$4 sm:$0xff]   ;;  %v5332_v28 = vld [vmem:[#allocation3 + $0xcc] ss:$16 sps:$4 sm:$0xff]  }
  0x1c   :  { %v5335_v29 = vld [vmem:[#allocation3 + $0xe0] ss:$16 sps:$4 sm:$0xff]   ;;  %v5337_v30 = vld [vmem:[#allocation3 + $0x104] ss:$16 sps:$4 sm:$0xff]   ;;  %v5341_v31 = vld [vmem:[#allocation3 + $0xc8] ss:$16 sps:$4 sm:$0xff]  }
  0x1d   :  { %449 = vmatpush1.bf16.msra.mxu0 %v5272_v8  ;;  %490 = vmatpush1.bf16.msra.mxu1 %v5293_v15  ;;  %v5344_v32 = vld [vmem:[#allocation3 + $0xec] ss:$16 sps:$4 sm:$0xff]   ;;  %v5347_v33 = vld [vmem:[#allocation3 + $0x100] ss:$16 sps:$4 sm:$0xff]   ;;  %v5350_v34 = vld [vmem:[#allocation3 + $0x124] ss:$16 sps:$4 sm:$0xff]  }
  0x1e   :  { %450 = vmatprep.subr.bf16.mxu0 %v5276_v9  ;;  %491 = vmatprep.subr.bf16.mxu1 %v5296_v16  ;;  %v5353_v35 = vld [vmem:[#allocation3 + $0xe8] ss:$16 sps:$4 sm:$0xff]   ;;  %v5356_v36 = vld [vmem:[#allocation3 + $0x10c] ss:$16 sps:$4 sm:$0xff]   ;;  %v5359_v37 = vld [vmem:[#allocation3 + $0x120] ss:$16 sps:$4 sm:$0xff]  }
  0x1f   :  { %v5361_v38 = vld [vmem:[#allocation3 + $0x144] ss:$16 sps:$4 sm:$0xff]   ;;  %v5365_v39 = vld [vmem:[#allocation3 + $0x108] ss:$16 sps:$4 sm:$0xff]   ;;  %v5368_v40 = vld [vmem:[#allocation3 + $0x12c] ss:$16 sps:$4 sm:$0xff]  }
  0x20   :  { %v5371_v41 = vld [vmem:[#allocation3 + $0x140] ss:$16 sps:$4 sm:$0xff]   ;;  %v5374_v42 = vld [vmem:[#allocation3 + $0x164] ss:$16 sps:$4 sm:$0xff]   ;;  %v5377_v43 = vld [vmem:[#allocation3 + $0x128] ss:$16 sps:$4 sm:$0xff]  }
  0x21   :  { %451 = vmatpush1.bf16.msra.mxu0 %v5285_v12  ;;  %492 = vmatpush1.bf16.msra.mxu1 %v5305_v19  ;;  %v5379_v44 = vld [vmem:[#allocation3 + $0x160] ss:$16 sps:$4 sm:$0xff]   ;;  %v5382_v45 = vld [vmem:[#allocation3 + $0x14c] ss:$16 sps:$4 sm:$0xff]   ;;  %v5384_v46 = vld [vmem:[#allocation3 + $0x184] ss:$16 sps:$4 sm:$0xff]  }
  0x22   :  { %452 = vmatprep.subr.bf16.mxu0 %v5287_v13  ;;  %493 = vmatprep.subr.bf16.mxu1 %v5308_v20  ;;  %6369 = vst [vmem:[#allocation6_spill] sm:$0xff] %v5379_v44  ;;  %6370 = vst [vmem:[#allocation7_spill] sm:$0xff] %v5384_v46  ;;  %v5387_v47 = vld [vmem:[#allocation3 + $0x148] ss:$16 sps:$4 sm:$0xff]   ;;  %v5389_v48 = vld [vmem:[#allocation3 + $0x16c] ss:$16 sps:$4 sm:$0xff]  }
  0x23   :  { %6371 = vst [vmem:[#allocation8_spill] sm:$0xff] %v5389_v48  ;;  %v5393_v49 = vld [vmem:[#allocation3 + $0x180] ss:$16 sps:$4 sm:$0xff]   ;;  %v5396_v50 = vld [vmem:[#allocation3 + $0x1a4] ss:$16 sps:$4 sm:$0xff]  }
  0x24   :  { %6372 = vst [vmem:[#allocation9_spill] sm:$0xff] %v5393_v49  ;;  %6373 = vst [vmem:[#allocation10_spill] sm:$0xff] %v5396_v50  ;;  %v5398_v51 = vld [vmem:[#allocation3 + $0x168] ss:$16 sps:$4 sm:$0xff]   ;;  %v5401_v52 = vld [vmem:[#allocation3 + $0x18c] ss:$16 sps:$4 sm:$0xff]  }
  0x25   :  { %453 = vmatpush1.bf16.msra.mxu0 %v5299_v17  ;;  %494 = vmatpush1.bf16.msra.mxu1 %v5317_v23  ;;  %6374 = vst [vmem:[#allocation11_spill] sm:$0xff] %v5398_v51  ;;  %6375 = vst [vmem:[#allocation12_spill] sm:$0xff] %v5401_v52  ;;  %v5405_v53 = vld [vmem:[#allocation3 + $0x1a0] ss:$16 sps:$4 sm:$0xff]   ;;  %v5408_v54 = vld [vmem:[#allocation3 + $0x1c4] ss:$16 sps:$4 sm:$0xff]  }
  0x26   :  { %454 = vmatprep.subr.bf16.mxu0 %v5302_v18  ;;  %495 = vmatprep.subr.bf16.mxu1 %v5320_v24  ;;  %6376 = vst [vmem:[#allocation13_spill] sm:$0xff] %v5405_v53  ;;  %6377 = vst [vmem:[#allocation14_spill] sm:$0xff] %v5408_v54  ;;  %v5410_v55 = vld [vmem:[#allocation3 + $0x188] ss:$16 sps:$4 sm:$0xff]   ;;  %v5413_v56 = vld [vmem:[#allocation3 + $0x1ac] ss:$16 sps:$4 sm:$0xff]  }
  0x27   :  { %6378 = vst [vmem:[#allocation15_spill] sm:$0xff] %v5410_v55  ;;  %6379 = vst [vmem:[#allocation16_spill] sm:$0xff] %v5413_v56  ;;  %v5417_v57 = vld [vmem:[#allocation3 + $0x1c0] ss:$16 sps:$4 sm:$0xff]   ;;  %v5420_v58 = vld [vmem:[#allocation3 + $0x1e4] ss:$16 sps:$4 sm:$0xff]  }
  0x28   :  { %6380 = vst [vmem:[#allocation17_spill] sm:$0xff] %v5417_v57  ;;  %6381 = vst [vmem:[#allocation18_spill] sm:$0xff] %v5420_v58  ;;  %v5422_v59 = vld [vmem:[#allocation3 + $0x1a8] ss:$16 sps:$4 sm:$0xff]   ;;  %v5425_v60 = vld [vmem:[#allocation3 + $0x1cc] ss:$16 sps:$4 sm:$0xff]  }
  0x29   :  { %455 = vmatpush1.bf16.msra.mxu0 %v5311_v21  ;;  %496 = vmatpush1.bf16.msra.mxu1 %v5329_v27  ;;  %6382 = vst [vmem:[#allocation19_spill] sm:$0xff] %v5422_v59  ;;  %6383 = vst [vmem:[#allocation20_spill] sm:$0xff] %v5425_v60  ;;  %v5429_v61 = vld [vmem:[#allocation3 + $0x1e0] ss:$16 sps:$4 sm:$0xff]   ;;  %v5432_v62 = vld [vmem:[#allocation3 + $0x1c8] ss:$16 sps:$4 sm:$0xff]  }
  0x2a   :  { %456 = vmatprep.subr.bf16.mxu0 %v5313_v22  ;;  %497 = vmatprep.subr.bf16.mxu1 %v5332_v28  ;;  %6384 = vst [vmem:[#allocation21_spill] sm:$0xff] %v5429_v61  ;;  %6385 = vst [vmem:[#allocation22_spill] sm:$0xff] %v5432_v62  ;;  %v5435_v63 = vld [vmem:[#allocation3 + $0x1ec] ss:$16 sps:$4 sm:$0xff]   ;;  %v4852_v0 = vld [vmem:[%s6268_s0] ss:$0 sps:$4 sm:$0xff]  }
  0x2b   :  { %6386 = vst [vmem:[#allocation23_spill] sm:$0xff] %v5435_v63 }
  0x2d   :  { %457 = vmatpush1.bf16.msra.mxu0 %v5323_v25  ;;  %498 = vmatpush1.bf16.msra.mxu1 %v5341_v31 }
  0x2e   :  { %458 = vmatprep.subr.bf16.mxu0 %v5326_v26  ;;  %499 = vmatprep.subr.bf16.mxu1 %v5344_v32 }
  0x31   :  { %459 = vmatpush1.bf16.msra.mxu0 %v5335_v29  ;;  %500 = vmatpush1.bf16.msra.mxu1 %v5353_v35 }
  0x32   :  { %460 = vmatprep.subr.bf16.mxu0 %v5337_v30  ;;  %501 = vmatprep.subr.bf16.mxu1 %v5356_v36 }
  0x35   :  { %461 = vmatpush1.bf16.msra.mxu0 %v5347_v33  ;;  %502 = vmatpush1.bf16.msra.mxu1 %v5365_v39 }
  0x36   :  { %462 = vmatprep.subr.bf16.mxu0 %v5350_v34  ;;  %503 = vmatprep.subr.bf16.mxu1 %v5368_v40 }
  0x39   :  { %463 = vmatpush1.bf16.msra.mxu0 %v5359_v37  ;;  %504 = vmatpush1.bf16.msra.mxu1 %v5377_v43 }
  0x3a   :  { %464 = vmatprep.subr.bf16.mxu0 %v5361_v38  ;;  %505 = vmatprep.subr.bf16.mxu1 %v5382_v45 }
  0x3d   :  { %465 = vmatpush1.bf16.msra.mxu0 %v5371_v41  ;;  %506 = vmatpush1.bf16.msra.mxu1 %v5387_v47 }
  0x3e   :  { %466 = vmatprep.subr.bf16.mxu0 %v5374_v42  ;;  %507 = vmatprep.subr.bf16.mxu1 %v5389_v48 }
  0x41   :  { %467 = vmatpush1.bf16.msra.mxu0 %v5379_v44  ;;  %508 = vmatpush1.bf16.msra.mxu1 %v5398_v51 }
  0x42   :  { %468 = vmatprep.subr.bf16.mxu0 %v5384_v46  ;;  %509 = vmatprep.subr.bf16.mxu1 %v5401_v52 }
  0x45   :  { %469 = vmatpush1.bf16.msra.mxu0 %v5393_v49  ;;  %510 = vmatpush1.bf16.msra.mxu1 %v5410_v55  ;;  %v5443_v55 = vld [vmem:[#allocation3 + $0x1e8] ss:$16 sps:$4 sm:$0xff]  }
  0x46   :  { %470 = vmatprep.subr.bf16.mxu0 %v5396_v50  ;;  %511 = vmatprep.subr.bf16.mxu1 %v5413_v56  ;;  %6387 = vst [vmem:[#allocation24_spill] sm:$0xff] %v5443_v55 }
  0x49   :  { %471 = vmatpush1.bf16.msra.mxu0 %v5405_v53  ;;  %512 = vmatpush1.bf16.msra.mxu1 %v5422_v59 }
  0x4a   :  { %472 = vmatprep.subr.bf16.mxu0 %v5408_v54  ;;  %513 = vmatprep.subr.bf16.mxu1 %v5425_v60 }
  0x4d   :  { %473 = vmatpush1.bf16.msra.mxu0 %v5417_v57  ;;  %514 = vmatpush1.bf16.msra.mxu1 %v5432_v62 }
  0x4e   :  { %474 = vmatprep.subr.bf16.mxu0 %v5420_v58  ;;  %515 = vmatprep.subr.bf16.mxu1 %v5435_v63 }
  0x51   :  { %475 = vmatpush1.bf16.msra.mxu0 %v5429_v61  ;;  %516 = vmatpush1.bf16.msra.mxu1 %v5443_v55 }
  0x52   :  { %965 = vmatprep.subr.bf16.mxu0 %v5254_v1  ;;  %1006 = vmatprep.subr.bf16.mxu1 %v5267_v6 }
  0x54   :  { %477 = vmatmul.mubr.bf16.vlgmr.msra.gmra.mrb[0].mxu0 %v4852_v0  ;;  %518 = vmatmul.mubr.bf16.vlgmr.msra.gmra.mrb[0].mxu1 %v4852_v0  ;;  %v6388_v0 = vld [vmem:[#allocation15_spill] sm:$0xff] }
  0x55   :  { %966 = vmatpush1.bf16.msra.mxu0 %v5256_v2  ;;  %1007 = vmatpush1.bf16.msra.mxu1 %v5269_v7 }
  0x56   :  { %967 = vmatprep.subr.bf16.mxu0 %v5259_v3  ;;  %1008 = vmatprep.subr.bf16.mxu1 %v5279_v10 }
  0x59   :  { %968 = vmatpush1.bf16.msra.mxu0 %v5262_v4  ;;  %1009 = vmatpush1.bf16.msra.mxu1 %v5281_v11 }
  0x5a   :  { %969 = vmatprep.subr.bf16.mxu0 %v5265_v5  ;;  %1010 = vmatprep.subr.bf16.mxu1 %v5289_v14 }
  0x5d   :  { %970 = vmatpush1.bf16.msra.mxu0 %v5272_v8  ;;  %1011 = vmatpush1.bf16.msra.mxu1 %v5293_v15 }
  0x5e   :  { %971 = vmatprep.subr.bf16.mxu0 %v5276_v9  ;;  %1012 = vmatprep.subr.bf16.mxu1 %v5296_v16 }
  0x61   :  { %972 = vmatpush1.bf16.msra.mxu0 %v5285_v12  ;;  %1013 = vmatpush1.bf16.msra.mxu1 %v5305_v19 }
  0x62   :  { %973 = vmatprep.subr.bf16.mxu0 %v5287_v13  ;;  %1014 = vmatprep.subr.bf16.mxu1 %v5308_v20 }
  0x65   :  { %974 = vmatpush1.bf16.msra.mxu0 %v5299_v17  ;;  %1015 = vmatpush1.bf16.msra.mxu1 %v5317_v23 }
  0x66   :  { %975 = vmatprep.subr.bf16.mxu0 %v5302_v18  ;;  %1016 = vmatprep.subr.bf16.mxu1 %v5320_v24 }
  0x69   :  { %976 = vmatpush1.bf16.msra.mxu0 %v5311_v21  ;;  %1017 = vmatpush1.bf16.msra.mxu1 %v5329_v27 }
  0x6a   :  { %977 = vmatprep.subr.bf16.mxu0 %v5313_v22  ;;  %1018 = vmatprep.subr.bf16.mxu1 %v5332_v28 }
  0x6d   :  { %978 = vmatpush1.bf16.msra.mxu0 %v5323_v25  ;;  %1019 = vmatpush1.bf16.msra.mxu1 %v5341_v31 }
  0x6e   :  { %979 = vmatprep.subr.bf16.mxu0 %v5326_v26  ;;  %1020 = vmatprep.subr.bf16.mxu1 %v5344_v32 }
  0x71   :  { %980 = vmatpush1.bf16.msra.mxu0 %v5335_v29  ;;  %1021 = vmatpush1.bf16.msra.mxu1 %v5353_v35 }
  0x72   :  { %981 = vmatprep.subr.bf16.mxu0 %v5337_v30  ;;  %1022 = vmatprep.subr.bf16.mxu1 %v5356_v36 }
  0x75   :  { %982 = vmatpush1.bf16.msra.mxu0 %v5347_v33  ;;  %1023 = vmatpush1.bf16.msra.mxu1 %v5365_v39 }
  0x76   :  { %983 = vmatprep.subr.bf16.mxu0 %v5350_v34  ;;  %1024 = vmatprep.subr.bf16.mxu1 %v5368_v40 }
  0x79   :  { %984 = vmatpush1.bf16.msra.mxu0 %v5359_v37  ;;  %1025 = vmatpush1.bf16.msra.mxu1 %v5377_v43 }
  0x7a   :  { %985 = vmatprep.subr.bf16.mxu0 %v5361_v38  ;;  %1026 = vmatprep.subr.bf16.mxu1 %v5382_v45 }
  0x7d   :  { %986 = vmatpush1.bf16.msra.mxu0 %v5371_v41  ;;  %1027 = vmatpush1.bf16.msra.mxu1 %v5387_v47 }
  0x7e   :  { %987 = vmatprep.subr.bf16.mxu0 %v5374_v42  ;;  %1028 = vmatprep.subr.bf16.mxu1 %v5389_v48 }
  0x81   :  { %988 = vmatpush1.bf16.msra.mxu0 %v5379_v44  ;;  %1029 = vmatpush1.bf16.msra.mxu1 %v5398_v51 }
  0x82   :  { %989 = vmatprep.subr.bf16.mxu0 %v5384_v46  ;;  %1030 = vmatprep.subr.bf16.mxu1 %v5401_v52 }
  0x85   :  { %990 = vmatpush1.bf16.msra.mxu0 %v5393_v49  ;;  %1031 = vmatpush1.bf16.msra.mxu1 %v6388_v0 }
  0x86   :  { %991 = vmatprep.subr.bf16.mxu0 %v5396_v50  ;;  %1032 = vmatprep.subr.bf16.mxu1 %v5413_v56 }
  0x89   :  { %992 = vmatpush1.bf16.msra.mxu0 %v5405_v53  ;;  %1033 = vmatpush1.bf16.msra.mxu1 %v5422_v59 }
  0x8a   :  { %993 = vmatprep.subr.bf16.mxu0 %v5408_v54  ;;  %1034 = vmatprep.subr.bf16.mxu1 %v5425_v60  ;;  %v104_v54 = vlaneseq }
  0x8d   :  { %994 = vmatpush1.bf16.msra.mxu0 %v5417_v57  ;;  %1035 = vmatpush1.bf16.msra.mxu1 %v5432_v62  ;;  %v105_v57 = vshrl.u32 %v104_v54, 7 }
  0x8e   :  { %995 = vmatprep.subr.bf16.mxu0 %v5420_v58  ;;  %1036 = vmatprep.subr.bf16.mxu1 %v5435_v63  ;;  %v102_v58 = vld [vmem:[%s6270_s2] sm:$0xf] }
  0x8f   :  { %v5515_v53 = vsub.s32 0, %v105_v57  ;;  %v5520_v60 = vsub.s32 1, %v105_v57  ;;  %v5524_v62 = vsub.s32 3, %v105_v57  ;;  %v5527_v52 = vsub.s32 2, %v105_v57 }
  0x91   :  { %996 = vmatpush1.bf16.msra.mxu0 %v5429_v61  ;;  %1037 = vmatpush1.bf16.msra.mxu1 %v5443_v55  ;;  %6389 = vst [vmem:[#allocation25_spill] sm:$0xff] %v5515_v53  ;;  %6390 = vst [vmem:[#allocation26_spill] sm:$0xff] %v5520_v60  ;;  %v107_v61 = vrot.slane %v102_v58, %v5515_v53  ;;  %v119_v0 = vrot.slane %v102_v58, %v5524_v62 }
  0x92   :  { %1486 = vmatprep.subr.bf16.mxu0 %v5254_v1  ;;  %1527 = vmatprep.subr.bf16.mxu1 %v5267_v6  ;;  %v111_v1 = vrot.slane %v102_v58, %v5520_v60  ;;  %v115_v44 = vrot.slane %v102_v58, %v5527_v52 }
 0x127   :  { %v478_v63 = vpop.f32.mrb[0].mxu0  ;;  %v519_v46 = vpop.f32.mrb[0].mxu1 }
 0x128   :  { %v479_v55 = vadd.f32 %v478_v63, %v107_v61  ;;  %v480_v59 = vpop.f32.mrb[1].mxu0  ;;  %v521_v53 = vpop.f32.mrb[1].mxu1  ;;  %v520_v63 = vadd.f32 %v519_v46, %v115_v44 }
 0x129   :  { %v481_v6 = vadd.f32 %v480_v59, %v111_v1  ;;  %v482_v56 = vpop.f32.mrb[2].mxu0  ;;  %v522_v51 = vadd.f32 %v521_v53, %v119_v0  ;;  %v523_v60 = vpop.f32.mrb[2].mxu1 }
 0x12a   :  { %v4274_v54 = vmul.f32 -1.442695, %v479_v55  ;;  %v483_v50 = vpop.f32.mrb[3].mxu0  ;;  %v524_v48 = vpop.f32.mrb[3].mxu1 }
 0x12b   :  { %v4275_v49 = vmul.f32 -1.442695, %v481_v6  ;;  %v4276_v61 = vmul.f32 -1.442695, %v522_v51  ;;  %v4862_v51 = vld [vmem:[%s6268_s0 + $0x4] ss:$0 sps:$4 sm:$0xff]  }
 0x12c   :  { %5061 = vpow2.f32 %v4274_v54 }
 0x12d   :  { %5063 = vpow2.f32 %v4275_v49 }
 0x12e   :  { %5065 = vpow2.f32 %v4276_v61 }
 0x12f   :  { %5067 = vtanh.f32 %v520_v63 }
 0x136   :  { %v5062_v59 = vpop.eup %5061 }
 0x137   :  { %v5064_v55 = vpop.eup %5063  ;;  %v529_v50 = vadd.f32 1.0, %v5062_v59 }
 0x138   :  { %v535_v56 = vadd.f32 1.0, %v5064_v55  ;;  %v5066_v57 = vpop.eup %5065 }
 0x139   :  { %5069 = vrcp.f32 %v529_v50  ;;  %v5068_v1 = vpop.eup %5067  ;;  %v542_v49 = vadd.f32 1.0, %v5066_v57 }
 0x13a   :  { %5071 = vrcp.f32 %v535_v56 }
 0x13b   :  { %5073 = vrcp.f32 %v542_v49 }
 0x143   :  { %v5070_v6 = vpop.eup %5069 }
 0x144   :  { %v5072_v54 = vpop.eup %5071  ;;  %v546_v53 = vmul.f32 %v5070_v6, %v5068_v1 }
 0x145   :  { %v545_v60 = vmul.f32 0.0, %v5072_v54  ;;  %v5074_v44 = vpop.eup %5073 }
 0x147   :  { %v5530_v0 = vadd.f32 %v546_v53, %v545_v60 }
 0x149   :  { %5075 = vtanh.f32 %v5530_v0 }
 0x153   :  { %v5076_v46 = vpop.eup %5075 }
 0x154   :  { %v549_v48 = vmul.f32 %v5076_v46, %v5074_v44 }
 0x156   :  { %v558_v58 = vpack.c.bf16 %v549_v48, %v549_v48  ;;  %v4863_v48 = vld [vmem:[%s6268_s0 + $0x8] ss:$0 sps:$4 sm:$0xff]  }
 0x158   :  { %997 = vmatprep.mubr.bf16.mxu0 %v558_v58  ;;  %1038 = vmatprep.mubr.bf16.mxu1 %v558_v58  ;;  %v5618_v58 = vld [vmem:[#allocation3] ss:$16 sps:$4 sm:$0xff]  }
 0x159   :  { %998 = vmatmul.mubr.bf16.vlgmr.msra.gmra.mrb[4].mxu0 %v4862_v51  ;;  %1039 = vmatmul.mubr.bf16.vlgmr.msra.gmra.mrb[4].mxu1 %v4862_v51 }
 0x15a   :  { %1487 = vmatpush1.bf16.msra.mxu0 %v5256_v2  ;;  %1528 = vmatpush1.bf16.msra.mxu1 %v5269_v7  ;;  %v6391_v2 = vld [vmem:[#allocation8_spill] sm:$0xff] }
 0x15b   :  { %1488 = vmatprep.subr.bf16.mxu0 %v5259_v3  ;;  %1529 = vmatprep.subr.bf16.mxu1 %v5279_v10  ;;  %v6392_v3 = vld [vmem:[#allocation6_spill] sm:$0xff]  ;;  %v6395_v7 = vld [vmem:[#allocation12_spill] sm:$0xff] }
 0x15c   :  { %v6398_v10 = vld [vmem:[#allocation10_spill] sm:$0xff] }
 0x15e   :  { %1489 = vmatpush1.bf16.msra.mxu0 %v5262_v4  ;;  %1530 = vmatpush1.bf16.msra.mxu1 %v5281_v11  ;;  %v6393_v4 = vld [vmem:[#allocation11_spill] sm:$0xff]  ;;  %v6399_v11 = vld [vmem:[#allocation16_spill] sm:$0xff] }
 0x15f   :  { %1490 = vmatprep.subr.bf16.mxu0 %v5265_v5  ;;  %1531 = vmatprep.subr.bf16.mxu1 %v5289_v14  ;;  %v6394_v5 = vld [vmem:[#allocation7_spill] sm:$0xff]  ;;  %v6402_v14 = vld [vmem:[#allocation14_spill] sm:$0xff] }
 0x162   :  { %1491 = vmatpush1.bf16.msra.mxu0 %v5272_v8  ;;  %1532 = vmatpush1.bf16.msra.mxu1 %v5293_v15  ;;  %v6396_v8 = vld [vmem:[#allocation9_spill] sm:$0xff]  ;;  %v6403_v15 = vld [vmem:[#allocation20_spill] sm:$0xff] }
 0x163   :  { %1492 = vmatprep.subr.bf16.mxu0 %v5276_v9  ;;  %1533 = vmatprep.subr.bf16.mxu1 %v5296_v16  ;;  %v6397_v9 = vld [vmem:[#allocation15_spill] sm:$0xff]  ;;  %v6404_v16 = vld [vmem:[#allocation17_spill] sm:$0xff] }
 0x166   :  { %1493 = vmatpush1.bf16.msra.mxu0 %v5285_v12  ;;  %1534 = vmatpush1.bf16.msra.mxu1 %v5305_v19  ;;  %v6400_v12 = vld [vmem:[#allocation13_spill] sm:$0xff]  ;;  %v6407_v19 = vld [vmem:[#allocation23_spill] sm:$0xff] }
 0x167   :  { %1494 = vmatprep.subr.bf16.mxu0 %v5287_v13  ;;  %1535 = vmatprep.subr.bf16.mxu1 %v5308_v20  ;;  %v6401_v13 = vld [vmem:[#allocation19_spill] sm:$0xff]  ;;  %v6408_v20 = vld [vmem:[#allocation21_spill] sm:$0xff] }
 0x16a   :  { %1495 = vmatpush1.bf16.msra.mxu0 %v5299_v17  ;;  %1536 = vmatpush1.bf16.msra.mxu1 %v5317_v23  ;;  %v6405_v17 = vld [vmem:[#allocation22_spill] sm:$0xff]  ;;  %v5601_v23 = vld [vmem:[#allocation3 + $0xc] ss:$16 sps:$4 sm:$0xff]  }
 0x16b   :  { %1496 = vmatprep.subr.bf16.mxu0 %v5302_v18  ;;  %1537 = vmatprep.subr.bf16.mxu1 %v5320_v24  ;;  %v6406_v18 = vld [vmem:[#allocation18_spill] sm:$0xff]  ;;  %6411 = vst [vmem:[#allocation6_spill] sm:$0xff] %v5601_v23 }
 0x16c   :  { %v623_v24 = vld [vmem:[%s6270_s2] sm:$0xf] }
 0x16e   :  { %1497 = vmatpush1.bf16.msra.mxu0 %v5311_v21  ;;  %1538 = vmatpush1.bf16.msra.mxu1 %v5329_v27  ;;  %v6409_v21 = vld [vmem:[#allocation24_spill] sm:$0xff]  ;;  %v6413_v27 = vld [vmem:[#allocation26_spill] sm:$0xff] }
 0x16f   :  { %1498 = vmatprep.subr.bf16.mxu0 %v5313_v22  ;;  %1539 = vmatprep.subr.bf16.mxu1 %v5332_v28  ;;  %v5598_v22 = vld [vmem:[#allocation3 + $0x4] ss:$16 sps:$4 sm:$0xff]   ;;  %v632_v28 = vrot.slane %v623_v24, %v6413_v27 }
 0x170   :  { %6410 = vst [vmem:[#allocation8_spill] sm:$0xff] %v5598_v22 }
 0x172   :  { %1499 = vmatpush1.bf16.msra.mxu0 %v5323_v25  ;;  %1540 = vmatpush1.bf16.msra.mxu1 %v5341_v31  ;;  %v6412_v25 = vld [vmem:[#allocation25_spill] sm:$0xff] }
 0x173   :  { %1500 = vmatprep.subr.bf16.mxu0 %v5326_v26  ;;  %1541 = vmatprep.subr.bf16.mxu1 %v5344_v32  ;;  %v628_v26 = vrot.slane %v623_v24, %v6412_v25 }
 0x176   :  { %1501 = vmatpush1.bf16.msra.mxu0 %v5335_v29  ;;  %1542 = vmatpush1.bf16.msra.mxu1 %v5353_v35 }
 0x177   :  { %1502 = vmatprep.subr.bf16.mxu0 %v5337_v30  ;;  %1543 = vmatprep.subr.bf16.mxu1 %v5356_v36 }
 0x17a   :  { %1503 = vmatpush1.bf16.msra.mxu0 %v5347_v33  ;;  %1544 = vmatpush1.bf16.msra.mxu1 %v5365_v39  ;;  %v640_v39 = vrot.slane %v623_v24, %v5524_v62 }
 0x17b   :  { %1504 = vmatprep.subr.bf16.mxu0 %v5350_v34  ;;  %1545 = vmatprep.subr.bf16.mxu1 %v5368_v40 }
 0x17e   :  { %1505 = vmatpush1.bf16.msra.mxu0 %v5359_v37  ;;  %1546 = vmatpush1.bf16.msra.mxu1 %v5377_v43  ;;  %v636_v43 = vrot.slane %v623_v24, %v5527_v52  ;;  %v5680_v24 = vld [vmem:[#allocation3 + $0x8c] ss:$16 sps:$4 sm:$0xff]  }
 0x17f   :  { %1506 = vmatprep.subr.bf16.mxu0 %v5361_v38  ;;  %1547 = vmatprep.subr.bf16.mxu1 %v5382_v45 }
 0x182   :  { %1507 = vmatpush1.bf16.msra.mxu0 %v5371_v41  ;;  %1548 = vmatpush1.bf16.msra.mxu1 %v5387_v47 }
 0x183   :  { %1508 = vmatprep.subr.bf16.mxu0 %v5374_v42  ;;  %1549 = vmatprep.subr.bf16.mxu1 %v6391_v2  ;;  %v5620_v2 = vld [vmem:[#allocation3 + $0x8] ss:$16 sps:$4 sm:$0xff]  }
 0x186   :  { %1509 = vmatpush1.bf16.msra.mxu0 %v6392_v3  ;;  %1550 = vmatpush1.bf16.msra.mxu1 %v6393_v4  ;;  %v5622_v3 = vld [vmem:[#allocation3 + $0x24] ss:$16 sps:$4 sm:$0xff]  }
 0x187   :  { %1510 = vmatprep.subr.bf16.mxu0 %v6394_v5  ;;  %1551 = vmatprep.subr.bf16.mxu1 %v6395_v7  ;;  %v5629_v4 = vld [vmem:[#allocation3 + $0x44] ss:$16 sps:$4 sm:$0xff]   ;;  %v5632_v5 = vld [vmem:[#allocation3 + $0x40] ss:$16 sps:$4 sm:$0xff]  }
 0x188   :  { %v5635_v7 = vld [vmem:[#allocation3 + $0x64] ss:$16 sps:$4 sm:$0xff]  }
 0x18a   :  { %1511 = vmatpush1.bf16.msra.mxu0 %v6396_v8  ;;  %1552 = vmatpush1.bf16.msra.mxu1 %v6397_v9  ;;  %v5638_v8 = vld [vmem:[#allocation3 + $0x60] ss:$16 sps:$4 sm:$0xff]   ;;  %v5642_v9 = vld [vmem:[#allocation3 + $0x84] ss:$16 sps:$4 sm:$0xff]  }
 0x18b   :  { %1512 = vmatprep.subr.bf16.mxu0 %v6398_v10  ;;  %1553 = vmatprep.subr.bf16.mxu1 %v6399_v11  ;;  %v5644_v10 = vld [vmem:[#allocation3 + $0x2c] ss:$16 sps:$4 sm:$0xff]   ;;  %v5646_v11 = vld [vmem:[#allocation3 + $0x80] ss:$16 sps:$4 sm:$0xff]  }
 0x18e   :  { %1513 = vmatpush1.bf16.msra.mxu0 %v6400_v12  ;;  %1554 = vmatpush1.bf16.msra.mxu1 %v6401_v13  ;;  %v5648_v12 = vld [vmem:[#allocation3 + $0x28] ss:$16 sps:$4 sm:$0xff]   ;;  %v5654_v13 = vld [vmem:[#allocation3 + $0xa4] ss:$16 sps:$4 sm:$0xff]  }
 0x18f   :  { %1514 = vmatprep.subr.bf16.mxu0 %v6402_v14  ;;  %1555 = vmatprep.subr.bf16.mxu1 %v6403_v15  ;;  %v5656_v14 = vld [vmem:[#allocation3 + $0x4c] ss:$16 sps:$4 sm:$0xff]   ;;  %v5658_v15 = vld [vmem:[#allocation3 + $0xa0] ss:$16 sps:$4 sm:$0xff]  }
 0x192   :  { %1515 = vmatpush1.bf16.msra.mxu0 %v6404_v16  ;;  %1556 = vmatpush1.bf16.msra.mxu1 %v6405_v17  ;;  %v5660_v16 = vld [vmem:[#allocation3 + $0x48] ss:$16 sps:$4 sm:$0xff]   ;;  %v5666_v17 = vld [vmem:[#allocation3 + $0xc4] ss:$16 sps:$4 sm:$0xff]  }
 0x193   :  { %1516 = vmatprep.subr.bf16.mxu0 %v6406_v18  ;;  %1557 = vmatprep.subr.bf16.mxu1 %v6407_v19  ;;  %v5668_v18 = vld [vmem:[#allocation3 + $0x6c] ss:$16 sps:$4 sm:$0xff]   ;;  %v5670_v19 = vld [vmem:[#allocation3 + $0xc0] ss:$16 sps:$4 sm:$0xff]  }
 0x196   :  { %1517 = vmatpush1.bf16.msra.mxu0 %v6408_v20  ;;  %1558 = vmatpush1.bf16.msra.mxu1 %v6409_v21  ;;  %v5672_v20 = vld [vmem:[#allocation3 + $0x68] ss:$16 sps:$4 sm:$0xff]   ;;  %v5678_v21 = vld [vmem:[#allocation3 + $0xe4] ss:$16 sps:$4 sm:$0xff]  }
 0x197   :  { %2007 = vmatprep.subr.bf16.mxu0 %v5598_v22  ;;  %2048 = vmatprep.subr.bf16.mxu1 %v5601_v23 }
 0x22c   :  { %v999_v29 = vpop.f32.mrb[4].mxu0  ;;  %v1040_v30 = vpop.f32.mrb[4].mxu1 }
 0x22d   :  { %v1000_v31 = vadd.f32 %v999_v29, %v628_v26  ;;  %v1001_v32 = vpop.f32.mrb[5].mxu0  ;;  %v1042_v33 = vpop.f32.mrb[5].mxu1  ;;  %v1041_v47 = vadd.f32 %v1040_v30, %v636_v43  ;;  %v5682_v26 = vld [vmem:[#allocation3 + $0xe0] ss:$16 sps:$4 sm:$0xff]   ;;  %v5690_v29 = vld [vmem:[#allocation3 + $0x104] ss:$16 sps:$4 sm:$0xff]  }
 0x22e   :  { %v1002_v34 = vadd.f32 %v1001_v32, %v632_v28  ;;  %v1003_v35 = vpop.f32.mrb[6].mxu0  ;;  %v1044_v36 = vpop.f32.mrb[6].mxu1  ;;  %v1043_v42 = vadd.f32 %v1042_v33, %v640_v39  ;;  %v5684_v28 = vld [vmem:[#allocation3 + $0x88] ss:$16 sps:$4 sm:$0xff]   ;;  %v5692_v30 = vld [vmem:[#allocation3 + $0xac] ss:$16 sps:$4 sm:$0xff]  }
 0x22f   :  { %v4342_v37 = vmul.f32 -1.442695, %v1000_v31  ;;  %v1004_v38 = vpop.f32.mrb[7].mxu0  ;;  %v1045_v40 = vpop.f32.mrb[7].mxu1  ;;  %v5694_v31 = vld [vmem:[#allocation3 + $0x100] ss:$16 sps:$4 sm:$0xff]  }
 0x230   :  { %v4343_v41 = vmul.f32 -1.442695, %v1002_v34  ;;  %v4344_v45 = vmul.f32 -1.442695, %v1043_v42  ;;  %v5696_v32 = vld [vmem:[#allocation3 + $0xa8] ss:$16 sps:$4 sm:$0xff]  }
 0x231   :  { %5077 = vpow2.f32 %v4342_v37  ;;  %v5702_v33 = vld [vmem:[#allocation3 + $0x124] ss:$16 sps:$4 sm:$0xff]   ;;  %v5704_v34 = vld [vmem:[#allocation3 + $0xcc] ss:$16 sps:$4 sm:$0xff]   ;;  %v5706_v35 = vld [vmem:[#allocation3 + $0x120] ss:$16 sps:$4 sm:$0xff]  }
 0x232   :  { %5079 = vpow2.f32 %v4343_v41  ;;  %v5708_v36 = vld [vmem:[#allocation3 + $0xc8] ss:$16 sps:$4 sm:$0xff]   ;;  %v5714_v37 = vld [vmem:[#allocation3 + $0x144] ss:$16 sps:$4 sm:$0xff]   ;;  %v5716_v38 = vld [vmem:[#allocation3 + $0xec] ss:$16 sps:$4 sm:$0xff]  }
 0x233   :  { %5081 = vpow2.f32 %v4344_v45  ;;  %v5718_v39 = vld [vmem:[#allocation3 + $0x140] ss:$16 sps:$4 sm:$0xff]   ;;  %v5720_v40 = vld [vmem:[#allocation3 + $0xe8] ss:$16 sps:$4 sm:$0xff]   ;;  %v5726_v41 = vld [vmem:[#allocation3 + $0x164] ss:$16 sps:$4 sm:$0xff]  }
 0x234   :  { %5083 = vtanh.f32 %v1041_v47  ;;  %6414 = vst [vmem:[#allocation11_spill] sm:$0xff] %v5718_v39  ;;  %6415 = vst [vmem:[#allocation7_spill] sm:$0xff] %v5726_v41  ;;  %v5728_v42 = vld [vmem:[#allocation3 + $0x10c] ss:$16 sps:$4 sm:$0xff]   ;;  %v5730_v43 = vld [vmem:[#allocation3 + $0x160] ss:$16 sps:$4 sm:$0xff]  }
 0x235   :  { %6416 = vst [vmem:[#allocation12_spill] sm:$0xff] %v5730_v43  ;;  %v5732_v45 = vld [vmem:[#allocation3 + $0x108] ss:$16 sps:$4 sm:$0xff]   ;;  %v5738_v47 = vld [vmem:[#allocation3 + $0x180] ss:$16 sps:$4 sm:$0xff]  }
 0x236   :  { %6417 = vst [vmem:[#allocation9_spill] sm:$0xff] %v5738_v47 }
 0x23b   :  { %v5078_v61 = vpop.eup %5077 }
 0x23c   :  { %v5080_v63 = vpop.eup %5079  ;;  %v1050_v59 = vadd.f32 1.0, %v5078_v61  ;;  %v5740_v61 = vld [vmem:[#allocation3 + $0x184] ss:$16 sps:$4 sm:$0xff]  }
 0x23d   :  { %v1056_v55 = vadd.f32 1.0, %v5080_v63  ;;  %v5082_v50 = vpop.eup %5081  ;;  %6418 = vst [vmem:[#allocation15_spill] sm:$0xff] %v5740_v61  ;;  %v5742_v63 = vld [vmem:[#allocation3 + $0x128] ss:$16 sps:$4 sm:$0xff]  }
 0x23e   :  { %5085 = vrcp.f32 %v1050_v59  ;;  %v5084_v56 = vpop.eup %5083  ;;  %v1063_v1 = vadd.f32 1.0, %v5082_v50  ;;  %v5744_v59 = vld [vmem:[#allocation3 + $0x12c] ss:$16 sps:$4 sm:$0xff]  }
 0x23f   :  { %5087 = vrcp.f32 %v1056_v55  ;;  %v5746_v55 = vld [vmem:[#allocation3 + $0x1a4] ss:$16 sps:$4 sm:$0xff]   ;;  %v5749_v50 = vld [vmem:[#allocation3 + $0x14c] ss:$16 sps:$4 sm:$0xff]  }
 0x240   :  { %5089 = vrcp.f32 %v1063_v1  ;;  %6419 = vst [vmem:[#allocation10_spill] sm:$0xff] %v5746_v55  ;;  %v5759_v1 = vld [vmem:[#allocation3 + $0x1c4] ss:$16 sps:$4 sm:$0xff]  }
 0x241   :  { %6422 = vst [vmem:[#allocation19_spill] sm:$0xff] %v5759_v1 }
 0x248   :  { %v5086_v57 = vpop.eup %5085 }
 0x249   :  { %v5088_v6 = vpop.eup %5087  ;;  %v1067_v49 = vmul.f32 %v5086_v57, %v5084_v56  ;;  %v5753_v56 = vld [vmem:[#allocation3 + $0x1a0] ss:$16 sps:$4 sm:$0xff]   ;;  %v5757_v57 = vld [vmem:[#allocation3 + $0x148] ss:$16 sps:$4 sm:$0xff]  }
 0x24a   :  { %v1066_v54 = vmul.f32 %v5088_v6, %v5530_v0  ;;  %v5090_v60 = vpop.eup %5089  ;;  %v5625_v0 = vld [vmem:[#allocation3 + $0x20] ss:$16 sps:$4 sm:$0xff]   ;;  %6420 = vst [vmem:[#allocation16_spill] sm:$0xff] %v5753_v56  ;;  %6421 = vst [vmem:[#allocation13_spill] sm:$0xff] %v5757_v57  ;;  %v5762_v6 = vld [vmem:[#allocation3 + $0x16c] ss:$16 sps:$4 sm:$0xff]  }
 0x24b   :  { %6423 = vst [vmem:[#allocation14_spill] sm:$0xff] %v5762_v6 }
 0x24c   :  { %v5612_v53 = vadd.f32 %v1067_v49, %v1066_v54  ;;  %v5765_v49 = vld [vmem:[#allocation3 + $0x1c0] ss:$16 sps:$4 sm:$0xff]   ;;  %v5769_v54 = vld [vmem:[#allocation3 + $0x168] ss:$16 sps:$4 sm:$0xff]  }
 0x24d   :  { %6424 = vst [vmem:[#allocation20_spill] sm:$0xff] %v5765_v49  ;;  %6425 = vst [vmem:[#allocation17_spill] sm:$0xff] %v5769_v54 }
 0x24e   :  { %5091 = vtanh.f32 %v5612_v53 }
 0x258   :  { %v5092_v44 = vpop.eup %5091 }
 0x259   :  { %v1070_v46 = vmul.f32 %v5092_v44, %v5090_v60  ;;  %v5771_v60 = vld [vmem:[#allocation3 + $0x1e4] ss:$16 sps:$4 sm:$0xff]   ;;  %v5774_v44 = vld [vmem:[#allocation3 + $0x18c] ss:$16 sps:$4 sm:$0xff]  }
 0x25a   :  { %6426 = vst [vmem:[#allocation22_spill] sm:$0xff] %v5771_v60  ;;  %6427 = vst [vmem:[#allocation18_spill] sm:$0xff] %v5774_v44 }
 0x25b   :  { %v1079_v51 = vpack.c.bf16 %v1070_v46, %v1070_v46  ;;  %v5777_v46 = vld [vmem:[#allocation3 + $0x1e0] ss:$16 sps:$4 sm:$0xff]  }
 0x25c   :  { %6428 = vst [vmem:[#allocation23_spill] sm:$0xff] %v5777_v46 }
 0x25d   :  { %1518 = vmatprep.mubr.bf16.mxu0 %v1079_v51  ;;  %1559 = vmatprep.mubr.bf16.mxu1 %v1079_v51  ;;  %v5786_v51 = vld [vmem:[#allocation3 + $0x1ac] ss:$16 sps:$4 sm:$0xff]  }
 0x25e   :  { %1519 = vmatmul.mubr.bf16.vlgmr.msra.gmra.mrb[8].mxu0 %v4863_v48  ;;  %1560 = vmatmul.mubr.bf16.vlgmr.msra.gmra.mrb[8].mxu1 %v4863_v48  ;;  %v5781_v48 = vld [vmem:[#allocation3 + $0x188] ss:$16 sps:$4 sm:$0xff]   ;;  %6430 = vst [vmem:[#allocation24_spill] sm:$0xff] %v5786_v51 }
 0x25f   :  { %2008 = vmatpush1.bf16.msra.mxu0 %v5618_v58  ;;  %2049 = vmatpush1.bf16.msra.mxu1 %v5620_v2  ;;  %6429 = vst [vmem:[#allocation21_spill] sm:$0xff] %v5781_v48 }
 0x260   :  { %2009 = vmatprep.subr.bf16.mxu0 %v5622_v3  ;;  %2050 = vmatprep.subr.bf16.mxu1 %v5644_v10 }
 0x263   :  { %2010 = vmatpush1.bf16.msra.mxu0 %v5625_v0  ;;  %2051 = vmatpush1.bf16.msra.mxu1 %v5648_v12 }
 0x264   :  { %2011 = vmatprep.subr.bf16.mxu0 %v5629_v4  ;;  %2052 = vmatprep.subr.bf16.mxu1 %v5656_v14 }
 0x267   :  { %2012 = vmatpush1.bf16.msra.mxu0 %v5632_v5  ;;  %2053 = vmatpush1.bf16.msra.mxu1 %v5660_v16 }
 0x268   :  { %2013 = vmatprep.subr.bf16.mxu0 %v5635_v7  ;;  %2054 = vmatprep.subr.bf16.mxu1 %v5668_v18 }
 0x26b   :  { %2014 = vmatpush1.bf16.msra.mxu0 %v5638_v8  ;;  %2055 = vmatpush1.bf16.msra.mxu1 %v5672_v20 }
 0x26c   :  { %2015 = vmatprep.subr.bf16.mxu0 %v5642_v9  ;;  %2056 = vmatprep.subr.bf16.mxu1 %v5680_v24 }
 0x26f   :  { %2016 = vmatpush1.bf16.msra.mxu0 %v5646_v11  ;;  %2057 = vmatpush1.bf16.msra.mxu1 %v5684_v28 }
 0x270   :  { %2017 = vmatprep.subr.bf16.mxu0 %v5654_v13  ;;  %2058 = vmatprep.subr.bf16.mxu1 %v5692_v30 }
 0x273   :  { %2018 = vmatpush1.bf16.msra.mxu0 %v5658_v15  ;;  %2059 = vmatpush1.bf16.msra.mxu1 %v5696_v32 }
 0x274   :  { %2019 = vmatprep.subr.bf16.mxu0 %v5666_v17  ;;  %2060 = vmatprep.subr.bf16.mxu1 %v5704_v34 }
 0x277   :  { %2020 = vmatpush1.bf16.msra.mxu0 %v5670_v19  ;;  %2061 = vmatpush1.bf16.msra.mxu1 %v5708_v36 }
 0x278   :  { %2021 = vmatprep.subr.bf16.mxu0 %v5678_v21  ;;  %2062 = vmatprep.subr.bf16.mxu1 %v5716_v38 }
 0x27b   :  { %2022 = vmatpush1.bf16.msra.mxu0 %v5682_v26  ;;  %2063 = vmatpush1.bf16.msra.mxu1 %v5720_v40 }
 0x27c   :  { %2023 = vmatprep.subr.bf16.mxu0 %v5690_v29  ;;  %2064 = vmatprep.subr.bf16.mxu1 %v5728_v42 }
 0x27f   :  { %2024 = vmatpush1.bf16.msra.mxu0 %v5694_v31  ;;  %2065 = vmatpush1.bf16.msra.mxu1 %v5732_v45 }
 0x280   :  { %2025 = vmatprep.subr.bf16.mxu0 %v5702_v33  ;;  %2066 = vmatprep.subr.bf16.mxu1 %v5744_v59 }
 0x283   :  { %2026 = vmatpush1.bf16.msra.mxu0 %v5706_v35  ;;  %2067 = vmatpush1.bf16.msra.mxu1 %v5742_v63 }
 0x284   :  { %2027 = vmatprep.subr.bf16.mxu0 %v5714_v37  ;;  %2068 = vmatprep.subr.bf16.mxu1 %v5749_v50 }
 0x287   :  { %2028 = vmatpush1.bf16.msra.mxu0 %v5718_v39  ;;  %2069 = vmatpush1.bf16.msra.mxu1 %v5757_v57 }
 0x288   :  { %2029 = vmatprep.subr.bf16.mxu0 %v5726_v41  ;;  %2070 = vmatprep.subr.bf16.mxu1 %v5762_v6 }
 0x28b   :  { %2030 = vmatpush1.bf16.msra.mxu0 %v5730_v43  ;;  %2071 = vmatpush1.bf16.msra.mxu1 %v5769_v54 }
 0x28c   :  { %2031 = vmatprep.subr.bf16.mxu0 %v5740_v61  ;;  %2072 = vmatprep.subr.bf16.mxu1 %v5774_v44 }
 0x28f   :  { %2032 = vmatpush1.bf16.msra.mxu0 %v5738_v47  ;;  %2073 = vmatpush1.bf16.msra.mxu1 %v5781_v48 }
 0x290   :  { %2033 = vmatprep.subr.bf16.mxu0 %v5746_v55  ;;  %2074 = vmatprep.subr.bf16.mxu1 %v5786_v51 }
 0x293   :  { %2034 = vmatpush1.bf16.msra.mxu0 %v5753_v56  ;;  %v5798_v56 = vld [vmem:[#allocation3 + $0x1ec] ss:$16 sps:$4 sm:$0xff]  }
 0x294   :  { %2035 = vmatprep.subr.bf16.mxu0 %v5759_v1  ;;  %v5789_v1 = vld [vmem:[#allocation3 + $0x1a8] ss:$16 sps:$4 sm:$0xff]   ;;  %6434 = vst [vmem:[#allocation30_spill] sm:$0xff] %v5798_v56 }
 0x295   :  { %6431 = vst [vmem:[#allocation27_spill] sm:$0xff] %v5789_v1  ;;  %2075 = vmatpush1.bf16.msra.mxu1 %v5789_v1 }
 0x297   :  { %2036 = vmatpush1.bf16.msra.mxu0 %v5765_v49  ;;  %v5792_v49 = vld [vmem:[#allocation3 + $0x1cc] ss:$16 sps:$4 sm:$0xff]  }
 0x298   :  { %2037 = vmatprep.subr.bf16.mxu0 %v5771_v60  ;;  %6432 = vst [vmem:[#allocation28_spill] sm:$0xff] %v5792_v49  ;;  %v5795_v60 = vld [vmem:[#allocation3 + $0x1c8] ss:$16 sps:$4 sm:$0xff]   ;;  %2076 = vmatprep.subr.bf16.mxu1 %v5792_v49 }
 0x299   :  { %6433 = vst [vmem:[#allocation29_spill] sm:$0xff] %v5795_v60  ;;  %2077 = vmatpush1.bf16.msra.mxu1 %v5795_v60 }
 0x29a   :  { %2078 = vmatprep.subr.bf16.mxu1 %v5798_v56 }
 0x29b   :  { %2038 = vmatpush1.bf16.msra.mxu0 %v5777_v46  ;;  %v5801_v46 = vld [vmem:[#allocation3 + $0x1e8] ss:$16 sps:$4 sm:$0xff]  }
 0x29c   :  { %2528 = vmatprep.subr.bf16.mxu0 %v5598_v22  ;;  %6435 = vst [vmem:[#allocation31_spill] sm:$0xff] %v5801_v46  ;;  %v1144_v22 = vld [vmem:[%s6270_s2] sm:$0xf] }
 0x29d   :  { %2079 = vmatpush1.bf16.msra.mxu1 %v5801_v46  ;;  %v1149_v1 = vrot.slane %v1144_v22, %v6412_v25  ;;  %v1153_v49 = vrot.slane %v1144_v22, %v6413_v27  ;;  %v1157_v25 = vrot.slane %v1144_v22, %v5527_v52 }
 0x29e   :  { %2569 = vmatprep.subr.bf16.mxu1 %v5601_v23  ;;  %v1161_v23 = vrot.slane %v1144_v22, %v5524_v62 }
 0x331   :  { %v1520_v51 = vpop.f32.mrb[8].mxu0  ;;  %v1561_v55 = vpop.f32.mrb[8].mxu1 }
 0x332   :  { %v1521_v48 = vadd.f32 %v1520_v51, %v1149_v1  ;;  %v1522_v60 = vpop.f32.mrb[9].mxu0  ;;  %v1563_v47 = vpop.f32.mrb[9].mxu1  ;;  %v1562_v57 = vadd.f32 %v1561_v55, %v1157_v25  ;;  %v6437_v55 = vld [vmem:[#allocation13_spill] sm:$0xff] }
 0x333   :  { %v1523_v44 = vadd.f32 %v1522_v60, %v1153_v49  ;;  %v1524_v61 = vpop.f32.mrb[10].mxu0  ;;  %v1565_v56 = vpop.f32.mrb[10].mxu1  ;;  %v1564_v41 = vadd.f32 %v1563_v47, %v1161_v23 }
 0x334   :  { %v4410_v54 = vmul.f32 -1.442695, %v1521_v48  ;;  %v1525_v46 = vpop.f32.mrb[11].mxu0  ;;  %v1566_v43 = vpop.f32.mrb[11].mxu1  ;;  %v6441_v48 = vld [vmem:[#allocation17_spill] sm:$0xff] }
 0x335   :  { %v4411_v6 = vmul.f32 -1.442695, %v1523_v44  ;;  %v4412_v27 = vmul.f32 -1.442695, %v1564_v41  ;;  %v6440_v46 = vld [vmem:[#allocation12_spill] sm:$0xff] }
 0x336   :  { %5093 = vpow2.f32 %v4410_v54 }
 0x337   :  { %5095 = vpow2.f32 %v4411_v6  ;;  %v6439_v6 = vld [vmem:[#allocation14_spill] sm:$0xff] }
 0x338   :  { %5097 = vpow2.f32 %v4412_v27 }
 0x339   :  { %5099 = vtanh.f32 %v1562_v57  ;;  %v6438_v57 = vld [vmem:[#allocation7_spill] sm:$0xff] }
 0x340   :  { %v5094_v39 = vpop.eup %5093 }
 0x341   :  { %v5096_v1 = vpop.eup %5095  ;;  %v1571_v51 = vadd.f32 1.0, %v5094_v39  ;;  %v4951_v39 = vld [vmem:[%s6268_s0 + $0xc] ss:$0 sps:$4 sm:$0xff]  }
 0x342   :  { %v1577_v61 = vadd.f32 1.0, %v5096_v1  ;;  %v5098_v56 = vpop.eup %5097  ;;  %v6442_v1 = vld [vmem:[#allocation15_spill] sm:$0xff] }
 0x343   :  { %5101 = vrcp.f32 %v1571_v51  ;;  %v5100_v49 = vpop.eup %5099  ;;  %v1584_v43 = vadd.f32 1.0, %v5098_v56  ;;  %v6443_v51 = vld [vmem:[#allocation18_spill] sm:$0xff]  ;;  %v6445_v56 = vld [vmem:[#allocation21_spill] sm:$0xff] }
 0x344   :  { %5103 = vrcp.f32 %v1577_v61  ;;  %v6444_v61 = vld [vmem:[#allocation9_spill] sm:$0xff] }
 0x345   :  { %5105 = vrcp.f32 %v1584_v43  ;;  %v6448_v43 = vld [vmem:[#allocation16_spill] sm:$0xff] }
 0x34d   :  { %v5102_v60 = vpop.eup %5101 }
 0x34e   :  { %v5104_v44 = vpop.eup %5103  ;;  %v1588_v54 = vmul.f32 %v5102_v60, %v5100_v49  ;;  %v6446_v49 = vld [vmem:[#allocation10_spill] sm:$0xff]  ;;  %v6447_v60 = vld [vmem:[#allocation24_spill] sm:$0xff] }
 0x34f   :  { %v1587_v23 = vmul.f32 %v5104_v44, %v5612_v53  ;;  %v5106_v22 = vpop.eup %5105  ;;  %v6436_v53 = vld [vmem:[#allocation11_spill] sm:$0xff] }
 0x350   :  { %v6449_v44 = vld [vmem:[#allocation27_spill] sm:$0xff] }
 0x351   :  { %v5814_v47 = vadd.f32 %v1588_v54, %v1587_v23  ;;  %v6450_v54 = vld [vmem:[#allocation19_spill] sm:$0xff]  ;;  %v6451_v23 = vld [vmem:[#allocation28_spill] sm:$0xff] }
 0x353   :  { %5107 = vtanh.f32 %v5814_v47 }
 0x35d   :  { %v5108_v25 = vpop.eup %5107 }
 0x35e   :  { %v1591_v27 = vmul.f32 %v5108_v25, %v5106_v22  ;;  %v6452_v22 = vld [vmem:[#allocation20_spill] sm:$0xff]  ;;  %v6453_v25 = vld [vmem:[#allocation29_spill] sm:$0xff] }
 0x360   :  { %v1600_v41 = vpack.c.bf16 %v1591_v27, %v1591_v27  ;;  %v6454_v27 = vld [vmem:[#allocation22_spill] sm:$0xff] }
 0x362   :  { %2039 = vmatprep.mubr.bf16.mxu0 %v1600_v41  ;;  %2080 = vmatprep.mubr.bf16.mxu1 %v1600_v41  ;;  %v6456_v41 = vld [vmem:[#allocation23_spill] sm:$0xff] }
 0x363   :  { %2040 = vmatmul.mubr.bf16.vlgmr.msra.gmra.mrb[12].mxu0 %v4951_v39  ;;  %2081 = vmatmul.mubr.bf16.vlgmr.msra.gmra.mrb[12].mxu1 %v4951_v39  ;;  %v6455_v39 = vld [vmem:[#allocation30_spill] sm:$0xff] }
 0x364   :  { %2529 = vmatpush1.bf16.msra.mxu0 %v5618_v58  ;;  %2570 = vmatpush1.bf16.msra.mxu1 %v5620_v2 }
 0x365   :  { %2530 = vmatprep.subr.bf16.mxu0 %v5622_v3  ;;  %2571 = vmatprep.subr.bf16.mxu1 %v5644_v10 }
 0x368   :  { %2531 = vmatpush1.bf16.msra.mxu0 %v5625_v0  ;;  %2572 = vmatpush1.bf16.msra.mxu1 %v5648_v12 }
 0x369   :  { %2532 = vmatprep.subr.bf16.mxu0 %v5629_v4  ;;  %2573 = vmatprep.subr.bf16.mxu1 %v5656_v14 }
 0x36c   :  { %2533 = vmatpush1.bf16.msra.mxu0 %v5632_v5  ;;  %2574 = vmatpush1.bf16.msra.mxu1 %v5660_v16 }
 0x36d   :  { %2534 = vmatprep.subr.bf16.mxu0 %v5635_v7  ;;  %2575 = vmatprep.subr.bf16.mxu1 %v5668_v18 }
 0x370   :  { %2535 = vmatpush1.bf16.msra.mxu0 %v5638_v8  ;;  %2576 = vmatpush1.bf16.msra.mxu1 %v5672_v20 }
 0x371   :  { %2536 = vmatprep.subr.bf16.mxu0 %v5642_v9  ;;  %2577 = vmatprep.subr.bf16.mxu1 %v5680_v24 }
 0x374   :  { %2537 = vmatpush1.bf16.msra.mxu0 %v5646_v11  ;;  %2578 = vmatpush1.bf16.msra.mxu1 %v5684_v28 }
 0x375   :  { %2538 = vmatprep.subr.bf16.mxu0 %v5654_v13  ;;  %2579 = vmatprep.subr.bf16.mxu1 %v5692_v30 }
 0x378   :  { %2539 = vmatpush1.bf16.msra.mxu0 %v5658_v15  ;;  %2580 = vmatpush1.bf16.msra.mxu1 %v5696_v32 }
 0x379   :  { %2540 = vmatprep.subr.bf16.mxu0 %v5666_v17  ;;  %2581 = vmatprep.subr.bf16.mxu1 %v5704_v34 }
 0x37c   :  { %2541 = vmatpush1.bf16.msra.mxu0 %v5670_v19  ;;  %2582 = vmatpush1.bf16.msra.mxu1 %v5708_v36 }
 0x37d   :  { %2542 = vmatprep.subr.bf16.mxu0 %v5678_v21  ;;  %2583 = vmatprep.subr.bf16.mxu1 %v5716_v38 }
 0x380   :  { %2543 = vmatpush1.bf16.msra.mxu0 %v5682_v26  ;;  %2584 = vmatpush1.bf16.msra.mxu1 %v5720_v40 }
 0x381   :  { %2544 = vmatprep.subr.bf16.mxu0 %v5690_v29  ;;  %2585 = vmatprep.subr.bf16.mxu1 %v5728_v42 }
 0x384   :  { %2545 = vmatpush1.bf16.msra.mxu0 %v5694_v31  ;;  %2586 = vmatpush1.bf16.msra.mxu1 %v5732_v45 }
 0x385   :  { %2546 = vmatprep.subr.bf16.mxu0 %v5702_v33  ;;  %2587 = vmatprep.subr.bf16.mxu1 %v5744_v59 }
 0x388   :  { %2547 = vmatpush1.bf16.msra.mxu0 %v5706_v35  ;;  %2588 = vmatpush1.bf16.msra.mxu1 %v5742_v63 }
 0x389   :  { %2548 = vmatprep.subr.bf16.mxu0 %v5714_v37  ;;  %2589 = vmatprep.subr.bf16.mxu1 %v5749_v50 }
 0x38c   :  { %2549 = vmatpush1.bf16.msra.mxu0 %v6436_v53  ;;  %2590 = vmatpush1.bf16.msra.mxu1 %v6437_v55 }
 0x38d   :  { %2550 = vmatprep.subr.bf16.mxu0 %v6438_v57  ;;  %2591 = vmatprep.subr.bf16.mxu1 %v6439_v6 }
 0x390   :  { %2551 = vmatpush1.bf16.msra.mxu0 %v6440_v46  ;;  %2592 = vmatpush1.bf16.msra.mxu1 %v6441_v48 }
 0x391   :  { %2552 = vmatprep.subr.bf16.mxu0 %v6442_v1  ;;  %2593 = vmatprep.subr.bf16.mxu1 %v6443_v51 }
 0x394   :  { %2553 = vmatpush1.bf16.msra.mxu0 %v6444_v61  ;;  %2594 = vmatpush1.bf16.msra.mxu1 %v6445_v56 }
 0x395   :  { %2554 = vmatprep.subr.bf16.mxu0 %v6446_v49  ;;  %2595 = vmatprep.subr.bf16.mxu1 %v6447_v60  ;;  %v6457_v49 = vld [vmem:[#allocation31_spill] sm:$0xff]  ;;  %v6458_v60 = vld [vmem:[#allocation8_spill] sm:$0xff] }
 0x398   :  { %2555 = vmatpush1.bf16.msra.mxu0 %v6448_v43  ;;  %2596 = vmatpush1.bf16.msra.mxu1 %v6449_v44  ;;  %v6459_v43 = vld [vmem:[#allocation6_spill] sm:$0xff] }
 0x399   :  { %2556 = vmatprep.subr.bf16.mxu0 %v6450_v54  ;;  %2597 = vmatprep.subr.bf16.mxu1 %v6451_v23  ;;  %v1665_v23 = vld [vmem:[%s6270_s2] sm:$0xf]  ;;  %v6460_v54 = vld [vmem:[#allocation25_spill] sm:$0xff] }
 0x39a   :  { %v6461_v44 = vld [vmem:[#allocation26_spill] sm:$0xff] }
 0x39c   :  { %2557 = vmatpush1.bf16.msra.mxu0 %v6452_v22  ;;  %2598 = vmatpush1.bf16.msra.mxu1 %v6453_v25  ;;  %v1670_v22 = vrot.slane %v1665_v23, %v6460_v54  ;;  %v1674_v25 = vrot.slane %v1665_v23, %v6461_v44  ;;  %v1678_v54 = vrot.slane %v1665_v23, %v5527_v52 }
 0x39d   :  { %2558 = vmatprep.subr.bf16.mxu0 %v6454_v27  ;;  %2599 = vmatprep.subr.bf16.mxu1 %v6455_v39 }
 0x3a0   :  { %2559 = vmatpush1.bf16.msra.mxu0 %v6456_v41  ;;  %2600 = vmatpush1.bf16.msra.mxu1 %v6457_v49 }
 0x3a1   :  { %3049 = vmatprep.subr.bf16.mxu0 %v6458_v60  ;;  %3090 = vmatprep.subr.bf16.mxu1 %v6459_v43  ;;  %v1682_v43 = vrot.slane %v1665_v23, %v5524_v62 }
 0x436   :  { %v2041_v56 = vpop.f32.mrb[12].mxu0  ;;  %v2082_v27 = vpop.f32.mrb[12].mxu1 }
 0x437   :  { %v2042_v61 = vadd.f32 %v2041_v56, %v1670_v22  ;;  %v2043_v39 = vpop.f32.mrb[13].mxu0  ;;  %v2084_v51 = vpop.f32.mrb[13].mxu1  ;;  %v2083_v55 = vadd.f32 %v2082_v27, %v1678_v54 }
 0x438   :  { %v2044_v41 = vadd.f32 %v2043_v39, %v1674_v25  ;;  %v2045_v1 = vpop.f32.mrb[14].mxu0  ;;  %v2086_v49 = vpop.f32.mrb[14].mxu1  ;;  %v2085_v57 = vadd.f32 %v2084_v51, %v1682_v43 }
 0x439   :  { %v4478_v48 = vmul.f32 -1.442695, %v2042_v61  ;;  %v2046_v60 = vpop.f32.mrb[15].mxu0  ;;  %v2087_v46 = vpop.f32.mrb[15].mxu1 }
 0x43a   :  { %v4479_v6 = vmul.f32 -1.442695, %v2044_v41  ;;  %v4480_v44 = vmul.f32 -1.442695, %v2085_v57 }
 0x43b   :  { %5109 = vpow2.f32 %v4478_v48 }
 0x43c   :  { %5111 = vpow2.f32 %v4479_v6 }
 0x43d   :  { %5113 = vpow2.f32 %v4480_v44 }
 0x43e   :  { %5115 = vtanh.f32 %v2083_v55  ;;  %v4961_v55 = vld [vmem:[%s6268_s0 + $0x10] ss:$0 sps:$4 sm:$0xff]  }
 0x445   :  { %v5110_v53 = vpop.eup %5109 }
 0x446   :  { %v5112_v56 = vpop.eup %5111  ;;  %v2092_v22 = vadd.f32 1.0, %v5110_v53 }
 0x447   :  { %v2098_v1 = vadd.f32 1.0, %v5112_v56  ;;  %v5114_v61 = vpop.eup %5113 }
 0x448   :  { %5117 = vrcp.f32 %v2092_v22  ;;  %v5116_v49 = vpop.eup %5115  ;;  %v2105_v46 = vadd.f32 1.0, %v5114_v61 }
 0x449   :  { %5119 = vrcp.f32 %v2098_v1 }
 0x44a   :  { %5121 = vrcp.f32 %v2105_v46 }
 0x452   :  { %v5118_v25 = vpop.eup %5117 }
 0x453   :  { %v5120_v39 = vpop.eup %5119  ;;  %v2109_v48 = vmul.f32 %v5118_v25, %v5116_v49 }
 0x454   :  { %v2108_v6 = vmul.f32 %v5120_v39, %v5814_v47  ;;  %v5122_v57 = vpop.eup %5121 }
 0x456   :  { %v5892_v51 = vadd.f32 %v2109_v48, %v2108_v6 }
 0x458   :  { %5123 = vtanh.f32 %v5892_v51 }
 0x462   :  { %v5124_v44 = vpop.eup %5123 }
 0x463   :  { %v2112_v53 = vmul.f32 %v5124_v44, %v5122_v57 }
 0x465   :  { %v2121_v54 = vpack.c.bf16 %v2112_v53, %v2112_v53 }
 0x467   :  { %2560 = vmatprep.mubr.bf16.mxu0 %v2121_v54  ;;  %2601 = vmatprep.mubr.bf16.mxu1 %v2121_v54 }
 0x468   :  { %2561 = vmatmul.mubr.bf16.vlgmr.msra.gmra.mrb[16].mxu0 %v4961_v55  ;;  %2602 = vmatmul.mubr.bf16.vlgmr.msra.gmra.mrb[16].mxu1 %v4961_v55 }
 0x469   :  { %3050 = vmatpush1.bf16.msra.mxu0 %v5618_v58  ;;  %3091 = vmatpush1.bf16.msra.mxu1 %v5620_v2  ;;  %v6462_v58 = vld [vmem:[#allocation11_spill] sm:$0xff]  ;;  %v6463_v2 = vld [vmem:[#allocation13_spill] sm:$0xff] }
 0x46a   :  { %3051 = vmatprep.subr.bf16.mxu0 %v5622_v3  ;;  %3092 = vmatprep.subr.bf16.mxu1 %v5644_v10  ;;  %v6464_v3 = vld [vmem:[#allocation7_spill] sm:$0xff]  ;;  %v6471_v10 = vld [vmem:[#allocation21_spill] sm:$0xff] }
 0x46d   :  { %3052 = vmatpush1.bf16.msra.mxu0 %v5625_v0  ;;  %3093 = vmatpush1.bf16.msra.mxu1 %v5648_v12  ;;  %v6465_v0 = vld [vmem:[#allocation14_spill] sm:$0xff]  ;;  %v6473_v12 = vld [vmem:[#allocation24_spill] sm:$0xff] }
 0x46e   :  { %3053 = vmatprep.subr.bf16.mxu0 %v5629_v4  ;;  %3094 = vmatprep.subr.bf16.mxu1 %v5656_v14  ;;  %v6466_v4 = vld [vmem:[#allocation12_spill] sm:$0xff]  ;;  %v6475_v14 = vld [vmem:[#allocation27_spill] sm:$0xff] }
 0x471   :  { %3054 = vmatpush1.bf16.msra.mxu0 %v5632_v5  ;;  %3095 = vmatpush1.bf16.msra.mxu1 %v5660_v16  ;;  %v6467_v5 = vld [vmem:[#allocation17_spill] sm:$0xff]  ;;  %v6477_v16 = vld [vmem:[#allocation28_spill] sm:$0xff] }
 0x472   :  { %3055 = vmatprep.subr.bf16.mxu0 %v5635_v7  ;;  %3096 = vmatprep.subr.bf16.mxu1 %v5668_v18  ;;  %v6468_v7 = vld [vmem:[#allocation15_spill] sm:$0xff]  ;;  %v6479_v18 = vld [vmem:[#allocation29_spill] sm:$0xff] }
 0x475   :  { %3056 = vmatpush1.bf16.msra.mxu0 %v5638_v8  ;;  %3097 = vmatpush1.bf16.msra.mxu1 %v5672_v20  ;;  %v6469_v8 = vld [vmem:[#allocation18_spill] sm:$0xff] }
 0x476   :  { %3057 = vmatprep.subr.bf16.mxu0 %v5642_v9  ;;  %3098 = vmatprep.subr.bf16.mxu1 %v5680_v24  ;;  %v6470_v9 = vld [vmem:[#allocation9_spill] sm:$0xff]  ;;  %v6481_v20 = vld [vmem:[#allocation30_spill] sm:$0xff]  ;;  %v6483_v24 = vld [vmem:[#allocation31_spill] sm:$0xff] }
 0x479   :  { %3058 = vmatpush1.bf16.msra.mxu0 %v5646_v11  ;;  %3099 = vmatpush1.bf16.msra.mxu1 %v5684_v28  ;;  %v6472_v11 = vld [vmem:[#allocation10_spill] sm:$0xff]  ;;  %v5963_v28 = vld [vmem:[#allocation3 + $0xc] ss:$16 sps:$4 sm:$0xff]  }
 0x47a   :  { %3059 = vmatprep.subr.bf16.mxu0 %v5654_v13  ;;  %3100 = vmatprep.subr.bf16.mxu1 %v5692_v30  ;;  %v6474_v13 = vld [vmem:[#allocation16_spill] sm:$0xff]  ;;  %v6484_v30 = vld [vmem:[#allocation25_spill] sm:$0xff] }
 0x47d   :  { %3060 = vmatpush1.bf16.msra.mxu0 %v5658_v15  ;;  %3101 = vmatpush1.bf16.msra.mxu1 %v5696_v32  ;;  %v6476_v15 = vld [vmem:[#allocation19_spill] sm:$0xff]  ;;  %v6485_v32 = vld [vmem:[#allocation26_spill] sm:$0xff] }
 0x47e   :  { %3061 = vmatprep.subr.bf16.mxu0 %v5666_v17  ;;  %3102 = vmatprep.subr.bf16.mxu1 %v5704_v34  ;;  %v6478_v17 = vld [vmem:[#allocation20_spill] sm:$0xff] }
 0x481   :  { %3062 = vmatpush1.bf16.msra.mxu0 %v5670_v19  ;;  %3103 = vmatpush1.bf16.msra.mxu1 %v5708_v36  ;;  %v6480_v19 = vld [vmem:[#allocation22_spill] sm:$0xff] }
 0x482   :  { %3063 = vmatprep.subr.bf16.mxu0 %v5678_v21  ;;  %3104 = vmatprep.subr.bf16.mxu1 %v5716_v38  ;;  %v6482_v21 = vld [vmem:[#allocation23_spill] sm:$0xff] }
 0x485   :  { %3064 = vmatpush1.bf16.msra.mxu0 %v5682_v26  ;;  %3105 = vmatpush1.bf16.msra.mxu1 %v5720_v40  ;;  %v5960_v26 = vld [vmem:[#allocation3 + $0x4] ss:$16 sps:$4 sm:$0xff]  }
 0x486   :  { %3065 = vmatprep.subr.bf16.mxu0 %v5690_v29  ;;  %3106 = vmatprep.subr.bf16.mxu1 %v5728_v42  ;;  %v2186_v29 = vld [vmem:[%s6270_s2] sm:$0xf] }
 0x487   :  { %v2199_v41 = vrot.slane %v2186_v29, %v5527_v52 }
 0x489   :  { %3066 = vmatpush1.bf16.msra.mxu0 %v5694_v31  ;;  %3107 = vmatpush1.bf16.msra.mxu1 %v5732_v45  ;;  %v2191_v31 = vrot.slane %v2186_v29, %v6484_v30 }
 0x48a   :  { %3067 = vmatprep.subr.bf16.mxu0 %v5702_v33  ;;  %3108 = vmatprep.subr.bf16.mxu1 %v5744_v59  ;;  %v2195_v33 = vrot.slane %v2186_v29, %v6485_v32 }
 0x48d   :  { %3068 = vmatpush1.bf16.msra.mxu0 %v5706_v35  ;;  %3109 = vmatpush1.bf16.msra.mxu1 %v5742_v63 }
 0x48e   :  { %3069 = vmatprep.subr.bf16.mxu0 %v5714_v37  ;;  %3110 = vmatprep.subr.bf16.mxu1 %v5749_v50  ;;  %v2203_v50 = vrot.slane %v2186_v29, %v5524_v62  ;;  %v6042_v29 = vld [vmem:[#allocation3 + $0x8c] ss:$16 sps:$4 sm:$0xff]  }
 0x491   :  { %3070 = vmatpush1.bf16.msra.mxu0 %v6462_v58  ;;  %3111 = vmatpush1.bf16.msra.mxu1 %v6463_v2  ;;  %v4962_v58 = vld [vmem:[%s6268_s0 + $0x14] ss:$0 sps:$4 sm:$0xff]  }
 0x492   :  { %3071 = vmatprep.subr.bf16.mxu0 %v6464_v3  ;;  %3112 = vmatprep.subr.bf16.mxu1 %v6465_v0  ;;  %v5980_v3 = vld [vmem:[#allocation3] ss:$16 sps:$4 sm:$0xff]   ;;  %v5982_v0 = vld [vmem:[#allocation3 + $0x8] ss:$16 sps:$4 sm:$0xff]  }
 0x495   :  { %3072 = vmatpush1.bf16.msra.mxu0 %v6466_v4  ;;  %3113 = vmatpush1.bf16.msra.mxu1 %v6467_v5  ;;  %v5984_v4 = vld [vmem:[#allocation3 + $0x24] ss:$16 sps:$4 sm:$0xff]  }
 0x496   :  { %3073 = vmatprep.subr.bf16.mxu0 %v6468_v7  ;;  %3114 = vmatprep.subr.bf16.mxu1 %v6469_v8  ;;  %v5991_v5 = vld [vmem:[#allocation3 + $0x44] ss:$16 sps:$4 sm:$0xff]   ;;  %v5994_v7 = vld [vmem:[#allocation3 + $0x40] ss:$16 sps:$4 sm:$0xff]  }
 0x497   :  { %v5997_v8 = vld [vmem:[#allocation3 + $0x64] ss:$16 sps:$4 sm:$0xff]  }
 0x499   :  { %3074 = vmatpush1.bf16.msra.mxu0 %v6470_v9  ;;  %3115 = vmatpush1.bf16.msra.mxu1 %v6471_v10  ;;  %v6000_v9 = vld [vmem:[#allocation3 + $0x60] ss:$16 sps:$4 sm:$0xff]   ;;  %v6004_v10 = vld [vmem:[#allocation3 + $0x84] ss:$16 sps:$4 sm:$0xff]  }
 0x49a   :  { %3075 = vmatprep.subr.bf16.mxu0 %v6472_v11  ;;  %3116 = vmatprep.subr.bf16.mxu1 %v6473_v12  ;;  %v6006_v11 = vld [vmem:[#allocation3 + $0x2c] ss:$16 sps:$4 sm:$0xff]   ;;  %v6008_v12 = vld [vmem:[#allocation3 + $0x80] ss:$16 sps:$4 sm:$0xff]  }
 0x49d   :  { %3076 = vmatpush1.bf16.msra.mxu0 %v6474_v13  ;;  %3117 = vmatpush1.bf16.msra.mxu1 %v6475_v14  ;;  %v6010_v13 = vld [vmem:[#allocation3 + $0x28] ss:$16 sps:$4 sm:$0xff]   ;;  %v6016_v14 = vld [vmem:[#allocation3 + $0xa4] ss:$16 sps:$4 sm:$0xff]  }
 0x49e   :  { %3077 = vmatprep.subr.bf16.mxu0 %v6476_v15  ;;  %3118 = vmatprep.subr.bf16.mxu1 %v6477_v16  ;;  %v6018_v15 = vld [vmem:[#allocation3 + $0x4c] ss:$16 sps:$4 sm:$0xff]   ;;  %v6020_v16 = vld [vmem:[#allocation3 + $0xa0] ss:$16 sps:$4 sm:$0xff]  }
 0x4a1   :  { %3078 = vmatpush1.bf16.msra.mxu0 %v6478_v17  ;;  %3119 = vmatpush1.bf16.msra.mxu1 %v6479_v18  ;;  %v6022_v17 = vld [vmem:[#allocation3 + $0x48] ss:$16 sps:$4 sm:$0xff]   ;;  %v6028_v18 = vld [vmem:[#allocation3 + $0xc4] ss:$16 sps:$4 sm:$0xff]  }
 0x4a2   :  { %3079 = vmatprep.subr.bf16.mxu0 %v6480_v19  ;;  %3120 = vmatprep.subr.bf16.mxu1 %v6481_v20  ;;  %v6030_v19 = vld [vmem:[#allocation3 + $0x6c] ss:$16 sps:$4 sm:$0xff]   ;;  %v6032_v20 = vld [vmem:[#allocation3 + $0xc0] ss:$16 sps:$4 sm:$0xff]  }
 0x4a5   :  { %3080 = vmatpush1.bf16.msra.mxu0 %v6482_v21  ;;  %3121 = vmatpush1.bf16.msra.mxu1 %v6483_v24  ;;  %v6034_v21 = vld [vmem:[#allocation3 + $0x68] ss:$16 sps:$4 sm:$0xff]   ;;  %v6040_v24 = vld [vmem:[#allocation3 + $0xe4] ss:$16 sps:$4 sm:$0xff]  }
 0x4a6   :  { %3570 = vmatprep.subr.bf16.mxu0 %v5960_v26  ;;  %3611 = vmatprep.subr.bf16.mxu1 %v5963_v28 }
 0x53b   :  { %v2562_v34 = vpop.f32.mrb[16].mxu0  ;;  %v2603_v35 = vpop.f32.mrb[16].mxu1 }
 0x53c   :  { %v2563_v36 = vadd.f32 %v2562_v34, %v2191_v31  ;;  %v2564_v37 = vpop.f32.mrb[17].mxu0  ;;  %v2605_v38 = vpop.f32.mrb[17].mxu1  ;;  %v2604_v43 = vadd.f32 %v2603_v35, %v2199_v41  ;;  %v6044_v31 = vld [vmem:[#allocation3 + $0xe0] ss:$16 sps:$4 sm:$0xff]   ;;  %v6052_v34 = vld [vmem:[#allocation3 + $0x104] ss:$16 sps:$4 sm:$0xff]  }
 0x53d   :  { %v2565_v40 = vadd.f32 %v2564_v37, %v2195_v33  ;;  %v2566_v42 = vpop.f32.mrb[18].mxu0  ;;  %v2607_v45 = vpop.f32.mrb[18].mxu1  ;;  %v2606_v27 = vadd.f32 %v2605_v38, %v2203_v50  ;;  %v6046_v33 = vld [vmem:[#allocation3 + $0x88] ss:$16 sps:$4 sm:$0xff]   ;;  %v6054_v35 = vld [vmem:[#allocation3 + $0xac] ss:$16 sps:$4 sm:$0xff]  }
 0x53e   :  { %v4546_v63 = vmul.f32 -1.442695, %v2563_v36  ;;  %v2567_v59 = vpop.f32.mrb[19].mxu0  ;;  %v2608_v47 = vpop.f32.mrb[19].mxu1  ;;  %v6056_v36 = vld [vmem:[#allocation3 + $0x100] ss:$16 sps:$4 sm:$0xff]  }
 0x53f   :  { %v4547_v23 = vmul.f32 -1.442695, %v2565_v40  ;;  %v4548_v60 = vmul.f32 -1.442695, %v2606_v27  ;;  %v6058_v37 = vld [vmem:[#allocation3 + $0xa8] ss:$16 sps:$4 sm:$0xff]  }
 0x540   :  { %5125 = vpow2.f32 %v4546_v63  ;;  %v6064_v38 = vld [vmem:[#allocation3 + $0x124] ss:$16 sps:$4 sm:$0xff]   ;;  %v6066_v40 = vld [vmem:[#allocation3 + $0xcc] ss:$16 sps:$4 sm:$0xff]   ;;  %v6068_v42 = vld [vmem:[#allocation3 + $0x120] ss:$16 sps:$4 sm:$0xff]  }
 0x541   :  { %5127 = vpow2.f32 %v4547_v23  ;;  %v6070_v45 = vld [vmem:[#allocation3 + $0xc8] ss:$16 sps:$4 sm:$0xff]   ;;  %v6076_v63 = vld [vmem:[#allocation3 + $0x144] ss:$16 sps:$4 sm:$0xff]   ;;  %v6078_v59 = vld [vmem:[#allocation3 + $0xec] ss:$16 sps:$4 sm:$0xff]  }
 0x542   :  { %5129 = vpow2.f32 %v4548_v60  ;;  %v6080_v50 = vld [vmem:[#allocation3 + $0x140] ss:$16 sps:$4 sm:$0xff]   ;;  %v6082_v47 = vld [vmem:[#allocation3 + $0xe8] ss:$16 sps:$4 sm:$0xff]   ;;  %v6088_v23 = vld [vmem:[#allocation3 + $0x164] ss:$16 sps:$4 sm:$0xff]  }
 0x543   :  { %5131 = vtanh.f32 %v2604_v43  ;;  %6486 = vst [vmem:[#allocation8_spill] sm:$0xff] %v6080_v50  ;;  %6487 = vst [vmem:[#allocation6_spill] sm:$0xff] %v6088_v23  ;;  %v6090_v27 = vld [vmem:[#allocation3 + $0x10c] ss:$16 sps:$4 sm:$0xff]   ;;  %v6092_v41 = vld [vmem:[#allocation3 + $0x160] ss:$16 sps:$4 sm:$0xff]  }
 0x544   :  { %6488 = vst [vmem:[#allocation11_spill] sm:$0xff] %v6092_v41  ;;  %v6094_v60 = vld [vmem:[#allocation3 + $0x108] ss:$16 sps:$4 sm:$0xff]   ;;  %v6100_v43 = vld [vmem:[#allocation3 + $0x180] ss:$16 sps:$4 sm:$0xff]  }
 0x545   :  { %6489 = vst [vmem:[#allocation13_spill] sm:$0xff] %v6100_v43 }
 0x54a   :  { %v5126_v56 = vpop.eup %5125 }
 0x54b   :  { %v5128_v22 = vpop.eup %5127  ;;  %v2613_v1 = vadd.f32 1.0, %v5126_v56  ;;  %v6102_v56 = vld [vmem:[#allocation3 + $0x184] ss:$16 sps:$4 sm:$0xff]  }
 0x54c   :  { %v2619_v61 = vadd.f32 1.0, %v5128_v22  ;;  %v5130_v49 = vpop.eup %5129  ;;  %6490 = vst [vmem:[#allocation7_spill] sm:$0xff] %v6102_v56  ;;  %v6104_v22 = vld [vmem:[#allocation3 + $0x128] ss:$16 sps:$4 sm:$0xff]  }
 0x54d   :  { %5133 = vrcp.f32 %v2613_v1  ;;  %v5132_v25 = vpop.eup %5131  ;;  %v2626_v39 = vadd.f32 1.0, %v5130_v49  ;;  %v6106_v1 = vld [vmem:[#allocation3 + $0x12c] ss:$16 sps:$4 sm:$0xff]  }
 0x54e   :  { %5135 = vrcp.f32 %v2619_v61  ;;  %v6108_v61 = vld [vmem:[#allocation3 + $0x1a4] ss:$16 sps:$4 sm:$0xff]   ;;  %v6111_v49 = vld [vmem:[#allocation3 + $0x14c] ss:$16 sps:$4 sm:$0xff]  }
 0x54f   :  { %5137 = vrcp.f32 %v2626_v39  ;;  %6491 = vst [vmem:[#allocation14_spill] sm:$0xff] %v6108_v61  ;;  %v6121_v39 = vld [vmem:[#allocation3 + $0x1c4] ss:$16 sps:$4 sm:$0xff]  }
 0x550   :  { %6494 = vst [vmem:[#allocation15_spill] sm:$0xff] %v6121_v39 }
 0x557   :  { %v5134_v46 = vpop.eup %5133 }
 0x558   :  { %v5136_v48 = vpop.eup %5135  ;;  %v2630_v6 = vmul.f32 %v5134_v46, %v5132_v25  ;;  %v6115_v25 = vld [vmem:[#allocation3 + $0x1a0] ss:$16 sps:$4 sm:$0xff]   ;;  %v6119_v46 = vld [vmem:[#allocation3 + $0x148] ss:$16 sps:$4 sm:$0xff]  }
 0x559   :  { %v2629_v57 = vmul.f32 %v5136_v48, %v5892_v51  ;;  %v5138_v53 = vpop.eup %5137  ;;  %v5987_v51 = vld [vmem:[#allocation3 + $0x20] ss:$16 sps:$4 sm:$0xff]   ;;  %6492 = vst [vmem:[#allocation12_spill] sm:$0xff] %v6115_v25  ;;  %6493 = vst [vmem:[#allocation17_spill] sm:$0xff] %v6119_v46  ;;  %v6124_v48 = vld [vmem:[#allocation3 + $0x16c] ss:$16 sps:$4 sm:$0xff]  }
 0x55a   :  { %6495 = vst [vmem:[#allocation18_spill] sm:$0xff] %v6124_v48 }
 0x55b   :  { %v5974_v44 = vadd.f32 %v2630_v6, %v2629_v57  ;;  %v6127_v6 = vld [vmem:[#allocation3 + $0x1c0] ss:$16 sps:$4 sm:$0xff]   ;;  %v6131_v57 = vld [vmem:[#allocation3 + $0x168] ss:$16 sps:$4 sm:$0xff]  }
 0x55c   :  { %6496 = vst [vmem:[#allocation9_spill] sm:$0xff] %v6127_v6  ;;  %6497 = vst [vmem:[#allocation21_spill] sm:$0xff] %v6131_v57 }
 0x55d   :  { %5139 = vtanh.f32 %v5974_v44 }
 0x567   :  { %v5140_v55 = vpop.eup %5139 }
 0x568   :  { %v2633_v54 = vmul.f32 %v5140_v55, %v5138_v53  ;;  %v6133_v53 = vld [vmem:[#allocation3 + $0x1e4] ss:$16 sps:$4 sm:$0xff]   ;;  %v6136_v55 = vld [vmem:[#allocation3 + $0x18c] ss:$16 sps:$4 sm:$0xff]  }
 0x569   :  { %6498 = vst [vmem:[#allocation10_spill] sm:$0xff] %v6133_v53  ;;  %6499 = vst [vmem:[#allocation24_spill] sm:$0xff] %v6136_v55 }
 0x56a   :  { %v2642_v2 = vpack.c.bf16 %v2633_v54, %v2633_v54  ;;  %v6139_v54 = vld [vmem:[#allocation3 + $0x1e0] ss:$16 sps:$4 sm:$0xff]  }
 0x56b   :  { %6500 = vst [vmem:[#allocation16_spill] sm:$0xff] %v6139_v54 }
 0x56c   :  { %3081 = vmatprep.mubr.bf16.mxu0 %v2642_v2  ;;  %3122 = vmatprep.mubr.bf16.mxu1 %v2642_v2  ;;  %v6148_v2 = vld [vmem:[#allocation3 + $0x1ac] ss:$16 sps:$4 sm:$0xff]  }
 0x56d   :  { %3082 = vmatmul.mubr.bf16.vlgmr.msra.gmra.mrb[20].mxu0 %v4962_v58  ;;  %3123 = vmatmul.mubr.bf16.vlgmr.msra.gmra.mrb[20].mxu1 %v4962_v58  ;;  %v6143_v58 = vld [vmem:[#allocation3 + $0x188] ss:$16 sps:$4 sm:$0xff]   ;;  %6502 = vst [vmem:[#allocation19_spill] sm:$0xff] %v6148_v2 }
 0x56e   :  { %3571 = vmatpush1.bf16.msra.mxu0 %v5980_v3  ;;  %3612 = vmatpush1.bf16.msra.mxu1 %v5982_v0  ;;  %6501 = vst [vmem:[#allocation27_spill] sm:$0xff] %v6143_v58 }
 0x56f   :  { %3572 = vmatprep.subr.bf16.mxu0 %v5984_v4  ;;  %3613 = vmatprep.subr.bf16.mxu1 %v6006_v11 }
 0x572   :  { %3573 = vmatpush1.bf16.msra.mxu0 %v5987_v51  ;;  %3614 = vmatpush1.bf16.msra.mxu1 %v6010_v13 }
 0x573   :  { %3574 = vmatprep.subr.bf16.mxu0 %v5991_v5  ;;  %3615 = vmatprep.subr.bf16.mxu1 %v6018_v15 }
 0x576   :  { %3575 = vmatpush1.bf16.msra.mxu0 %v5994_v7  ;;  %3616 = vmatpush1.bf16.msra.mxu1 %v6022_v17 }
 0x577   :  { %3576 = vmatprep.subr.bf16.mxu0 %v5997_v8  ;;  %3617 = vmatprep.subr.bf16.mxu1 %v6030_v19 }
 0x57a   :  { %3577 = vmatpush1.bf16.msra.mxu0 %v6000_v9  ;;  %3618 = vmatpush1.bf16.msra.mxu1 %v6034_v21 }
 0x57b   :  { %3578 = vmatprep.subr.bf16.mxu0 %v6004_v10  ;;  %3619 = vmatprep.subr.bf16.mxu1 %v6042_v29 }
 0x57e   :  { %3579 = vmatpush1.bf16.msra.mxu0 %v6008_v12  ;;  %3620 = vmatpush1.bf16.msra.mxu1 %v6046_v33 }
 0x57f   :  { %3580 = vmatprep.subr.bf16.mxu0 %v6016_v14  ;;  %3621 = vmatprep.subr.bf16.mxu1 %v6054_v35 }
 0x582   :  { %3581 = vmatpush1.bf16.msra.mxu0 %v6020_v16  ;;  %3622 = vmatpush1.bf16.msra.mxu1 %v6058_v37 }
 0x583   :  { %3582 = vmatprep.subr.bf16.mxu0 %v6028_v18  ;;  %3623 = vmatprep.subr.bf16.mxu1 %v6066_v40 }
 0x586   :  { %3583 = vmatpush1.bf16.msra.mxu0 %v6032_v20  ;;  %3624 = vmatpush1.bf16.msra.mxu1 %v6070_v45 }
 0x587   :  { %3584 = vmatprep.subr.bf16.mxu0 %v6040_v24  ;;  %3625 = vmatprep.subr.bf16.mxu1 %v6078_v59 }
 0x58a   :  { %3585 = vmatpush1.bf16.msra.mxu0 %v6044_v31  ;;  %3626 = vmatpush1.bf16.msra.mxu1 %v6082_v47 }
 0x58b   :  { %3586 = vmatprep.subr.bf16.mxu0 %v6052_v34  ;;  %3627 = vmatprep.subr.bf16.mxu1 %v6090_v27 }
 0x58e   :  { %3587 = vmatpush1.bf16.msra.mxu0 %v6056_v36  ;;  %3628 = vmatpush1.bf16.msra.mxu1 %v6094_v60 }
 0x58f   :  { %3588 = vmatprep.subr.bf16.mxu0 %v6064_v38  ;;  %3629 = vmatprep.subr.bf16.mxu1 %v6106_v1 }
 0x592   :  { %3589 = vmatpush1.bf16.msra.mxu0 %v6068_v42  ;;  %3630 = vmatpush1.bf16.msra.mxu1 %v6104_v22 }
 0x593   :  { %3590 = vmatprep.subr.bf16.mxu0 %v6076_v63  ;;  %3631 = vmatprep.subr.bf16.mxu1 %v6111_v49 }
 0x596   :  { %3591 = vmatpush1.bf16.msra.mxu0 %v6080_v50  ;;  %3632 = vmatpush1.bf16.msra.mxu1 %v6119_v46 }
 0x597   :  { %3592 = vmatprep.subr.bf16.mxu0 %v6088_v23  ;;  %3633 = vmatprep.subr.bf16.mxu1 %v6124_v48 }
 0x59a   :  { %3593 = vmatpush1.bf16.msra.mxu0 %v6092_v41  ;;  %3634 = vmatpush1.bf16.msra.mxu1 %v6131_v57 }
 0x59b   :  { %3594 = vmatprep.subr.bf16.mxu0 %v6102_v56  ;;  %3635 = vmatprep.subr.bf16.mxu1 %v6136_v55 }
 0x59e   :  { %3595 = vmatpush1.bf16.msra.mxu0 %v6100_v43  ;;  %3636 = vmatpush1.bf16.msra.mxu1 %v6143_v58 }
 0x59f   :  { %3596 = vmatprep.subr.bf16.mxu0 %v6108_v61  ;;  %3637 = vmatprep.subr.bf16.mxu1 %v6148_v2 }
 0x5a2   :  { %3597 = vmatpush1.bf16.msra.mxu0 %v6115_v25  ;;  %v6160_v25 = vld [vmem:[#allocation3 + $0x1ec] ss:$16 sps:$4 sm:$0xff]  }
 0x5a3   :  { %3598 = vmatprep.subr.bf16.mxu0 %v6121_v39  ;;  %v6151_v39 = vld [vmem:[#allocation3 + $0x1a8] ss:$16 sps:$4 sm:$0xff]   ;;  %6506 = vst [vmem:[#allocation22_spill] sm:$0xff] %v6160_v25 }
 0x5a4   :  { %6503 = vst [vmem:[#allocation28_spill] sm:$0xff] %v6151_v39  ;;  %3638 = vmatpush1.bf16.msra.mxu1 %v6151_v39 }
 0x5a6   :  { %3599 = vmatpush1.bf16.msra.mxu0 %v6127_v6  ;;  %v6154_v6 = vld [vmem:[#allocation3 + $0x1cc] ss:$16 sps:$4 sm:$0xff]  }
 0x5a7   :  { %3600 = vmatprep.subr.bf16.mxu0 %v6133_v53  ;;  %6504 = vst [vmem:[#allocation20_spill] sm:$0xff] %v6154_v6  ;;  %v6157_v53 = vld [vmem:[#allocation3 + $0x1c8] ss:$16 sps:$4 sm:$0xff]   ;;  %3639 = vmatprep.subr.bf16.mxu1 %v6154_v6 }
 0x5a8   :  { %6505 = vst [vmem:[#allocation29_spill] sm:$0xff] %v6157_v53  ;;  %3640 = vmatpush1.bf16.msra.mxu1 %v6157_v53 }
 0x5a9   :  { %3641 = vmatprep.subr.bf16.mxu1 %v6160_v25 }
 0x5aa   :  { %3601 = vmatpush1.bf16.msra.mxu0 %v6139_v54  ;;  %v6163_v54 = vld [vmem:[#allocation3 + $0x1e8] ss:$16 sps:$4 sm:$0xff]  }
 0x5ab   :  { %4091 = vmatprep.subr.bf16.mxu0 %v5960_v26  ;;  %6507 = vst [vmem:[#allocation30_spill] sm:$0xff] %v6163_v54  ;;  %v2707_v26 = vld [vmem:[%s6270_s2] sm:$0xf] }
 0x5ac   :  { %3642 = vmatpush1.bf16.msra.mxu1 %v6163_v54  ;;  %v2712_v39 = vrot.slane %v2707_v26, %v6484_v30  ;;  %v2716_v6 = vrot.slane %v2707_v26, %v6485_v32  ;;  %v2720_v30 = vrot.slane %v2707_v26, %v5527_v52 }
 0x5ad   :  { %4132 = vmatprep.subr.bf16.mxu1 %v5963_v28  ;;  %v2724_v28 = vrot.slane %v2707_v26, %v5524_v62 }
 0x640   :  { %v3083_v2 = vpop.f32.mrb[20].mxu0  ;;  %v3124_v61 = vpop.f32.mrb[20].mxu1 }
 0x641   :  { %v3084_v58 = vadd.f32 %v3083_v2, %v2712_v39  ;;  %v3085_v53 = vpop.f32.mrb[21].mxu0  ;;  %v3126_v43 = vpop.f32.mrb[21].mxu1  ;;  %v3125_v46 = vadd.f32 %v3124_v61, %v2720_v30 }
 0x642   :  { %v3086_v55 = vadd.f32 %v3085_v53, %v2716_v6  ;;  %v3087_v56 = vpop.f32.mrb[22].mxu0  ;;  %v3128_v25 = vpop.f32.mrb[22].mxu1  ;;  %v3127_v23 = vadd.f32 %v3126_v43, %v2724_v28 }
 0x643   :  { %v4614_v57 = vmul.f32 -1.442695, %v3084_v58  ;;  %v3088_v54 = vpop.f32.mrb[23].mxu0  ;;  %v3129_v41 = vpop.f32.mrb[23].mxu1 }
 0x644   :  { %v4615_v48 = vmul.f32 -1.442695, %v3086_v55  ;;  %v4616_v32 = vmul.f32 -1.442695, %v3127_v23  ;;  %v5050_v23 = vld [vmem:[%s6268_s0 + $0x18] ss:$0 sps:$4 sm:$0xff]  }
 0x645   :  { %5141 = vpow2.f32 %v4614_v57 }
 0x646   :  { %5143 = vpow2.f32 %v4615_v48 }
 0x647   :  { %5145 = vpow2.f32 %v4616_v32 }
 0x648   :  { %5147 = vtanh.f32 %v3125_v46 }
 0x64f   :  { %v5142_v50 = vpop.eup %5141 }
 0x650   :  { %v5144_v39 = vpop.eup %5143  ;;  %v3134_v2 = vadd.f32 1.0, %v5142_v50 }
 0x651   :  { %v3140_v56 = vadd.f32 1.0, %v5144_v39  ;;  %v5146_v25 = vpop.eup %5145 }
 0x652   :  { %5149 = vrcp.f32 %v3134_v2  ;;  %v5148_v6 = vpop.eup %5147  ;;  %v3147_v41 = vadd.f32 1.0, %v5146_v25 }
 0x653   :  { %5151 = vrcp.f32 %v3140_v56 }
 0x654   :  { %5153 = vrcp.f32 %v3147_v41 }
 0x65c   :  { %v5150_v53 = vpop.eup %5149 }
 0x65d   :  { %v5152_v55 = vpop.eup %5151  ;;  %v3151_v57 = vmul.f32 %v5150_v53, %v5148_v6 }
 0x65e   :  { %v3150_v43 = vmul.f32 %v5152_v55, %v5974_v44  ;;  %v5154_v30 = vpop.eup %5153  ;;  %v6508_v44 = vld [vmem:[#allocation8_spill] sm:$0xff] }
 0x660   :  { %v6176_v48 = vadd.f32 %v3151_v57, %v3150_v43 }
 0x662   :  { %5155 = vtanh.f32 %v6176_v48 }
 0x66c   :  { %v5156_v32 = vpop.eup %5155 }
 0x66d   :  { %v3154_v50 = vmul.f32 %v5156_v32, %v5154_v30 }
 0x66f   :  { %v3163_v61 = vpack.c.bf16 %v3154_v50, %v3154_v50 }
 0x671   :  { %3602 = vmatprep.mubr.bf16.mxu0 %v3163_v61  ;;  %3643 = vmatprep.mubr.bf16.mxu1 %v3163_v61 }
 0x672   :  { %3603 = vmatmul.mubr.bf16.vlgmr.msra.gmra.mrb[24].mxu0 %v5050_v23  ;;  %3644 = vmatmul.mubr.bf16.vlgmr.msra.gmra.mrb[24].mxu1 %v5050_v23  ;;  %v5060_v23 = vld [vmem:[%s6268_s0 + $0x1c] ss:$0 sps:$4 sm:$0xff]  }
 0x673   :  { %4092 = vmatpush1.bf16.msra.mxu0 %v5980_v3  ;;  %4133 = vmatpush1.bf16.msra.mxu1 %v5982_v0  ;;  %v6509_v3 = vld [vmem:[#allocation17_spill] sm:$0xff]  ;;  %v6510_v0 = vld [vmem:[#allocation6_spill] sm:$0xff] }
 0x674   :  { %4093 = vmatprep.subr.bf16.mxu0 %v5984_v4  ;;  %4134 = vmatprep.subr.bf16.mxu1 %v6006_v11  ;;  %v6511_v4 = vld [vmem:[#allocation18_spill] sm:$0xff] }
 0x675   :  { %v6518_v11 = vld [vmem:[#allocation14_spill] sm:$0xff] }
 0x677   :  { %4094 = vmatpush1.bf16.msra.mxu0 %v5987_v51  ;;  %4135 = vmatpush1.bf16.msra.mxu1 %v6010_v13  ;;  %v6512_v51 = vld [vmem:[#allocation11_spill] sm:$0xff]  ;;  %v6520_v13 = vld [vmem:[#allocation12_spill] sm:$0xff] }
 0x678   :  { %4095 = vmatprep.subr.bf16.mxu0 %v5991_v5  ;;  %4136 = vmatprep.subr.bf16.mxu1 %v6018_v15  ;;  %v6513_v5 = vld [vmem:[#allocation21_spill] sm:$0xff]  ;;  %v6522_v15 = vld [vmem:[#allocation15_spill] sm:$0xff] }
 0x67b   :  { %4096 = vmatpush1.bf16.msra.mxu0 %v5994_v7  ;;  %4137 = vmatpush1.bf16.msra.mxu1 %v6022_v17  ;;  %v6514_v7 = vld [vmem:[#allocation7_spill] sm:$0xff]  ;;  %v6524_v17 = vld [vmem:[#allocation9_spill] sm:$0xff] }
 0x67c   :  { %4097 = vmatprep.subr.bf16.mxu0 %v5997_v8  ;;  %4138 = vmatprep.subr.bf16.mxu1 %v6030_v19  ;;  %v6515_v8 = vld [vmem:[#allocation24_spill] sm:$0xff]  ;;  %v6526_v19 = vld [vmem:[#allocation10_spill] sm:$0xff] }
 0x67f   :  { %4098 = vmatpush1.bf16.msra.mxu0 %v6000_v9  ;;  %4139 = vmatpush1.bf16.msra.mxu1 %v6034_v21  ;;  %v6516_v9 = vld [vmem:[#allocation13_spill] sm:$0xff]  ;;  %v6528_v21 = vld [vmem:[#allocation16_spill] sm:$0xff] }
 0x680   :  { %4099 = vmatprep.subr.bf16.mxu0 %v6004_v10  ;;  %4140 = vmatprep.subr.bf16.mxu1 %v6042_v29  ;;  %v6517_v10 = vld [vmem:[#allocation27_spill] sm:$0xff]  ;;  %v3228_v29 = vld [vmem:[%s6270_s2] sm:$0xf] }
 0x681   :  { %v3241_v46 = vrot.slane %v3228_v29, %v5527_v52 }
 0x683   :  { %4100 = vmatpush1.bf16.msra.mxu0 %v6008_v12  ;;  %4141 = vmatpush1.bf16.msra.mxu1 %v6046_v33  ;;  %v6519_v12 = vld [vmem:[#allocation19_spill] sm:$0xff] }
 0x684   :  { %4101 = vmatprep.subr.bf16.mxu0 %v6016_v14  ;;  %4142 = vmatprep.subr.bf16.mxu1 %v6054_v35  ;;  %v6521_v14 = vld [vmem:[#allocation28_spill] sm:$0xff] }
 0x687   :  { %4102 = vmatpush1.bf16.msra.mxu0 %v6020_v16  ;;  %4143 = vmatpush1.bf16.msra.mxu1 %v6058_v37  ;;  %v6523_v16 = vld [vmem:[#allocation20_spill] sm:$0xff] }
 0x688   :  { %4103 = vmatprep.subr.bf16.mxu0 %v6028_v18  ;;  %4144 = vmatprep.subr.bf16.mxu1 %v6066_v40  ;;  %v6525_v18 = vld [vmem:[#allocation29_spill] sm:$0xff] }
 0x68b   :  { %4104 = vmatpush1.bf16.msra.mxu0 %v6032_v20  ;;  %4145 = vmatpush1.bf16.msra.mxu1 %v6070_v45  ;;  %v6527_v20 = vld [vmem:[#allocation22_spill] sm:$0xff] }
 0x68c   :  { %4105 = vmatprep.subr.bf16.mxu0 %v6040_v24  ;;  %4146 = vmatprep.subr.bf16.mxu1 %v6078_v59  ;;  %v6529_v24 = vld [vmem:[#allocation30_spill] sm:$0xff] }
 0x68f   :  { %4106 = vmatpush1.bf16.msra.mxu0 %v6044_v31  ;;  %4147 = vmatpush1.bf16.msra.mxu1 %v6082_v47  ;;  %v6530_v31 = vld [vmem:[#allocation25_spill] sm:$0xff] }
 0x690   :  { %4107 = vmatprep.subr.bf16.mxu0 %v6052_v34  ;;  %4148 = vmatprep.subr.bf16.mxu1 %v6090_v27  ;;  %v3233_v33 = vrot.slane %v3228_v29, %v6530_v31  ;;  %v6531_v34 = vld [vmem:[#allocation26_spill] sm:$0xff] }
 0x691   :  { %v3237_v35 = vrot.slane %v3228_v29, %v6531_v34 }
 0x693   :  { %4108 = vmatpush1.bf16.msra.mxu0 %v6056_v36  ;;  %4149 = vmatpush1.bf16.msra.mxu1 %v6094_v60  ;;  %v3245_v60 = vrot.slane %v3228_v29, %v5524_v62 }
 0x694   :  { %4109 = vmatprep.subr.bf16.mxu0 %v6064_v38  ;;  %4150 = vmatprep.subr.bf16.mxu1 %v6106_v1 }
 0x697   :  { %4110 = vmatpush1.bf16.msra.mxu0 %v6068_v42  ;;  %4151 = vmatpush1.bf16.msra.mxu1 %v6104_v22 }
 0x698   :  { %4111 = vmatprep.subr.bf16.mxu0 %v6076_v63  ;;  %4152 = vmatprep.subr.bf16.mxu1 %v6111_v49 }
 0x69b   :  { %4112 = vmatpush1.bf16.msra.mxu0 %v6508_v44  ;;  %4153 = vmatpush1.bf16.msra.mxu1 %v6509_v3  ;;  %v3749_v44 = vld [vmem:[%s6270_s2] sm:$0xf] }
 0x69c   :  { %4113 = vmatprep.subr.bf16.mxu0 %v6510_v0  ;;  %4154 = vmatprep.subr.bf16.mxu1 %v6511_v4  ;;  %v3758_v3 = vrot.slane %v3749_v44, %v6531_v34 }
 0x69f   :  { %4114 = vmatpush1.bf16.msra.mxu0 %v6512_v51  ;;  %4155 = vmatpush1.bf16.msra.mxu1 %v6513_v5 }
 0x6a0   :  { %4115 = vmatprep.subr.bf16.mxu0 %v6514_v7  ;;  %4156 = vmatprep.subr.bf16.mxu1 %v6515_v8 }
 0x6a3   :  { %4116 = vmatpush1.bf16.msra.mxu0 %v6516_v9  ;;  %4157 = vmatpush1.bf16.msra.mxu1 %v6517_v10 }
 0x6a4   :  { %4117 = vmatprep.subr.bf16.mxu0 %v6518_v11  ;;  %4158 = vmatprep.subr.bf16.mxu1 %v6519_v12 }
 0x6a7   :  { %4118 = vmatpush1.bf16.msra.mxu0 %v6520_v13  ;;  %4159 = vmatpush1.bf16.msra.mxu1 %v6521_v14  ;;  %v3766_v13 = vrot.slane %v3749_v44, %v5524_v62 }
 0x6a8   :  { %4119 = vmatprep.subr.bf16.mxu0 %v6522_v15  ;;  %4160 = vmatprep.subr.bf16.mxu1 %v6523_v16 }
 0x6ab   :  { %4120 = vmatpush1.bf16.msra.mxu0 %v6524_v17  ;;  %4161 = vmatpush1.bf16.msra.mxu1 %v6525_v18  ;;  %v3762_v17 = vrot.slane %v3749_v44, %v5527_v52 }
 0x6ac   :  { %4121 = vmatprep.subr.bf16.mxu0 %v6526_v19  ;;  %4162 = vmatprep.subr.bf16.mxu1 %v6527_v20 }
 0x6af   :  { %4122 = vmatpush1.bf16.msra.mxu0 %v6528_v21  ;;  %4163 = vmatpush1.bf16.msra.mxu1 %v6529_v24 }
 0x745   :  { %v3604_v36 = vpop.f32.mrb[24].mxu0  ;;  %v3645_v37 = vpop.f32.mrb[24].mxu1 }
 0x746   :  { %v3605_v38 = vadd.f32 %v3604_v36, %v3233_v33  ;;  %v3606_v40 = vpop.f32.mrb[25].mxu0  ;;  %v3647_v42 = vpop.f32.mrb[25].mxu1  ;;  %v3646_v58 = vadd.f32 %v3645_v37, %v3241_v46 }
 0x747   :  { %v3607_v45 = vadd.f32 %v3606_v40, %v3237_v35  ;;  %v3608_v63 = vpop.f32.mrb[26].mxu0  ;;  %v3649_v59 = vpop.f32.mrb[26].mxu1  ;;  %v3648_v49 = vadd.f32 %v3647_v42, %v3245_v60 }
 0x748   :  { %v4682_v47 = vmul.f32 -1.442695, %v3605_v38  ;;  %v3609_v27 = vpop.f32.mrb[27].mxu0  ;;  %v3650_v22 = vpop.f32.mrb[27].mxu1 }
 0x749   :  { %v4683_v1 = vmul.f32 -1.442695, %v3607_v45  ;;  %v4684_v54 = vmul.f32 -1.442695, %v3648_v49 }
 0x74a   :  { %5157 = vpow2.f32 %v4682_v47 }
 0x74b   :  { %5159 = vpow2.f32 %v4683_v1 }
 0x74c   :  { %5161 = vpow2.f32 %v4684_v54 }
 0x74d   :  { %5163 = vtanh.f32 %v3646_v58 }
 0x754   :  { %v5158_v26 = vpop.eup %5157 }
 0x755   :  { %v5160_v28 = vpop.eup %5159  ;;  %v3655_v39 = vadd.f32 1.0, %v5158_v26 }
 0x756   :  { %v3661_v2 = vadd.f32 1.0, %v5160_v28  ;;  %v5162_v56 = vpop.eup %5161 }
 0x757   :  { %5165 = vrcp.f32 %v3655_v39  ;;  %v5164_v25 = vpop.eup %5163  ;;  %v3668_v53 = vadd.f32 1.0, %v5162_v56 }
 0x758   :  { %5167 = vrcp.f32 %v3661_v2 }
 0x759   :  { %5169 = vrcp.f32 %v3668_v53 }
 0x761   :  { %v5166_v6 = vpop.eup %5165 }
 0x762   :  { %v5168_v41 = vpop.eup %5167  ;;  %v3672_v55 = vmul.f32 %v5166_v6, %v5164_v25 }
 0x763   :  { %v3671_v57 = vmul.f32 %v5168_v41, %v6176_v48  ;;  %v5170_v30 = vpop.eup %5169  ;;  %v3754_v48 = vrot.slane %v3749_v44, %v6530_v31 }
 0x765   :  { %v3673_v43 = vadd.f32 %v3672_v55, %v3671_v57 }
 0x767   :  { %5171 = vtanh.f32 %v3673_v43 }
 0x771   :  { %v5172_v32 = vpop.eup %5171 }
 0x772   :  { %v3675_v50 = vmul.f32 %v5172_v32, %v5170_v30 }
 0x774   :  { %v3684_v61 = vpack.c.bf16 %v3675_v50, %v3675_v50 }
 0x776   :  { %4123 = vmatprep.mubr.bf16.mxu0 %v3684_v61  ;;  %4164 = vmatprep.mubr.bf16.mxu1 %v3684_v61 }
 0x777   :  { %4124 = vmatmul.mubr.bf16.vlgmr.msra.gmra.mrb[28].mxu0 %v5060_v23  ;;  %4165 = vmatmul.mubr.bf16.vlgmr.msra.gmra.mrb[28].mxu1 %v5060_v23 }
 0x84a   :  { %v4125_v0 = vpop.f32.mrb[28].mxu0  ;;  %v4166_v4 = vpop.f32.mrb[28].mxu1 }
 0x84b   :  { %v4126_v51 = vadd.f32 %v4125_v0, %v3754_v48  ;;  %v4127_v5 = vpop.f32.mrb[29].mxu0  ;;  %v4168_v7 = vpop.f32.mrb[29].mxu1  ;;  %v4167_v19 = vadd.f32 %v4166_v4, %v3762_v17 }
 0x84c   :  { %v4128_v8 = vadd.f32 %v4127_v5, %v3758_v3  ;;  %v4129_v9 = vpop.f32.mrb[30].mxu0  ;;  %v4170_v10 = vpop.f32.mrb[30].mxu1  ;;  %v4169_v16 = vadd.f32 %v4168_v7, %v3766_v13 }
 0x84d   :  { %v4750_v11 = vmul.f32 -1.442695, %v4126_v51  ;;  %v4130_v12 = vpop.f32.mrb[31].mxu0  ;;  %v4171_v14 = vpop.f32.mrb[31].mxu1 }
 0x84e   :  { %v4751_v15 = vmul.f32 -1.442695, %v4128_v8  ;;  %v4752_v18 = vmul.f32 -1.442695, %v4169_v16 }
 0x84f   :  { %5173 = vpow2.f32 %v4750_v11 }
 0x850   :  { %5175 = vpow2.f32 %v4751_v15 }
 0x851   :  { %5177 = vpow2.f32 %v4752_v18 }
 0x852   :  { %5179 = vtanh.f32 %v4167_v19 }
 0x859   :  { %v5174_v20 = vpop.eup %5173 }
 0x85a   :  { %v5176_v21 = vpop.eup %5175  ;;  %v4176_v24 = vadd.f32 1.0, %v5174_v20 }
 0x85b   :  { %v4182_v29 = vadd.f32 1.0, %v5176_v21  ;;  %v5178_v31 = vpop.eup %5177 }
 0x85c   :  { %5181 = vrcp.f32 %v4176_v24  ;;  %v5180_v33 = vpop.eup %5179  ;;  %v4189_v34 = vadd.f32 1.0, %v5178_v31 }
 0x85d   :  { %5183 = vrcp.f32 %v4182_v29 }
 0x85e   :  { %5185 = vrcp.f32 %v4189_v34 }
 0x866   :  { %v5182_v62 = vpop.eup %5181 }
 0x867   :  { %v5184_v35 = vpop.eup %5183  ;;  %v4193_v36 = vmul.f32 %v5182_v62, %v5180_v33 }
 0x868   :  { %v4192_v37 = vmul.f32 %v5184_v35, %v3673_v43  ;;  %v5186_v52 = vpop.eup %5185 }
 0x86a   :  { %v4194_v38 = vadd.f32 %v4193_v36, %v4192_v37 }
 0x86c   :  { %5187 = vtanh.f32 %v4194_v38  ;;  %4200 = vst [vmem:[%s6272_s4] sm:$0xff] %v4194_v38 }
 0x876   :  { %v5188_v40 = vpop.eup %5187 }
 0x877   :  { %v4196_v42 = vmul.f32 %v5188_v40, %v5186_v52 }
 0x879   :  { %4199 = vst [vmem:[%s6271_s3] sm:$0xff] %v4196_v42 }
 0x87a   :  { %4209 = vsyncpa [#allocation4], 1 }

</bundles_post_ra>
